<compile_context>
chip_gen: v7x
topology: tpu7x:2x2x1
jax: 0.10.0
libtpu: 0.0.40
codegen_flags: <defaults>
</compile_context>

<pallas_src>
import functools

import jax
import jax.numpy as jnp
from jax.experimental import pallas as pl
from jax.experimental.pallas import tpu as pltpu

_SUB = 8                 # sublanes per chunk (one vreg row-tile)
_CL = 256                # lanes per chunk (2 vregs per slab) -> ~30 live vregs in fused body
_GRANULE = _SUB * _CL    # batch padding granule (2048 elements)


def _round_up(n, m):
    return ((n + m - 1) // m) * m


def _dnn_kernel(x_ref, w1_ref, b1_ref, w2_ref, b2_ref, w3_ref, b3_ref, o_ref, *, n_chunks):
    """Fused MLP forward on one batch tile.

    x_ref : (F, 8*n_chunks, CL) f32 VMEM  -- batch fills sublanes+lanes; one slab per feature
    w1    : (16, F), b1: (16,), w2: (8, 16), b2: (8,), w3: (1, 8), b3: (1,)  -- SMEM scalars
    o_ref : (8*n_chunks, CL) f32 VMEM
    """
    F = x_ref.shape[0]
    H1 = w1_ref.shape[0]   # 16
    H2 = w2_ref.shape[0]   # 8

    @pl.loop(0, n_chunks)
    def _(c):
        row = pl.multiple_of(c * _SUB, _SUB)

        # This chunk's input: F dense (8, CL) slabs.
        xs = [x_ref[f, pl.ds(row, _SUB), :] for f in range(F)]

        # Layers 1+2 fused: consume each h1_j into the 8 layer-2 accumulators immediately,
        # so only ~(F + H2 + 2) slabs are live at any point (register resident).
        acc2 = [None] * H2
        for j in range(H1):
            a = w1_ref[j, 0] * xs[0]
            for f in range(1, F):
                a = a + w1_ref[j, f] * xs[f]
            h1j = jnp.maximum(a + b1_ref[j], 0.0)
            for m in range(H2):
                t = w2_ref[m, j] * h1j
                acc2[m] = t if acc2[m] is None else acc2[m] + t

        # Layer 3 on dense slabs.
        logit = None
        for m in range(H2):
            h2m = jnp.maximum(acc2[m] + b2_ref[m], 0.0)
            t = w3_ref[0, m] * h2m
            logit = t if logit is None else logit + t
        logit = logit + b3_ref[0]

        # sigmoid = 1/(1+exp(-x)): exp on EUP; divide replaced by EUP reciprocal (frees VALU).
        out = pl.reciprocal(1.0 + jnp.exp(-logit), approx=True)
        o_ref[pl.ds(row, _SUB), :] = out.astype(o_ref.dtype)


@functools.partial(jax.jit, static_argnames=("tb_max",))
def dnn_forward(x, params, *, tb_max=32768):
    """Fused MLP forward pass as a single batch-tiled Pallas kernel.

    x: (B, input_dim) float32
    params: PyTorch nn.Linear layout: w (out_features, in_features), b (out_features, 1)
    returns: (B, 1) float32 probabilities
    """
    B, F = x.shape
    w1 = params["w1"].astype(jnp.float32)
    b1 = params["b1"].reshape(-1).astype(jnp.float32)
    w2 = params["w2"].astype(jnp.float32)
    b2 = params["b2"].reshape(-1).astype(jnp.float32)
    w3 = params["w3"].astype(jnp.float32)
    b3 = params["b3"].reshape(-1).astype(jnp.float32)
    H1, H2 = w1.shape[0], w2.shape[0]

    # ---- tile policy (compute-bound: padded elements cost real time) ----
    tb_max = max(_GRANULE, _round_up(tb_max, _GRANULE))
    n_tiles = max(
        pl.cdiv(B, tb_max),               # respect the per-tile cap
        min(8, max(1, B // 16384)),       # up to 8 grid steps for v7x megacore, but only once
        1,                                #   tiles stay >=16K elems (step overhead amortized)
    )
    TB = _round_up(pl.cdiv(B, n_tiles), _GRANULE)
    n_tiles = pl.cdiv(B, TB)              # re-derive so padding waste stays bounded
    B_pad = n_tiles * TB
    n_chunks = TB // _GRANULE
    rows_per_tile = _SUB * n_chunks
    rows = n_tiles * rows_per_tile

    # ---- layout plumbing: batch -> (sublane, lane) slabs, one slab stack per feature ----
    x_pad = jnp.pad(x.astype(jnp.float32), ((0, B_pad - B), (0, 0)))     # (B_pad, F)
    x_t = x_pad.reshape(rows, _CL, F).transpose(2, 0, 1)                 # (F, rows, CL)

    smem = pl.BlockSpec(memory_space=pltpu.MemorySpace.SMEM)

    out2d = pl.pallas_call(
        functools.partial(_dnn_kernel, n_chunks=n_chunks),
        out_shape=jax.ShapeDtypeStruct((rows, _CL), jnp.float32),
        grid=(n_tiles,),
        in_specs=[
            pl.BlockSpec((F, rows_per_tile, _CL), lambda i: (0, i, 0)),  # x tile, pipelined
            smem, smem, smem, smem, smem, smem,                          # weights/biases in SMEM
        ],
        out_specs=pl.BlockSpec((rows_per_tile, _CL), lambda i: (i, 0)),  # dense output slab
        compiler_params=pltpu.CompilerParams(
            dimension_semantics=("parallel",),     # shard batch tiles across TCs (v7x)
        ),
        # Advisory only: the kernel is VALU-bound (>=432 f32 VPU ops/elem vs 24 B/elem HBM).
        cost_estimate=pl.CostEstimate(
            flops=2 * (F * H1 + H1 * H2 + H2) * B_pad,
            transcendentals=2 * B_pad,
            bytes_accessed=(F + 1) * 4 * B_pad,
        ),
    )(x_t, w1, b1, w2, b2, w3, b3)

    return out2d.reshape(B_pad)[:B].reshape(B, 1)


def init_params(input_dim=5, key=jax.random.PRNGKey(42)):
    """Deterministic init mirroring nn.Linear (weights stored (out, in) like PyTorch)."""
    k1, k2, k3, k4, k5, k6 = jax.random.split(key, 6)

    def uniform_init(k, shape, fan_in):
        bound = 1.0 / jnp.sqrt(fan_in)
        return jax.random.uniform(k, shape, jnp.float32, -bound, bound)

    return {
        "w1": uniform_init(k1, (16, input_dim), input_dim),
        "b1": uniform_init(k2, (16, 1), input_dim),
        "w2": uniform_init(k3, (8, 16), 16),
        "b2": uniform_init(k4, (8, 1), 16),
        "w3": uniform_init(k5, (1, 8), 8),
        "b3": uniform_init(k6, (1, 1), 8),
    }


def dnn_forward_ref(x, params):
    """Pure-JAX reference for correctness checking."""
    h1 = jnp.maximum(x @ params["w1"].T + params["b1"].T, 0.0)
    h2 = jnp.maximum(h1 @ params["w2"].T + params["b2"].T, 0.0)
    return jax.nn.sigmoid(h2 @ params["w3"].T + params["b3"].T)


if __name__ == "__main__":
    input_dim = 5
    batch = 8

    key = jax.random.PRNGKey(0)
    x = jax.random.normal(key, (batch, input_dim), dtype=jnp.float32)

    params = init_params(input_dim=input_dim)

    out = dnn_forward(x, params)
    out = jax.block_until_ready(out)

    ref = dnn_forward_ref(x, params)
    assert out.shape == (batch, 1), out.shape
    # Tolerance loosened slightly vs exact divide because sigmoid uses the EUP approximate
    # reciprocal (pl.reciprocal(approx=True)); outputs are in [0, 1].
    assert jnp.allclose(out, ref, atol=2e-3, rtol=2e-3), "mismatch vs reference"

    print("KERNEL_OK")
</pallas_src>

<mosaic_0001>
module attributes {stable_mosaic.version = 11 : i64} {
  func.func @_dnn_kernel(%arg0: i32, %arg1: memref<5x8x256xf32, #tpu.memory_space<vmem>>, %arg2: memref<16x5xf32, #tpu.memory_space<smem>>, %arg3: memref<16xf32, #tpu.memory_space<smem>>, %arg4: memref<8x16xf32, #tpu.memory_space<smem>>, %arg5: memref<8xf32, #tpu.memory_space<smem>>, %arg6: memref<1x8xf32, #tpu.memory_space<smem>>, %arg7: memref<1xf32, #tpu.memory_space<smem>>, %arg8: memref<8x256xf32, #tpu.memory_space<vmem>>) attributes {dimension_semantics = [#tpu.dimension_semantics<parallel>], iteration_bounds = array<i64: 1>, scalar_prefetch = 0 : i64, scratch_operands = 0 : i64, tpu.core_type = #tpu.core_type<tc>, window_params = [{transform_indices = @transform_0, window_bounds = array<i64: 5, 8, 256>}, {transform_indices = @transform_1, window_bounds = array<i64: 16, 5>}, {transform_indices = @transform_2, window_bounds = array<i64: 16>}, {transform_indices = @transform_3, window_bounds = array<i64: 8, 16>}, {transform_indices = @transform_4, window_bounds = array<i64: 8>}, {transform_indices = @transform_5, window_bounds = array<i64: 1, 8>}, {transform_indices = @transform_6, window_bounds = array<i64: 1>}, {transform_indices = @transform_7, window_bounds = array<i64: 8, 256>}]} {
    %c0_i32 = arith.constant 0 : i32
    %c1_i32 = arith.constant 1 : i32
    %0 = arith.muli %c0_i32, %c1_i32 : i32
    %c0_i32_0 = arith.constant 0 : i32
    %1 = arith.addi %c0_i32_0, %0 : i32
    %c8_i32 = arith.constant 8 : i32
    %2 = arith.muli %1, %c8_i32 : i32
    %3 = tpu.assume_multiple %2, 8 : i32
    %c0 = arith.constant 0 : index
    %4 = arith.index_cast %3 : i32 to index
    %c0_1 = arith.constant 0 : index
    %5 = vector.load %arg1[%c0, %4, %c0_1] : memref<5x8x256xf32, #tpu.memory_space<vmem>>, vector<1x8x256xf32>
    %6 = vector.shape_cast %5 : vector<1x8x256xf32> to vector<8x256xf32>
    %c1 = arith.constant 1 : index
    %7 = arith.index_cast %3 : i32 to index
    %c0_2 = arith.constant 0 : index
    %8 = vector.load %arg1[%c1, %7, %c0_2] : memref<5x8x256xf32, #tpu.memory_space<vmem>>, vector<1x8x256xf32>
    %9 = vector.shape_cast %8 : vector<1x8x256xf32> to vector<8x256xf32>
    %c2 = arith.constant 2 : index
    %10 = arith.index_cast %3 : i32 to index
    %c0_3 = arith.constant 0 : index
    %11 = vector.load %arg1[%c2, %10, %c0_3] : memref<5x8x256xf32, #tpu.memory_space<vmem>>, vector<1x8x256xf32>
    %12 = vector.shape_cast %11 : vector<1x8x256xf32> to vector<8x256xf32>
    %c3 = arith.constant 3 : index
    %13 = arith.index_cast %3 : i32 to index
    %c0_4 = arith.constant 0 : index
    %14 = vector.load %arg1[%c3, %13, %c0_4] : memref<5x8x256xf32, #tpu.memory_space<vmem>>, vector<1x8x256xf32>
    %15 = vector.shape_cast %14 : vector<1x8x256xf32> to vector<8x256xf32>
    %c4 = arith.constant 4 : index
    %16 = arith.index_cast %3 : i32 to index
    %c0_5 = arith.constant 0 : index
    %17 = vector.load %arg1[%c4, %16, %c0_5] : memref<5x8x256xf32, #tpu.memory_space<vmem>>, vector<1x8x256xf32>
    %18 = vector.shape_cast %17 : vector<1x8x256xf32> to vector<8x256xf32>
    %c0_6 = arith.constant 0 : index
    %c0_7 = arith.constant 0 : index
    %19 = memref.load %arg2[%c0_6, %c0_7] : memref<16x5xf32, #tpu.memory_space<smem>>
    %20 = vector.broadcast %19 : f32 to vector<8x256xf32>
    %21 = arith.mulf %20, %6 : vector<8x256xf32>
    %c0_8 = arith.constant 0 : index
    %c1_9 = arith.constant 1 : index
    %22 = memref.load %arg2[%c0_8, %c1_9] : memref<16x5xf32, #tpu.memory_space<smem>>
    %23 = vector.broadcast %22 : f32 to vector<8x256xf32>
    %24 = arith.mulf %23, %9 : vector<8x256xf32>
    %25 = arith.addf %21, %24 : vector<8x256xf32>
    %c0_10 = arith.constant 0 : index
    %c2_11 = arith.constant 2 : index
    %26 = memref.load %arg2[%c0_10, %c2_11] : memref<16x5xf32, #tpu.memory_space<smem>>
    %27 = vector.broadcast %26 : f32 to vector<8x256xf32>
    %28 = arith.mulf %27, %12 : vector<8x256xf32>
    %29 = arith.addf %25, %28 : vector<8x256xf32>
    %c0_12 = arith.constant 0 : index
    %c3_13 = arith.constant 3 : index
    %30 = memref.load %arg2[%c0_12, %c3_13] : memref<16x5xf32, #tpu.memory_space<smem>>
    %31 = vector.broadcast %30 : f32 to vector<8x256xf32>
    %32 = arith.mulf %31, %15 : vector<8x256xf32>
    %33 = arith.addf %29, %32 : vector<8x256xf32>
    %c0_14 = arith.constant 0 : index
    %c4_15 = arith.constant 4 : index
    %34 = memref.load %arg2[%c0_14, %c4_15] : memref<16x5xf32, #tpu.memory_space<smem>>
    %35 = vector.broadcast %34 : f32 to vector<8x256xf32>
    %36 = arith.mulf %35, %18 : vector<8x256xf32>
    %37 = arith.addf %33, %36 : vector<8x256xf32>
    %c0_16 = arith.constant 0 : index
    %38 = memref.load %arg3[%c0_16] : memref<16xf32, #tpu.memory_space<smem>>
    %39 = vector.broadcast %38 : f32 to vector<8x256xf32>
    %40 = arith.addf %37, %39 : vector<8x256xf32>
    %cst = arith.constant 0.000000e+00 : f32
    %41 = vector.broadcast %cst : f32 to vector<8x256xf32>
    %42 = arith.maximumf %40, %41 : vector<8x256xf32>
    %c0_17 = arith.constant 0 : index
    %c0_18 = arith.constant 0 : index
    %43 = memref.load %arg4[%c0_17, %c0_18] : memref<8x16xf32, #tpu.memory_space<smem>>
    %44 = vector.broadcast %43 : f32 to vector<8x256xf32>
    %45 = arith.mulf %44, %42 : vector<8x256xf32>
    %c1_19 = arith.constant 1 : index
    %c0_20 = arith.constant 0 : index
    %46 = memref.load %arg4[%c1_19, %c0_20] : memref<8x16xf32, #tpu.memory_space<smem>>
    %47 = vector.broadcast %46 : f32 to vector<8x256xf32>
    %48 = arith.mulf %47, %42 : vector<8x256xf32>
    %c2_21 = arith.constant 2 : index
    %c0_22 = arith.constant 0 : index
    %49 = memref.load %arg4[%c2_21, %c0_22] : memref<8x16xf32, #tpu.memory_space<smem>>
    %50 = vector.broadcast %49 : f32 to vector<8x256xf32>
    %51 = arith.mulf %50, %42 : vector<8x256xf32>
    %c3_23 = arith.constant 3 : index
    %c0_24 = arith.constant 0 : index
    %52 = memref.load %arg4[%c3_23, %c0_24] : memref<8x16xf32, #tpu.memory_space<smem>>
    %53 = vector.broadcast %52 : f32 to vector<8x256xf32>
    %54 = arith.mulf %53, %42 : vector<8x256xf32>
    %c4_25 = arith.constant 4 : index
    %c0_26 = arith.constant 0 : index
    %55 = memref.load %arg4[%c4_25, %c0_26] : memref<8x16xf32, #tpu.memory_space<smem>>
    %56 = vector.broadcast %55 : f32 to vector<8x256xf32>
    %57 = arith.mulf %56, %42 : vector<8x256xf32>
    %c5 = arith.constant 5 : index
    %c0_27 = arith.constant 0 : index
    %58 = memref.load %arg4[%c5, %c0_27] : memref<8x16xf32, #tpu.memory_space<smem>>
    %59 = vector.broadcast %58 : f32 to vector<8x256xf32>
    %60 = arith.mulf %59, %42 : vector<8x256xf32>
    %c6 = arith.constant 6 : index
    %c0_28 = arith.constant 0 : index
    %61 = memref.load %arg4[%c6, %c0_28] : memref<8x16xf32, #tpu.memory_space<smem>>
    %62 = vector.broadcast %61 : f32 to vector<8x256xf32>
    %63 = arith.mulf %62, %42 : vector<8x256xf32>
    %c7 = arith.constant 7 : index
    %c0_29 = arith.constant 0 : index
    %64 = memref.load %arg4[%c7, %c0_29] : memref<8x16xf32, #tpu.memory_space<smem>>
    %65 = vector.broadcast %64 : f32 to vector<8x256xf32>
    %66 = arith.mulf %65, %42 : vector<8x256xf32>
    %c1_30 = arith.constant 1 : index
    %c0_31 = arith.constant 0 : index
    %67 = memref.load %arg2[%c1_30, %c0_31] : memref<16x5xf32, #tpu.memory_space<smem>>
    %68 = vector.broadcast %67 : f32 to vector<8x256xf32>
    %69 = arith.mulf %68, %6 : vector<8x256xf32>
    %c1_32 = arith.constant 1 : index
    %c1_33 = arith.constant 1 : index
    %70 = memref.load %arg2[%c1_32, %c1_33] : memref<16x5xf32, #tpu.memory_space<smem>>
    %71 = vector.broadcast %70 : f32 to vector<8x256xf32>
    %72 = arith.mulf %71, %9 : vector<8x256xf32>
    %73 = arith.addf %69, %72 : vector<8x256xf32>
    %c1_34 = arith.constant 1 : index
    %c2_35 = arith.constant 2 : index
    %74 = memref.load %arg2[%c1_34, %c2_35] : memref<16x5xf32, #tpu.memory_space<smem>>
    %75 = vector.broadcast %74 : f32 to vector<8x256xf32>
    %76 = arith.mulf %75, %12 : vector<8x256xf32>
    %77 = arith.addf %73, %76 : vector<8x256xf32>
    %c1_36 = arith.constant 1 : index
    %c3_37 = arith.constant 3 : index
    %78 = memref.load %arg2[%c1_36, %c3_37] : memref<16x5xf32, #tpu.memory_space<smem>>
    %79 = vector.broadcast %78 : f32 to vector<8x256xf32>
    %80 = arith.mulf %79, %15 : vector<8x256xf32>
    %81 = arith.addf %77, %80 : vector<8x256xf32>
    %c1_38 = arith.constant 1 : index
    %c4_39 = arith.constant 4 : index
    %82 = memref.load %arg2[%c1_38, %c4_39] : memref<16x5xf32, #tpu.memory_space<smem>>
    %83 = vector.broadcast %82 : f32 to vector<8x256xf32>
    %84 = arith.mulf %83, %18 : vector<8x256xf32>
    %85 = arith.addf %81, %84 : vector<8x256xf32>
    %c1_40 = arith.constant 1 : index
    %86 = memref.load %arg3[%c1_40] : memref<16xf32, #tpu.memory_space<smem>>
    %87 = vector.broadcast %86 : f32 to vector<8x256xf32>
    %88 = arith.addf %85, %87 : vector<8x256xf32>
    %cst_41 = arith.constant 0.000000e+00 : f32
    %89 = vector.broadcast %cst_41 : f32 to vector<8x256xf32>
    %90 = arith.maximumf %88, %89 : vector<8x256xf32>
    %c0_42 = arith.constant 0 : index
    %c1_43 = arith.constant 1 : index
    %91 = memref.load %arg4[%c0_42, %c1_43] : memref<8x16xf32, #tpu.memory_space<smem>>
    %92 = vector.broadcast %91 : f32 to vector<8x256xf32>
    %93 = arith.mulf %92, %90 : vector<8x256xf32>
    %94 = arith.addf %45, %93 : vector<8x256xf32>
    %c1_44 = arith.constant 1 : index
    %c1_45 = arith.constant 1 : index
    %95 = memref.load %arg4[%c1_44, %c1_45] : memref<8x16xf32, #tpu.memory_space<smem>>
    %96 = vector.broadcast %95 : f32 to vector<8x256xf32>
    %97 = arith.mulf %96, %90 : vector<8x256xf32>
    %98 = arith.addf %48, %97 : vector<8x256xf32>
    %c2_46 = arith.constant 2 : index
    %c1_47 = arith.constant 1 : index
    %99 = memref.load %arg4[%c2_46, %c1_47] : memref<8x16xf32, #tpu.memory_space<smem>>
    %100 = vector.broadcast %99 : f32 to vector<8x256xf32>
    %101 = arith.mulf %100, %90 : vector<8x256xf32>
    %102 = arith.addf %51, %101 : vector<8x256xf32>
    %c3_48 = arith.constant 3 : index
    %c1_49 = arith.constant 1 : index
    %103 = memref.load %arg4[%c3_48, %c1_49] : memref<8x16xf32, #tpu.memory_space<smem>>
    %104 = vector.broadcast %103 : f32 to vector<8x256xf32>
    %105 = arith.mulf %104, %90 : vector<8x256xf32>
    %106 = arith.addf %54, %105 : vector<8x256xf32>
    %c4_50 = arith.constant 4 : index
    %c1_51 = arith.constant 1 : index
    %107 = memref.load %arg4[%c4_50, %c1_51] : memref<8x16xf32, #tpu.memory_space<smem>>
    %108 = vector.broadcast %107 : f32 to vector<8x256xf32>
    %109 = arith.mulf %108, %90 : vector<8x256xf32>
    %110 = arith.addf %57, %109 : vector<8x256xf32>
    %c5_52 = arith.constant 5 : index
    %c1_53 = arith.constant 1 : index
    %111 = memref.load %arg4[%c5_52, %c1_53] : memref<8x16xf32, #tpu.memory_space<smem>>
    %112 = vector.broadcast %111 : f32 to vector<8x256xf32>
    %113 = arith.mulf %112, %90 : vector<8x256xf32>
    %114 = arith.addf %60, %113 : vector<8x256xf32>
    %c6_54 = arith.constant 6 : index
    %c1_55 = arith.constant 1 : index
    %115 = memref.load %arg4[%c6_54, %c1_55] : memref<8x16xf32, #tpu.memory_space<smem>>
    %116 = vector.broadcast %115 : f32 to vector<8x256xf32>
    %117 = arith.mulf %116, %90 : vector<8x256xf32>
    %118 = arith.addf %63, %117 : vector<8x256xf32>
    %c7_56 = arith.constant 7 : index
    %c1_57 = arith.constant 1 : index
    %119 = memref.load %arg4[%c7_56, %c1_57] : memref<8x16xf32, #tpu.memory_space<smem>>
    %120 = vector.broadcast %119 : f32 to vector<8x256xf32>
    %121 = arith.mulf %120, %90 : vector<8x256xf32>
    %122 = arith.addf %66, %121 : vector<8x256xf32>
    %c2_58 = arith.constant 2 : index
    %c0_59 = arith.constant 0 : index
    %123 = memref.load %arg2[%c2_58, %c0_59] : memref<16x5xf32, #tpu.memory_space<smem>>
    %124 = vector.broadcast %123 : f32 to vector<8x256xf32>
    %125 = arith.mulf %124, %6 : vector<8x256xf32>
    %c2_60 = arith.constant 2 : index
    %c1_61 = arith.constant 1 : index
    %126 = memref.load %arg2[%c2_60, %c1_61] : memref<16x5xf32, #tpu.memory_space<smem>>
    %127 = vector.broadcast %126 : f32 to vector<8x256xf32>
    %128 = arith.mulf %127, %9 : vector<8x256xf32>
    %129 = arith.addf %125, %128 : vector<8x256xf32>
    %c2_62 = arith.constant 2 : index
    %c2_63 = arith.constant 2 : index
    %130 = memref.load %arg2[%c2_62, %c2_63] : memref<16x5xf32, #tpu.memory_space<smem>>
    %131 = vector.broadcast %130 : f32 to vector<8x256xf32>
    %132 = arith.mulf %131, %12 : vector<8x256xf32>
    %133 = arith.addf %129, %132 : vector<8x256xf32>
    %c2_64 = arith.constant 2 : index
    %c3_65 = arith.constant 3 : index
    %134 = memref.load %arg2[%c2_64, %c3_65] : memref<16x5xf32, #tpu.memory_space<smem>>
    %135 = vector.broadcast %134 : f32 to vector<8x256xf32>
    %136 = arith.mulf %135, %15 : vector<8x256xf32>
    %137 = arith.addf %133, %136 : vector<8x256xf32>
    %c2_66 = arith.constant 2 : index
    %c4_67 = arith.constant 4 : index
    %138 = memref.load %arg2[%c2_66, %c4_67] : memref<16x5xf32, #tpu.memory_space<smem>>
    %139 = vector.broadcast %138 : f32 to vector<8x256xf32>
    %140 = arith.mulf %139, %18 : vector<8x256xf32>
    %141 = arith.addf %137, %140 : vector<8x256xf32>
    %c2_68 = arith.constant 2 : index
    %142 = memref.load %arg3[%c2_68] : memref<16xf32, #tpu.memory_space<smem>>
    %143 = vector.broadcast %142 : f32 to vector<8x256xf32>
    %144 = arith.addf %141, %143 : vector<8x256xf32>
    %cst_69 = arith.constant 0.000000e+00 : f32
    %145 = vector.broadcast %cst_69 : f32 to vector<8x256xf32>
    %146 = arith.maximumf %144, %145 : vector<8x256xf32>
    %c0_70 = arith.constant 0 : index
    %c2_71 = arith.constant 2 : index
    %147 = memref.load %arg4[%c0_70, %c2_71] : memref<8x16xf32, #tpu.memory_space<smem>>
    %148 = vector.broadcast %147 : f32 to vector<8x256xf32>
    %149 = arith.mulf %148, %146 : vector<8x256xf32>
    %150 = arith.addf %94, %149 : vector<8x256xf32>
    %c1_72 = arith.constant 1 : index
    %c2_73 = arith.constant 2 : index
    %151 = memref.load %arg4[%c1_72, %c2_73] : memref<8x16xf32, #tpu.memory_space<smem>>
    %152 = vector.broadcast %151 : f32 to vector<8x256xf32>
    %153 = arith.mulf %152, %146 : vector<8x256xf32>
    %154 = arith.addf %98, %153 : vector<8x256xf32>
    %c2_74 = arith.constant 2 : index
    %c2_75 = arith.constant 2 : index
    %155 = memref.load %arg4[%c2_74, %c2_75] : memref<8x16xf32, #tpu.memory_space<smem>>
    %156 = vector.broadcast %155 : f32 to vector<8x256xf32>
    %157 = arith.mulf %156, %146 : vector<8x256xf32>
    %158 = arith.addf %102, %157 : vector<8x256xf32>
    %c3_76 = arith.constant 3 : index
    %c2_77 = arith.constant 2 : index
    %159 = memref.load %arg4[%c3_76, %c2_77] : memref<8x16xf32, #tpu.memory_space<smem>>
    %160 = vector.broadcast %159 : f32 to vector<8x256xf32>
    %161 = arith.mulf %160, %146 : vector<8x256xf32>
    %162 = arith.addf %106, %161 : vector<8x256xf32>
    %c4_78 = arith.constant 4 : index
    %c2_79 = arith.constant 2 : index
    %163 = memref.load %arg4[%c4_78, %c2_79] : memref<8x16xf32, #tpu.memory_space<smem>>
    %164 = vector.broadcast %163 : f32 to vector<8x256xf32>
    %165 = arith.mulf %164, %146 : vector<8x256xf32>
    %166 = arith.addf %110, %165 : vector<8x256xf32>
    %c5_80 = arith.constant 5 : index
    %c2_81 = arith.constant 2 : index
    %167 = memref.load %arg4[%c5_80, %c2_81] : memref<8x16xf32, #tpu.memory_space<smem>>
    %168 = vector.broadcast %167 : f32 to vector<8x256xf32>
    %169 = arith.mulf %168, %146 : vector<8x256xf32>
    %170 = arith.addf %114, %169 : vector<8x256xf32>
    %c6_82 = arith.constant 6 : index
    %c2_83 = arith.constant 2 : index
    %171 = memref.load %arg4[%c6_82, %c2_83] : memref<8x16xf32, #tpu.memory_space<smem>>
    %172 = vector.broadcast %171 : f32 to vector<8x256xf32>
    %173 = arith.mulf %172, %146 : vector<8x256xf32>
    %174 = arith.addf %118, %173 : vector<8x256xf32>
    %c7_84 = arith.constant 7 : index
    %c2_85 = arith.constant 2 : index
    %175 = memref.load %arg4[%c7_84, %c2_85] : memref<8x16xf32, #tpu.memory_space<smem>>
    %176 = vector.broadcast %175 : f32 to vector<8x256xf32>
    %177 = arith.mulf %176, %146 : vector<8x256xf32>
    %178 = arith.addf %122, %177 : vector<8x256xf32>
    %c3_86 = arith.constant 3 : index
    %c0_87 = arith.constant 0 : index
    %179 = memref.load %arg2[%c3_86, %c0_87] : memref<16x5xf32, #tpu.memory_space<smem>>
    %180 = vector.broadcast %179 : f32 to vector<8x256xf32>
    %181 = arith.mulf %180, %6 : vector<8x256xf32>
    %c3_88 = arith.constant 3 : index
    %c1_89 = arith.constant 1 : index
    %182 = memref.load %arg2[%c3_88, %c1_89] : memref<16x5xf32, #tpu.memory_space<smem>>
    %183 = vector.broadcast %182 : f32 to vector<8x256xf32>
    %184 = arith.mulf %183, %9 : vector<8x256xf32>
    %185 = arith.addf %181, %184 : vector<8x256xf32>
    %c3_90 = arith.constant 3 : index
    %c2_91 = arith.constant 2 : index
    %186 = memref.load %arg2[%c3_90, %c2_91] : memref<16x5xf32, #tpu.memory_space<smem>>
    %187 = vector.broadcast %186 : f32 to vector<8x256xf32>
    %188 = arith.mulf %187, %12 : vector<8x256xf32>
    %189 = arith.addf %185, %188 : vector<8x256xf32>
    %c3_92 = arith.constant 3 : index
    %c3_93 = arith.constant 3 : index
    %190 = memref.load %arg2[%c3_92, %c3_93] : memref<16x5xf32, #tpu.memory_space<smem>>
    %191 = vector.broadcast %190 : f32 to vector<8x256xf32>
    %192 = arith.mulf %191, %15 : vector<8x256xf32>
    %193 = arith.addf %189, %192 : vector<8x256xf32>
    %c3_94 = arith.constant 3 : index
    %c4_95 = arith.constant 4 : index
    %194 = memref.load %arg2[%c3_94, %c4_95] : memref<16x5xf32, #tpu.memory_space<smem>>
    %195 = vector.broadcast %194 : f32 to vector<8x256xf32>
    %196 = arith.mulf %195, %18 : vector<8x256xf32>
    %197 = arith.addf %193, %196 : vector<8x256xf32>
    %c3_96 = arith.constant 3 : index
    %198 = memref.load %arg3[%c3_96] : memref<16xf32, #tpu.memory_space<smem>>
    %199 = vector.broadcast %198 : f32 to vector<8x256xf32>
    %200 = arith.addf %197, %199 : vector<8x256xf32>
    %cst_97 = arith.constant 0.000000e+00 : f32
    %201 = vector.broadcast %cst_97 : f32 to vector<8x256xf32>
    %202 = arith.maximumf %200, %201 : vector<8x256xf32>
    %c0_98 = arith.constant 0 : index
    %c3_99 = arith.constant 3 : index
    %203 = memref.load %arg4[%c0_98, %c3_99] : memref<8x16xf32, #tpu.memory_space<smem>>
    %204 = vector.broadcast %203 : f32 to vector<8x256xf32>
    %205 = arith.mulf %204, %202 : vector<8x256xf32>
    %206 = arith.addf %150, %205 : vector<8x256xf32>
    %c1_100 = arith.constant 1 : index
    %c3_101 = arith.constant 3 : index
    %207 = memref.load %arg4[%c1_100, %c3_101] : memref<8x16xf32, #tpu.memory_space<smem>>
    %208 = vector.broadcast %207 : f32 to vector<8x256xf32>
    %209 = arith.mulf %208, %202 : vector<8x256xf32>
    %210 = arith.addf %154, %209 : vector<8x256xf32>
    %c2_102 = arith.constant 2 : index
    %c3_103 = arith.constant 3 : index
    %211 = memref.load %arg4[%c2_102, %c3_103] : memref<8x16xf32, #tpu.memory_space<smem>>
    %212 = vector.broadcast %211 : f32 to vector<8x256xf32>
    %213 = arith.mulf %212, %202 : vector<8x256xf32>
    %214 = arith.addf %158, %213 : vector<8x256xf32>
    %c3_104 = arith.constant 3 : index
    %c3_105 = arith.constant 3 : index
    %215 = memref.load %arg4[%c3_104, %c3_105] : memref<8x16xf32, #tpu.memory_space<smem>>
    %216 = vector.broadcast %215 : f32 to vector<8x256xf32>
    %217 = arith.mulf %216, %202 : vector<8x256xf32>
    %218 = arith.addf %162, %217 : vector<8x256xf32>
    %c4_106 = arith.constant 4 : index
    %c3_107 = arith.constant 3 : index
    %219 = memref.load %arg4[%c4_106, %c3_107] : memref<8x16xf32, #tpu.memory_space<smem>>
    %220 = vector.broadcast %219 : f32 to vector<8x256xf32>
    %221 = arith.mulf %220, %202 : vector<8x256xf32>
    %222 = arith.addf %166, %221 : vector<8x256xf32>
    %c5_108 = arith.constant 5 : index
    %c3_109 = arith.constant 3 : index
    %223 = memref.load %arg4[%c5_108, %c3_109] : memref<8x16xf32, #tpu.memory_space<smem>>
    %224 = vector.broadcast %223 : f32 to vector<8x256xf32>
    %225 = arith.mulf %224, %202 : vector<8x256xf32>
    %226 = arith.addf %170, %225 : vector<8x256xf32>
    %c6_110 = arith.constant 6 : index
    %c3_111 = arith.constant 3 : index
    %227 = memref.load %arg4[%c6_110, %c3_111] : memref<8x16xf32, #tpu.memory_space<smem>>
    %228 = vector.broadcast %227 : f32 to vector<8x256xf32>
    %229 = arith.mulf %228, %202 : vector<8x256xf32>
    %230 = arith.addf %174, %229 : vector<8x256xf32>
    %c7_112 = arith.constant 7 : index
    %c3_113 = arith.constant 3 : index
    %231 = memref.load %arg4[%c7_112, %c3_113] : memref<8x16xf32, #tpu.memory_space<smem>>
    %232 = vector.broadcast %231 : f32 to vector<8x256xf32>
    %233 = arith.mulf %232, %202 : vector<8x256xf32>
    %234 = arith.addf %178, %233 : vector<8x256xf32>
    %c4_114 = arith.constant 4 : index
    %c0_115 = arith.constant 0 : index
    %235 = memref.load %arg2[%c4_114, %c0_115] : memref<16x5xf32, #tpu.memory_space<smem>>
    %236 = vector.broadcast %235 : f32 to vector<8x256xf32>
    %237 = arith.mulf %236, %6 : vector<8x256xf32>
    %c4_116 = arith.constant 4 : index
    %c1_117 = arith.constant 1 : index
    %238 = memref.load %arg2[%c4_116, %c1_117] : memref<16x5xf32, #tpu.memory_space<smem>>
    %239 = vector.broadcast %238 : f32 to vector<8x256xf32>
    %240 = arith.mulf %239, %9 : vector<8x256xf32>
    %241 = arith.addf %237, %240 : vector<8x256xf32>
    %c4_118 = arith.constant 4 : index
    %c2_119 = arith.constant 2 : index
    %242 = memref.load %arg2[%c4_118, %c2_119] : memref<16x5xf32, #tpu.memory_space<smem>>
    %243 = vector.broadcast %242 : f32 to vector<8x256xf32>
    %244 = arith.mulf %243, %12 : vector<8x256xf32>
    %245 = arith.addf %241, %244 : vector<8x256xf32>
    %c4_120 = arith.constant 4 : index
    %c3_121 = arith.constant 3 : index
    %246 = memref.load %arg2[%c4_120, %c3_121] : memref<16x5xf32, #tpu.memory_space<smem>>
    %247 = vector.broadcast %246 : f32 to vector<8x256xf32>
    %248 = arith.mulf %247, %15 : vector<8x256xf32>
    %249 = arith.addf %245, %248 : vector<8x256xf32>
    %c4_122 = arith.constant 4 : index
    %c4_123 = arith.constant 4 : index
    %250 = memref.load %arg2[%c4_122, %c4_123] : memref<16x5xf32, #tpu.memory_space<smem>>
    %251 = vector.broadcast %250 : f32 to vector<8x256xf32>
    %252 = arith.mulf %251, %18 : vector<8x256xf32>
    %253 = arith.addf %249, %252 : vector<8x256xf32>
    %c4_124 = arith.constant 4 : index
    %254 = memref.load %arg3[%c4_124] : memref<16xf32, #tpu.memory_space<smem>>
    %255 = vector.broadcast %254 : f32 to vector<8x256xf32>
    %256 = arith.addf %253, %255 : vector<8x256xf32>
    %cst_125 = arith.constant 0.000000e+00 : f32
    %257 = vector.broadcast %cst_125 : f32 to vector<8x256xf32>
    %258 = arith.maximumf %256, %257 : vector<8x256xf32>
    %c0_126 = arith.constant 0 : index
    %c4_127 = arith.constant 4 : index
    %259 = memref.load %arg4[%c0_126, %c4_127] : memref<8x16xf32, #tpu.memory_space<smem>>
    %260 = vector.broadcast %259 : f32 to vector<8x256xf32>
    %261 = arith.mulf %260, %258 : vector<8x256xf32>
    %262 = arith.addf %206, %261 : vector<8x256xf32>
    %c1_128 = arith.constant 1 : index
    %c4_129 = arith.constant 4 : index
    %263 = memref.load %arg4[%c1_128, %c4_129] : memref<8x16xf32, #tpu.memory_space<smem>>
    %264 = vector.broadcast %263 : f32 to vector<8x256xf32>
    %265 = arith.mulf %264, %258 : vector<8x256xf32>
    %266 = arith.addf %210, %265 : vector<8x256xf32>
    %c2_130 = arith.constant 2 : index
    %c4_131 = arith.constant 4 : index
    %267 = memref.load %arg4[%c2_130, %c4_131] : memref<8x16xf32, #tpu.memory_space<smem>>
    %268 = vector.broadcast %267 : f32 to vector<8x256xf32>
    %269 = arith.mulf %268, %258 : vector<8x256xf32>
    %270 = arith.addf %214, %269 : vector<8x256xf32>
    %c3_132 = arith.constant 3 : index
    %c4_133 = arith.constant 4 : index
    %271 = memref.load %arg4[%c3_132, %c4_133] : memref<8x16xf32, #tpu.memory_space<smem>>
    %272 = vector.broadcast %271 : f32 to vector<8x256xf32>
    %273 = arith.mulf %272, %258 : vector<8x256xf32>
    %274 = arith.addf %218, %273 : vector<8x256xf32>
    %c4_134 = arith.constant 4 : index
    %c4_135 = arith.constant 4 : index
    %275 = memref.load %arg4[%c4_134, %c4_135] : memref<8x16xf32, #tpu.memory_space<smem>>
    %276 = vector.broadcast %275 : f32 to vector<8x256xf32>
    %277 = arith.mulf %276, %258 : vector<8x256xf32>
    %278 = arith.addf %222, %277 : vector<8x256xf32>
    %c5_136 = arith.constant 5 : index
    %c4_137 = arith.constant 4 : index
    %279 = memref.load %arg4[%c5_136, %c4_137] : memref<8x16xf32, #tpu.memory_space<smem>>
    %280 = vector.broadcast %279 : f32 to vector<8x256xf32>
    %281 = arith.mulf %280, %258 : vector<8x256xf32>
    %282 = arith.addf %226, %281 : vector<8x256xf32>
    %c6_138 = arith.constant 6 : index
    %c4_139 = arith.constant 4 : index
    %283 = memref.load %arg4[%c6_138, %c4_139] : memref<8x16xf32, #tpu.memory_space<smem>>
    %284 = vector.broadcast %283 : f32 to vector<8x256xf32>
    %285 = arith.mulf %284, %258 : vector<8x256xf32>
    %286 = arith.addf %230, %285 : vector<8x256xf32>
    %c7_140 = arith.constant 7 : index
    %c4_141 = arith.constant 4 : index
    %287 = memref.load %arg4[%c7_140, %c4_141] : memref<8x16xf32, #tpu.memory_space<smem>>
    %288 = vector.broadcast %287 : f32 to vector<8x256xf32>
    %289 = arith.mulf %288, %258 : vector<8x256xf32>
    %290 = arith.addf %234, %289 : vector<8x256xf32>
    %c5_142 = arith.constant 5 : index
    %c0_143 = arith.constant 0 : index
    %291 = memref.load %arg2[%c5_142, %c0_143] : memref<16x5xf32, #tpu.memory_space<smem>>
    %292 = vector.broadcast %291 : f32 to vector<8x256xf32>
    %293 = arith.mulf %292, %6 : vector<8x256xf32>
    %c5_144 = arith.constant 5 : index
    %c1_145 = arith.constant 1 : index
    %294 = memref.load %arg2[%c5_144, %c1_145] : memref<16x5xf32, #tpu.memory_space<smem>>
    %295 = vector.broadcast %294 : f32 to vector<8x256xf32>
    %296 = arith.mulf %295, %9 : vector<8x256xf32>
    %297 = arith.addf %293, %296 : vector<8x256xf32>
    %c5_146 = arith.constant 5 : index
    %c2_147 = arith.constant 2 : index
    %298 = memref.load %arg2[%c5_146, %c2_147] : memref<16x5xf32, #tpu.memory_space<smem>>
    %299 = vector.broadcast %298 : f32 to vector<8x256xf32>
    %300 = arith.mulf %299, %12 : vector<8x256xf32>
    %301 = arith.addf %297, %300 : vector<8x256xf32>
    %c5_148 = arith.constant 5 : index
    %c3_149 = arith.constant 3 : index
    %302 = memref.load %arg2[%c5_148, %c3_149] : memref<16x5xf32, #tpu.memory_space<smem>>
    %303 = vector.broadcast %302 : f32 to vector<8x256xf32>
    %304 = arith.mulf %303, %15 : vector<8x256xf32>
    %305 = arith.addf %301, %304 : vector<8x256xf32>
    %c5_150 = arith.constant 5 : index
    %c4_151 = arith.constant 4 : index
    %306 = memref.load %arg2[%c5_150, %c4_151] : memref<16x5xf32, #tpu.memory_space<smem>>
    %307 = vector.broadcast %306 : f32 to vector<8x256xf32>
    %308 = arith.mulf %307, %18 : vector<8x256xf32>
    %309 = arith.addf %305, %308 : vector<8x256xf32>
    %c5_152 = arith.constant 5 : index
    %310 = memref.load %arg3[%c5_152] : memref<16xf32, #tpu.memory_space<smem>>
    %311 = vector.broadcast %310 : f32 to vector<8x256xf32>
    %312 = arith.addf %309, %311 : vector<8x256xf32>
    %cst_153 = arith.constant 0.000000e+00 : f32
    %313 = vector.broadcast %cst_153 : f32 to vector<8x256xf32>
    %314 = arith.maximumf %312, %313 : vector<8x256xf32>
    %c0_154 = arith.constant 0 : index
    %c5_155 = arith.constant 5 : index
    %315 = memref.load %arg4[%c0_154, %c5_155] : memref<8x16xf32, #tpu.memory_space<smem>>
    %316 = vector.broadcast %315 : f32 to vector<8x256xf32>
    %317 = arith.mulf %316, %314 : vector<8x256xf32>
    %318 = arith.addf %262, %317 : vector<8x256xf32>
    %c1_156 = arith.constant 1 : index
    %c5_157 = arith.constant 5 : index
    %319 = memref.load %arg4[%c1_156, %c5_157] : memref<8x16xf32, #tpu.memory_space<smem>>
    %320 = vector.broadcast %319 : f32 to vector<8x256xf32>
    %321 = arith.mulf %320, %314 : vector<8x256xf32>
    %322 = arith.addf %266, %321 : vector<8x256xf32>
    %c2_158 = arith.constant 2 : index
    %c5_159 = arith.constant 5 : index
    %323 = memref.load %arg4[%c2_158, %c5_159] : memref<8x16xf32, #tpu.memory_space<smem>>
    %324 = vector.broadcast %323 : f32 to vector<8x256xf32>
    %325 = arith.mulf %324, %314 : vector<8x256xf32>
    %326 = arith.addf %270, %325 : vector<8x256xf32>
    %c3_160 = arith.constant 3 : index
    %c5_161 = arith.constant 5 : index
    %327 = memref.load %arg4[%c3_160, %c5_161] : memref<8x16xf32, #tpu.memory_space<smem>>
    %328 = vector.broadcast %327 : f32 to vector<8x256xf32>
    %329 = arith.mulf %328, %314 : vector<8x256xf32>
    %330 = arith.addf %274, %329 : vector<8x256xf32>
    %c4_162 = arith.constant 4 : index
    %c5_163 = arith.constant 5 : index
    %331 = memref.load %arg4[%c4_162, %c5_163] : memref<8x16xf32, #tpu.memory_space<smem>>
    %332 = vector.broadcast %331 : f32 to vector<8x256xf32>
    %333 = arith.mulf %332, %314 : vector<8x256xf32>
    %334 = arith.addf %278, %333 : vector<8x256xf32>
    %c5_164 = arith.constant 5 : index
    %c5_165 = arith.constant 5 : index
    %335 = memref.load %arg4[%c5_164, %c5_165] : memref<8x16xf32, #tpu.memory_space<smem>>
    %336 = vector.broadcast %335 : f32 to vector<8x256xf32>
    %337 = arith.mulf %336, %314 : vector<8x256xf32>
    %338 = arith.addf %282, %337 : vector<8x256xf32>
    %c6_166 = arith.constant 6 : index
    %c5_167 = arith.constant 5 : index
    %339 = memref.load %arg4[%c6_166, %c5_167] : memref<8x16xf32, #tpu.memory_space<smem>>
    %340 = vector.broadcast %339 : f32 to vector<8x256xf32>
    %341 = arith.mulf %340, %314 : vector<8x256xf32>
    %342 = arith.addf %286, %341 : vector<8x256xf32>
    %c7_168 = arith.constant 7 : index
    %c5_169 = arith.constant 5 : index
    %343 = memref.load %arg4[%c7_168, %c5_169] : memref<8x16xf32, #tpu.memory_space<smem>>
    %344 = vector.broadcast %343 : f32 to vector<8x256xf32>
    %345 = arith.mulf %344, %314 : vector<8x256xf32>
    %346 = arith.addf %290, %345 : vector<8x256xf32>
    %c6_170 = arith.constant 6 : index
    %c0_171 = arith.constant 0 : index
    %347 = memref.load %arg2[%c6_170, %c0_171] : memref<16x5xf32, #tpu.memory_space<smem>>
    %348 = vector.broadcast %347 : f32 to vector<8x256xf32>
    %349 = arith.mulf %348, %6 : vector<8x256xf32>
    %c6_172 = arith.constant 6 : index
    %c1_173 = arith.constant 1 : index
    %350 = memref.load %arg2[%c6_172, %c1_173] : memref<16x5xf32, #tpu.memory_space<smem>>
    %351 = vector.broadcast %350 : f32 to vector<8x256xf32>
    %352 = arith.mulf %351, %9 : vector<8x256xf32>
    %353 = arith.addf %349, %352 : vector<8x256xf32>
    %c6_174 = arith.constant 6 : index
    %c2_175 = arith.constant 2 : index
    %354 = memref.load %arg2[%c6_174, %c2_175] : memref<16x5xf32, #tpu.memory_space<smem>>
    %355 = vector.broadcast %354 : f32 to vector<8x256xf32>
    %356 = arith.mulf %355, %12 : vector<8x256xf32>
    %357 = arith.addf %353, %356 : vector<8x256xf32>
    %c6_176 = arith.constant 6 : index
    %c3_177 = arith.constant 3 : index
    %358 = memref.load %arg2[%c6_176, %c3_177] : memref<16x5xf32, #tpu.memory_space<smem>>
    %359 = vector.broadcast %358 : f32 to vector<8x256xf32>
    %360 = arith.mulf %359, %15 : vector<8x256xf32>
    %361 = arith.addf %357, %360 : vector<8x256xf32>
    %c6_178 = arith.constant 6 : index
    %c4_179 = arith.constant 4 : index
    %362 = memref.load %arg2[%c6_178, %c4_179] : memref<16x5xf32, #tpu.memory_space<smem>>
    %363 = vector.broadcast %362 : f32 to vector<8x256xf32>
    %364 = arith.mulf %363, %18 : vector<8x256xf32>
    %365 = arith.addf %361, %364 : vector<8x256xf32>
    %c6_180 = arith.constant 6 : index
    %366 = memref.load %arg3[%c6_180] : memref<16xf32, #tpu.memory_space<smem>>
    %367 = vector.broadcast %366 : f32 to vector<8x256xf32>
    %368 = arith.addf %365, %367 : vector<8x256xf32>
    %cst_181 = arith.constant 0.000000e+00 : f32
    %369 = vector.broadcast %cst_181 : f32 to vector<8x256xf32>
    %370 = arith.maximumf %368, %369 : vector<8x256xf32>
    %c0_182 = arith.constant 0 : index
    %c6_183 = arith.constant 6 : index
    %371 = memref.load %arg4[%c0_182, %c6_183] : memref<8x16xf32, #tpu.memory_space<smem>>
    %372 = vector.broadcast %371 : f32 to vector<8x256xf32>
    %373 = arith.mulf %372, %370 : vector<8x256xf32>
    %374 = arith.addf %318, %373 : vector<8x256xf32>
    %c1_184 = arith.constant 1 : index
    %c6_185 = arith.constant 6 : index
    %375 = memref.load %arg4[%c1_184, %c6_185] : memref<8x16xf32, #tpu.memory_space<smem>>
    %376 = vector.broadcast %375 : f32 to vector<8x256xf32>
    %377 = arith.mulf %376, %370 : vector<8x256xf32>
    %378 = arith.addf %322, %377 : vector<8x256xf32>
    %c2_186 = arith.constant 2 : index
    %c6_187 = arith.constant 6 : index
    %379 = memref.load %arg4[%c2_186, %c6_187] : memref<8x16xf32, #tpu.memory_space<smem>>
    %380 = vector.broadcast %379 : f32 to vector<8x256xf32>
    %381 = arith.mulf %380, %370 : vector<8x256xf32>
    %382 = arith.addf %326, %381 : vector<8x256xf32>
    %c3_188 = arith.constant 3 : index
    %c6_189 = arith.constant 6 : index
    %383 = memref.load %arg4[%c3_188, %c6_189] : memref<8x16xf32, #tpu.memory_space<smem>>
    %384 = vector.broadcast %383 : f32 to vector<8x256xf32>
    %385 = arith.mulf %384, %370 : vector<8x256xf32>
    %386 = arith.addf %330, %385 : vector<8x256xf32>
    %c4_190 = arith.constant 4 : index
    %c6_191 = arith.constant 6 : index
    %387 = memref.load %arg4[%c4_190, %c6_191] : memref<8x16xf32, #tpu.memory_space<smem>>
    %388 = vector.broadcast %387 : f32 to vector<8x256xf32>
    %389 = arith.mulf %388, %370 : vector<8x256xf32>
    %390 = arith.addf %334, %389 : vector<8x256xf32>
    %c5_192 = arith.constant 5 : index
    %c6_193 = arith.constant 6 : index
    %391 = memref.load %arg4[%c5_192, %c6_193] : memref<8x16xf32, #tpu.memory_space<smem>>
    %392 = vector.broadcast %391 : f32 to vector<8x256xf32>
    %393 = arith.mulf %392, %370 : vector<8x256xf32>
    %394 = arith.addf %338, %393 : vector<8x256xf32>
    %c6_194 = arith.constant 6 : index
    %c6_195 = arith.constant 6 : index
    %395 = memref.load %arg4[%c6_194, %c6_195] : memref<8x16xf32, #tpu.memory_space<smem>>
    %396 = vector.broadcast %395 : f32 to vector<8x256xf32>
    %397 = arith.mulf %396, %370 : vector<8x256xf32>
    %398 = arith.addf %342, %397 : vector<8x256xf32>
    %c7_196 = arith.constant 7 : index
    %c6_197 = arith.constant 6 : index
    %399 = memref.load %arg4[%c7_196, %c6_197] : memref<8x16xf32, #tpu.memory_space<smem>>
    %400 = vector.broadcast %399 : f32 to vector<8x256xf32>
    %401 = arith.mulf %400, %370 : vector<8x256xf32>
    %402 = arith.addf %346, %401 : vector<8x256xf32>
    %c7_198 = arith.constant 7 : index
    %c0_199 = arith.constant 0 : index
    %403 = memref.load %arg2[%c7_198, %c0_199] : memref<16x5xf32, #tpu.memory_space<smem>>
    %404 = vector.broadcast %403 : f32 to vector<8x256xf32>
    %405 = arith.mulf %404, %6 : vector<8x256xf32>
    %c7_200 = arith.constant 7 : index
    %c1_201 = arith.constant 1 : index
    %406 = memref.load %arg2[%c7_200, %c1_201] : memref<16x5xf32, #tpu.memory_space<smem>>
    %407 = vector.broadcast %406 : f32 to vector<8x256xf32>
    %408 = arith.mulf %407, %9 : vector<8x256xf32>
    %409 = arith.addf %405, %408 : vector<8x256xf32>
    %c7_202 = arith.constant 7 : index
    %c2_203 = arith.constant 2 : index
    %410 = memref.load %arg2[%c7_202, %c2_203] : memref<16x5xf32, #tpu.memory_space<smem>>
    %411 = vector.broadcast %410 : f32 to vector<8x256xf32>
    %412 = arith.mulf %411, %12 : vector<8x256xf32>
    %413 = arith.addf %409, %412 : vector<8x256xf32>
    %c7_204 = arith.constant 7 : index
    %c3_205 = arith.constant 3 : index
    %414 = memref.load %arg2[%c7_204, %c3_205] : memref<16x5xf32, #tpu.memory_space<smem>>
    %415 = vector.broadcast %414 : f32 to vector<8x256xf32>
    %416 = arith.mulf %415, %15 : vector<8x256xf32>
    %417 = arith.addf %413, %416 : vector<8x256xf32>
    %c7_206 = arith.constant 7 : index
    %c4_207 = arith.constant 4 : index
    %418 = memref.load %arg2[%c7_206, %c4_207] : memref<16x5xf32, #tpu.memory_space<smem>>
    %419 = vector.broadcast %418 : f32 to vector<8x256xf32>
    %420 = arith.mulf %419, %18 : vector<8x256xf32>
    %421 = arith.addf %417, %420 : vector<8x256xf32>
    %c7_208 = arith.constant 7 : index
    %422 = memref.load %arg3[%c7_208] : memref<16xf32, #tpu.memory_space<smem>>
    %423 = vector.broadcast %422 : f32 to vector<8x256xf32>
    %424 = arith.addf %421, %423 : vector<8x256xf32>
    %cst_209 = arith.constant 0.000000e+00 : f32
    %425 = vector.broadcast %cst_209 : f32 to vector<8x256xf32>
    %426 = arith.maximumf %424, %425 : vector<8x256xf32>
    %c0_210 = arith.constant 0 : index
    %c7_211 = arith.constant 7 : index
    %427 = memref.load %arg4[%c0_210, %c7_211] : memref<8x16xf32, #tpu.memory_space<smem>>
    %428 = vector.broadcast %427 : f32 to vector<8x256xf32>
    %429 = arith.mulf %428, %426 : vector<8x256xf32>
    %430 = arith.addf %374, %429 : vector<8x256xf32>
    %c1_212 = arith.constant 1 : index
    %c7_213 = arith.constant 7 : index
    %431 = memref.load %arg4[%c1_212, %c7_213] : memref<8x16xf32, #tpu.memory_space<smem>>
    %432 = vector.broadcast %431 : f32 to vector<8x256xf32>
    %433 = arith.mulf %432, %426 : vector<8x256xf32>
    %434 = arith.addf %378, %433 : vector<8x256xf32>
    %c2_214 = arith.constant 2 : index
    %c7_215 = arith.constant 7 : index
    %435 = memref.load %arg4[%c2_214, %c7_215] : memref<8x16xf32, #tpu.memory_space<smem>>
    %436 = vector.broadcast %435 : f32 to vector<8x256xf32>
    %437 = arith.mulf %436, %426 : vector<8x256xf32>
    %438 = arith.addf %382, %437 : vector<8x256xf32>
    %c3_216 = arith.constant 3 : index
    %c7_217 = arith.constant 7 : index
    %439 = memref.load %arg4[%c3_216, %c7_217] : memref<8x16xf32, #tpu.memory_space<smem>>
    %440 = vector.broadcast %439 : f32 to vector<8x256xf32>
    %441 = arith.mulf %440, %426 : vector<8x256xf32>
    %442 = arith.addf %386, %441 : vector<8x256xf32>
    %c4_218 = arith.constant 4 : index
    %c7_219 = arith.constant 7 : index
    %443 = memref.load %arg4[%c4_218, %c7_219] : memref<8x16xf32, #tpu.memory_space<smem>>
    %444 = vector.broadcast %443 : f32 to vector<8x256xf32>
    %445 = arith.mulf %444, %426 : vector<8x256xf32>
    %446 = arith.addf %390, %445 : vector<8x256xf32>
    %c5_220 = arith.constant 5 : index
    %c7_221 = arith.constant 7 : index
    %447 = memref.load %arg4[%c5_220, %c7_221] : memref<8x16xf32, #tpu.memory_space<smem>>
    %448 = vector.broadcast %447 : f32 to vector<8x256xf32>
    %449 = arith.mulf %448, %426 : vector<8x256xf32>
    %450 = arith.addf %394, %449 : vector<8x256xf32>
    %c6_222 = arith.constant 6 : index
    %c7_223 = arith.constant 7 : index
    %451 = memref.load %arg4[%c6_222, %c7_223] : memref<8x16xf32, #tpu.memory_space<smem>>
    %452 = vector.broadcast %451 : f32 to vector<8x256xf32>
    %453 = arith.mulf %452, %426 : vector<8x256xf32>
    %454 = arith.addf %398, %453 : vector<8x256xf32>
    %c7_224 = arith.constant 7 : index
    %c7_225 = arith.constant 7 : index
    %455 = memref.load %arg4[%c7_224, %c7_225] : memref<8x16xf32, #tpu.memory_space<smem>>
    %456 = vector.broadcast %455 : f32 to vector<8x256xf32>
    %457 = arith.mulf %456, %426 : vector<8x256xf32>
    %458 = arith.addf %402, %457 : vector<8x256xf32>
    %c8 = arith.constant 8 : index
    %c0_226 = arith.constant 0 : index
    %459 = memref.load %arg2[%c8, %c0_226] : memref<16x5xf32, #tpu.memory_space<smem>>
    %460 = vector.broadcast %459 : f32 to vector<8x256xf32>
    %461 = arith.mulf %460, %6 : vector<8x256xf32>
    %c8_227 = arith.constant 8 : index
    %c1_228 = arith.constant 1 : index
    %462 = memref.load %arg2[%c8_227, %c1_228] : memref<16x5xf32, #tpu.memory_space<smem>>
    %463 = vector.broadcast %462 : f32 to vector<8x256xf32>
    %464 = arith.mulf %463, %9 : vector<8x256xf32>
    %465 = arith.addf %461, %464 : vector<8x256xf32>
    %c8_229 = arith.constant 8 : index
    %c2_230 = arith.constant 2 : index
    %466 = memref.load %arg2[%c8_229, %c2_230] : memref<16x5xf32, #tpu.memory_space<smem>>
    %467 = vector.broadcast %466 : f32 to vector<8x256xf32>
    %468 = arith.mulf %467, %12 : vector<8x256xf32>
    %469 = arith.addf %465, %468 : vector<8x256xf32>
    %c8_231 = arith.constant 8 : index
    %c3_232 = arith.constant 3 : index
    %470 = memref.load %arg2[%c8_231, %c3_232] : memref<16x5xf32, #tpu.memory_space<smem>>
    %471 = vector.broadcast %470 : f32 to vector<8x256xf32>
    %472 = arith.mulf %471, %15 : vector<8x256xf32>
    %473 = arith.addf %469, %472 : vector<8x256xf32>
    %c8_233 = arith.constant 8 : index
    %c4_234 = arith.constant 4 : index
    %474 = memref.load %arg2[%c8_233, %c4_234] : memref<16x5xf32, #tpu.memory_space<smem>>
    %475 = vector.broadcast %474 : f32 to vector<8x256xf32>
    %476 = arith.mulf %475, %18 : vector<8x256xf32>
    %477 = arith.addf %473, %476 : vector<8x256xf32>
    %c8_235 = arith.constant 8 : index
    %478 = memref.load %arg3[%c8_235] : memref<16xf32, #tpu.memory_space<smem>>
    %479 = vector.broadcast %478 : f32 to vector<8x256xf32>
    %480 = arith.addf %477, %479 : vector<8x256xf32>
    %cst_236 = arith.constant 0.000000e+00 : f32
    %481 = vector.broadcast %cst_236 : f32 to vector<8x256xf32>
    %482 = arith.maximumf %480, %481 : vector<8x256xf32>
    %c0_237 = arith.constant 0 : index
    %c8_238 = arith.constant 8 : index
    %483 = memref.load %arg4[%c0_237, %c8_238] : memref<8x16xf32, #tpu.memory_space<smem>>
    %484 = vector.broadcast %483 : f32 to vector<8x256xf32>
    %485 = arith.mulf %484, %482 : vector<8x256xf32>
    %486 = arith.addf %430, %485 : vector<8x256xf32>
    %c1_239 = arith.constant 1 : index
    %c8_240 = arith.constant 8 : index
    %487 = memref.load %arg4[%c1_239, %c8_240] : memref<8x16xf32, #tpu.memory_space<smem>>
    %488 = vector.broadcast %487 : f32 to vector<8x256xf32>
    %489 = arith.mulf %488, %482 : vector<8x256xf32>
    %490 = arith.addf %434, %489 : vector<8x256xf32>
    %c2_241 = arith.constant 2 : index
    %c8_242 = arith.constant 8 : index
    %491 = memref.load %arg4[%c2_241, %c8_242] : memref<8x16xf32, #tpu.memory_space<smem>>
    %492 = vector.broadcast %491 : f32 to vector<8x256xf32>
    %493 = arith.mulf %492, %482 : vector<8x256xf32>
    %494 = arith.addf %438, %493 : vector<8x256xf32>
    %c3_243 = arith.constant 3 : index
    %c8_244 = arith.constant 8 : index
    %495 = memref.load %arg4[%c3_243, %c8_244] : memref<8x16xf32, #tpu.memory_space<smem>>
    %496 = vector.broadcast %495 : f32 to vector<8x256xf32>
    %497 = arith.mulf %496, %482 : vector<8x256xf32>
    %498 = arith.addf %442, %497 : vector<8x256xf32>
    %c4_245 = arith.constant 4 : index
    %c8_246 = arith.constant 8 : index
    %499 = memref.load %arg4[%c4_245, %c8_246] : memref<8x16xf32, #tpu.memory_space<smem>>
    %500 = vector.broadcast %499 : f32 to vector<8x256xf32>
    %501 = arith.mulf %500, %482 : vector<8x256xf32>
    %502 = arith.addf %446, %501 : vector<8x256xf32>
    %c5_247 = arith.constant 5 : index
    %c8_248 = arith.constant 8 : index
    %503 = memref.load %arg4[%c5_247, %c8_248] : memref<8x16xf32, #tpu.memory_space<smem>>
    %504 = vector.broadcast %503 : f32 to vector<8x256xf32>
    %505 = arith.mulf %504, %482 : vector<8x256xf32>
    %506 = arith.addf %450, %505 : vector<8x256xf32>
    %c6_249 = arith.constant 6 : index
    %c8_250 = arith.constant 8 : index
    %507 = memref.load %arg4[%c6_249, %c8_250] : memref<8x16xf32, #tpu.memory_space<smem>>
    %508 = vector.broadcast %507 : f32 to vector<8x256xf32>
    %509 = arith.mulf %508, %482 : vector<8x256xf32>
    %510 = arith.addf %454, %509 : vector<8x256xf32>
    %c7_251 = arith.constant 7 : index
    %c8_252 = arith.constant 8 : index
    %511 = memref.load %arg4[%c7_251, %c8_252] : memref<8x16xf32, #tpu.memory_space<smem>>
    %512 = vector.broadcast %511 : f32 to vector<8x256xf32>
    %513 = arith.mulf %512, %482 : vector<8x256xf32>
    %514 = arith.addf %458, %513 : vector<8x256xf32>
    %c9 = arith.constant 9 : index
    %c0_253 = arith.constant 0 : index
    %515 = memref.load %arg2[%c9, %c0_253] : memref<16x5xf32, #tpu.memory_space<smem>>
    %516 = vector.broadcast %515 : f32 to vector<8x256xf32>
    %517 = arith.mulf %516, %6 : vector<8x256xf32>
    %c9_254 = arith.constant 9 : index
    %c1_255 = arith.constant 1 : index
    %518 = memref.load %arg2[%c9_254, %c1_255] : memref<16x5xf32, #tpu.memory_space<smem>>
    %519 = vector.broadcast %518 : f32 to vector<8x256xf32>
    %520 = arith.mulf %519, %9 : vector<8x256xf32>
    %521 = arith.addf %517, %520 : vector<8x256xf32>
    %c9_256 = arith.constant 9 : index
    %c2_257 = arith.constant 2 : index
    %522 = memref.load %arg2[%c9_256, %c2_257] : memref<16x5xf32, #tpu.memory_space<smem>>
    %523 = vector.broadcast %522 : f32 to vector<8x256xf32>
    %524 = arith.mulf %523, %12 : vector<8x256xf32>
    %525 = arith.addf %521, %524 : vector<8x256xf32>
    %c9_258 = arith.constant 9 : index
    %c3_259 = arith.constant 3 : index
    %526 = memref.load %arg2[%c9_258, %c3_259] : memref<16x5xf32, #tpu.memory_space<smem>>
    %527 = vector.broadcast %526 : f32 to vector<8x256xf32>
    %528 = arith.mulf %527, %15 : vector<8x256xf32>
    %529 = arith.addf %525, %528 : vector<8x256xf32>
    %c9_260 = arith.constant 9 : index
    %c4_261 = arith.constant 4 : index
    %530 = memref.load %arg2[%c9_260, %c4_261] : memref<16x5xf32, #tpu.memory_space<smem>>
    %531 = vector.broadcast %530 : f32 to vector<8x256xf32>
    %532 = arith.mulf %531, %18 : vector<8x256xf32>
    %533 = arith.addf %529, %532 : vector<8x256xf32>
    %c9_262 = arith.constant 9 : index
    %534 = memref.load %arg3[%c9_262] : memref<16xf32, #tpu.memory_space<smem>>
    %535 = vector.broadcast %534 : f32 to vector<8x256xf32>
    %536 = arith.addf %533, %535 : vector<8x256xf32>
    %cst_263 = arith.constant 0.000000e+00 : f32
    %537 = vector.broadcast %cst_263 : f32 to vector<8x256xf32>
    %538 = arith.maximumf %536, %537 : vector<8x256xf32>
    %c0_264 = arith.constant 0 : index
    %c9_265 = arith.constant 9 : index
    %539 = memref.load %arg4[%c0_264, %c9_265] : memref<8x16xf32, #tpu.memory_space<smem>>
    %540 = vector.broadcast %539 : f32 to vector<8x256xf32>
    %541 = arith.mulf %540, %538 : vector<8x256xf32>
    %542 = arith.addf %486, %541 : vector<8x256xf32>
    %c1_266 = arith.constant 1 : index
    %c9_267 = arith.constant 9 : index
    %543 = memref.load %arg4[%c1_266, %c9_267] : memref<8x16xf32, #tpu.memory_space<smem>>
    %544 = vector.broadcast %543 : f32 to vector<8x256xf32>
    %545 = arith.mulf %544, %538 : vector<8x256xf32>
    %546 = arith.addf %490, %545 : vector<8x256xf32>
    %c2_268 = arith.constant 2 : index
    %c9_269 = arith.constant 9 : index
    %547 = memref.load %arg4[%c2_268, %c9_269] : memref<8x16xf32, #tpu.memory_space<smem>>
    %548 = vector.broadcast %547 : f32 to vector<8x256xf32>
    %549 = arith.mulf %548, %538 : vector<8x256xf32>
    %550 = arith.addf %494, %549 : vector<8x256xf32>
    %c3_270 = arith.constant 3 : index
    %c9_271 = arith.constant 9 : index
    %551 = memref.load %arg4[%c3_270, %c9_271] : memref<8x16xf32, #tpu.memory_space<smem>>
    %552 = vector.broadcast %551 : f32 to vector<8x256xf32>
    %553 = arith.mulf %552, %538 : vector<8x256xf32>
    %554 = arith.addf %498, %553 : vector<8x256xf32>
    %c4_272 = arith.constant 4 : index
    %c9_273 = arith.constant 9 : index
    %555 = memref.load %arg4[%c4_272, %c9_273] : memref<8x16xf32, #tpu.memory_space<smem>>
    %556 = vector.broadcast %555 : f32 to vector<8x256xf32>
    %557 = arith.mulf %556, %538 : vector<8x256xf32>
    %558 = arith.addf %502, %557 : vector<8x256xf32>
    %c5_274 = arith.constant 5 : index
    %c9_275 = arith.constant 9 : index
    %559 = memref.load %arg4[%c5_274, %c9_275] : memref<8x16xf32, #tpu.memory_space<smem>>
    %560 = vector.broadcast %559 : f32 to vector<8x256xf32>
    %561 = arith.mulf %560, %538 : vector<8x256xf32>
    %562 = arith.addf %506, %561 : vector<8x256xf32>
    %c6_276 = arith.constant 6 : index
    %c9_277 = arith.constant 9 : index
    %563 = memref.load %arg4[%c6_276, %c9_277] : memref<8x16xf32, #tpu.memory_space<smem>>
    %564 = vector.broadcast %563 : f32 to vector<8x256xf32>
    %565 = arith.mulf %564, %538 : vector<8x256xf32>
    %566 = arith.addf %510, %565 : vector<8x256xf32>
    %c7_278 = arith.constant 7 : index
    %c9_279 = arith.constant 9 : index
    %567 = memref.load %arg4[%c7_278, %c9_279] : memref<8x16xf32, #tpu.memory_space<smem>>
    %568 = vector.broadcast %567 : f32 to vector<8x256xf32>
    %569 = arith.mulf %568, %538 : vector<8x256xf32>
    %570 = arith.addf %514, %569 : vector<8x256xf32>
    %c10 = arith.constant 10 : index
    %c0_280 = arith.constant 0 : index
    %571 = memref.load %arg2[%c10, %c0_280] : memref<16x5xf32, #tpu.memory_space<smem>>
    %572 = vector.broadcast %571 : f32 to vector<8x256xf32>
    %573 = arith.mulf %572, %6 : vector<8x256xf32>
    %c10_281 = arith.constant 10 : index
    %c1_282 = arith.constant 1 : index
    %574 = memref.load %arg2[%c10_281, %c1_282] : memref<16x5xf32, #tpu.memory_space<smem>>
    %575 = vector.broadcast %574 : f32 to vector<8x256xf32>
    %576 = arith.mulf %575, %9 : vector<8x256xf32>
    %577 = arith.addf %573, %576 : vector<8x256xf32>
    %c10_283 = arith.constant 10 : index
    %c2_284 = arith.constant 2 : index
    %578 = memref.load %arg2[%c10_283, %c2_284] : memref<16x5xf32, #tpu.memory_space<smem>>
    %579 = vector.broadcast %578 : f32 to vector<8x256xf32>
    %580 = arith.mulf %579, %12 : vector<8x256xf32>
    %581 = arith.addf %577, %580 : vector<8x256xf32>
    %c10_285 = arith.constant 10 : index
    %c3_286 = arith.constant 3 : index
    %582 = memref.load %arg2[%c10_285, %c3_286] : memref<16x5xf32, #tpu.memory_space<smem>>
    %583 = vector.broadcast %582 : f32 to vector<8x256xf32>
    %584 = arith.mulf %583, %15 : vector<8x256xf32>
    %585 = arith.addf %581, %584 : vector<8x256xf32>
    %c10_287 = arith.constant 10 : index
    %c4_288 = arith.constant 4 : index
    %586 = memref.load %arg2[%c10_287, %c4_288] : memref<16x5xf32, #tpu.memory_space<smem>>
    %587 = vector.broadcast %586 : f32 to vector<8x256xf32>
    %588 = arith.mulf %587, %18 : vector<8x256xf32>
    %589 = arith.addf %585, %588 : vector<8x256xf32>
    %c10_289 = arith.constant 10 : index
    %590 = memref.load %arg3[%c10_289] : memref<16xf32, #tpu.memory_space<smem>>
    %591 = vector.broadcast %590 : f32 to vector<8x256xf32>
    %592 = arith.addf %589, %591 : vector<8x256xf32>
    %cst_290 = arith.constant 0.000000e+00 : f32
    %593 = vector.broadcast %cst_290 : f32 to vector<8x256xf32>
    %594 = arith.maximumf %592, %593 : vector<8x256xf32>
    %c0_291 = arith.constant 0 : index
    %c10_292 = arith.constant 10 : index
    %595 = memref.load %arg4[%c0_291, %c10_292] : memref<8x16xf32, #tpu.memory_space<smem>>
    %596 = vector.broadcast %595 : f32 to vector<8x256xf32>
    %597 = arith.mulf %596, %594 : vector<8x256xf32>
    %598 = arith.addf %542, %597 : vector<8x256xf32>
    %c1_293 = arith.constant 1 : index
    %c10_294 = arith.constant 10 : index
    %599 = memref.load %arg4[%c1_293, %c10_294] : memref<8x16xf32, #tpu.memory_space<smem>>
    %600 = vector.broadcast %599 : f32 to vector<8x256xf32>
    %601 = arith.mulf %600, %594 : vector<8x256xf32>
    %602 = arith.addf %546, %601 : vector<8x256xf32>
    %c2_295 = arith.constant 2 : index
    %c10_296 = arith.constant 10 : index
    %603 = memref.load %arg4[%c2_295, %c10_296] : memref<8x16xf32, #tpu.memory_space<smem>>
    %604 = vector.broadcast %603 : f32 to vector<8x256xf32>
    %605 = arith.mulf %604, %594 : vector<8x256xf32>
    %606 = arith.addf %550, %605 : vector<8x256xf32>
    %c3_297 = arith.constant 3 : index
    %c10_298 = arith.constant 10 : index
    %607 = memref.load %arg4[%c3_297, %c10_298] : memref<8x16xf32, #tpu.memory_space<smem>>
    %608 = vector.broadcast %607 : f32 to vector<8x256xf32>
    %609 = arith.mulf %608, %594 : vector<8x256xf32>
    %610 = arith.addf %554, %609 : vector<8x256xf32>
    %c4_299 = arith.constant 4 : index
    %c10_300 = arith.constant 10 : index
    %611 = memref.load %arg4[%c4_299, %c10_300] : memref<8x16xf32, #tpu.memory_space<smem>>
    %612 = vector.broadcast %611 : f32 to vector<8x256xf32>
    %613 = arith.mulf %612, %594 : vector<8x256xf32>
    %614 = arith.addf %558, %613 : vector<8x256xf32>
    %c5_301 = arith.constant 5 : index
    %c10_302 = arith.constant 10 : index
    %615 = memref.load %arg4[%c5_301, %c10_302] : memref<8x16xf32, #tpu.memory_space<smem>>
    %616 = vector.broadcast %615 : f32 to vector<8x256xf32>
    %617 = arith.mulf %616, %594 : vector<8x256xf32>
    %618 = arith.addf %562, %617 : vector<8x256xf32>
    %c6_303 = arith.constant 6 : index
    %c10_304 = arith.constant 10 : index
    %619 = memref.load %arg4[%c6_303, %c10_304] : memref<8x16xf32, #tpu.memory_space<smem>>
    %620 = vector.broadcast %619 : f32 to vector<8x256xf32>
    %621 = arith.mulf %620, %594 : vector<8x256xf32>
    %622 = arith.addf %566, %621 : vector<8x256xf32>
    %c7_305 = arith.constant 7 : index
    %c10_306 = arith.constant 10 : index
    %623 = memref.load %arg4[%c7_305, %c10_306] : memref<8x16xf32, #tpu.memory_space<smem>>
    %624 = vector.broadcast %623 : f32 to vector<8x256xf32>
    %625 = arith.mulf %624, %594 : vector<8x256xf32>
    %626 = arith.addf %570, %625 : vector<8x256xf32>
    %c11 = arith.constant 11 : index
    %c0_307 = arith.constant 0 : index
    %627 = memref.load %arg2[%c11, %c0_307] : memref<16x5xf32, #tpu.memory_space<smem>>
    %628 = vector.broadcast %627 : f32 to vector<8x256xf32>
    %629 = arith.mulf %628, %6 : vector<8x256xf32>
    %c11_308 = arith.constant 11 : index
    %c1_309 = arith.constant 1 : index
    %630 = memref.load %arg2[%c11_308, %c1_309] : memref<16x5xf32, #tpu.memory_space<smem>>
    %631 = vector.broadcast %630 : f32 to vector<8x256xf32>
    %632 = arith.mulf %631, %9 : vector<8x256xf32>
    %633 = arith.addf %629, %632 : vector<8x256xf32>
    %c11_310 = arith.constant 11 : index
    %c2_311 = arith.constant 2 : index
    %634 = memref.load %arg2[%c11_310, %c2_311] : memref<16x5xf32, #tpu.memory_space<smem>>
    %635 = vector.broadcast %634 : f32 to vector<8x256xf32>
    %636 = arith.mulf %635, %12 : vector<8x256xf32>
    %637 = arith.addf %633, %636 : vector<8x256xf32>
    %c11_312 = arith.constant 11 : index
    %c3_313 = arith.constant 3 : index
    %638 = memref.load %arg2[%c11_312, %c3_313] : memref<16x5xf32, #tpu.memory_space<smem>>
    %639 = vector.broadcast %638 : f32 to vector<8x256xf32>
    %640 = arith.mulf %639, %15 : vector<8x256xf32>
    %641 = arith.addf %637, %640 : vector<8x256xf32>
    %c11_314 = arith.constant 11 : index
    %c4_315 = arith.constant 4 : index
    %642 = memref.load %arg2[%c11_314, %c4_315] : memref<16x5xf32, #tpu.memory_space<smem>>
    %643 = vector.broadcast %642 : f32 to vector<8x256xf32>
    %644 = arith.mulf %643, %18 : vector<8x256xf32>
    %645 = arith.addf %641, %644 : vector<8x256xf32>
    %c11_316 = arith.constant 11 : index
    %646 = memref.load %arg3[%c11_316] : memref<16xf32, #tpu.memory_space<smem>>
    %647 = vector.broadcast %646 : f32 to vector<8x256xf32>
    %648 = arith.addf %645, %647 : vector<8x256xf32>
    %cst_317 = arith.constant 0.000000e+00 : f32
    %649 = vector.broadcast %cst_317 : f32 to vector<8x256xf32>
    %650 = arith.maximumf %648, %649 : vector<8x256xf32>
    %c0_318 = arith.constant 0 : index
    %c11_319 = arith.constant 11 : index
    %651 = memref.load %arg4[%c0_318, %c11_319] : memref<8x16xf32, #tpu.memory_space<smem>>
    %652 = vector.broadcast %651 : f32 to vector<8x256xf32>
    %653 = arith.mulf %652, %650 : vector<8x256xf32>
    %654 = arith.addf %598, %653 : vector<8x256xf32>
    %c1_320 = arith.constant 1 : index
    %c11_321 = arith.constant 11 : index
    %655 = memref.load %arg4[%c1_320, %c11_321] : memref<8x16xf32, #tpu.memory_space<smem>>
    %656 = vector.broadcast %655 : f32 to vector<8x256xf32>
    %657 = arith.mulf %656, %650 : vector<8x256xf32>
    %658 = arith.addf %602, %657 : vector<8x256xf32>
    %c2_322 = arith.constant 2 : index
    %c11_323 = arith.constant 11 : index
    %659 = memref.load %arg4[%c2_322, %c11_323] : memref<8x16xf32, #tpu.memory_space<smem>>
    %660 = vector.broadcast %659 : f32 to vector<8x256xf32>
    %661 = arith.mulf %660, %650 : vector<8x256xf32>
    %662 = arith.addf %606, %661 : vector<8x256xf32>
    %c3_324 = arith.constant 3 : index
    %c11_325 = arith.constant 11 : index
    %663 = memref.load %arg4[%c3_324, %c11_325] : memref<8x16xf32, #tpu.memory_space<smem>>
    %664 = vector.broadcast %663 : f32 to vector<8x256xf32>
    %665 = arith.mulf %664, %650 : vector<8x256xf32>
    %666 = arith.addf %610, %665 : vector<8x256xf32>
    %c4_326 = arith.constant 4 : index
    %c11_327 = arith.constant 11 : index
    %667 = memref.load %arg4[%c4_326, %c11_327] : memref<8x16xf32, #tpu.memory_space<smem>>
    %668 = vector.broadcast %667 : f32 to vector<8x256xf32>
    %669 = arith.mulf %668, %650 : vector<8x256xf32>
    %670 = arith.addf %614, %669 : vector<8x256xf32>
    %c5_328 = arith.constant 5 : index
    %c11_329 = arith.constant 11 : index
    %671 = memref.load %arg4[%c5_328, %c11_329] : memref<8x16xf32, #tpu.memory_space<smem>>
    %672 = vector.broadcast %671 : f32 to vector<8x256xf32>
    %673 = arith.mulf %672, %650 : vector<8x256xf32>
    %674 = arith.addf %618, %673 : vector<8x256xf32>
    %c6_330 = arith.constant 6 : index
    %c11_331 = arith.constant 11 : index
    %675 = memref.load %arg4[%c6_330, %c11_331] : memref<8x16xf32, #tpu.memory_space<smem>>
    %676 = vector.broadcast %675 : f32 to vector<8x256xf32>
    %677 = arith.mulf %676, %650 : vector<8x256xf32>
    %678 = arith.addf %622, %677 : vector<8x256xf32>
    %c7_332 = arith.constant 7 : index
    %c11_333 = arith.constant 11 : index
    %679 = memref.load %arg4[%c7_332, %c11_333] : memref<8x16xf32, #tpu.memory_space<smem>>
    %680 = vector.broadcast %679 : f32 to vector<8x256xf32>
    %681 = arith.mulf %680, %650 : vector<8x256xf32>
    %682 = arith.addf %626, %681 : vector<8x256xf32>
    %c12 = arith.constant 12 : index
    %c0_334 = arith.constant 0 : index
    %683 = memref.load %arg2[%c12, %c0_334] : memref<16x5xf32, #tpu.memory_space<smem>>
    %684 = vector.broadcast %683 : f32 to vector<8x256xf32>
    %685 = arith.mulf %684, %6 : vector<8x256xf32>
    %c12_335 = arith.constant 12 : index
    %c1_336 = arith.constant 1 : index
    %686 = memref.load %arg2[%c12_335, %c1_336] : memref<16x5xf32, #tpu.memory_space<smem>>
    %687 = vector.broadcast %686 : f32 to vector<8x256xf32>
    %688 = arith.mulf %687, %9 : vector<8x256xf32>
    %689 = arith.addf %685, %688 : vector<8x256xf32>
    %c12_337 = arith.constant 12 : index
    %c2_338 = arith.constant 2 : index
    %690 = memref.load %arg2[%c12_337, %c2_338] : memref<16x5xf32, #tpu.memory_space<smem>>
    %691 = vector.broadcast %690 : f32 to vector<8x256xf32>
    %692 = arith.mulf %691, %12 : vector<8x256xf32>
    %693 = arith.addf %689, %692 : vector<8x256xf32>
    %c12_339 = arith.constant 12 : index
    %c3_340 = arith.constant 3 : index
    %694 = memref.load %arg2[%c12_339, %c3_340] : memref<16x5xf32, #tpu.memory_space<smem>>
    %695 = vector.broadcast %694 : f32 to vector<8x256xf32>
    %696 = arith.mulf %695, %15 : vector<8x256xf32>
    %697 = arith.addf %693, %696 : vector<8x256xf32>
    %c12_341 = arith.constant 12 : index
    %c4_342 = arith.constant 4 : index
    %698 = memref.load %arg2[%c12_341, %c4_342] : memref<16x5xf32, #tpu.memory_space<smem>>
    %699 = vector.broadcast %698 : f32 to vector<8x256xf32>
    %700 = arith.mulf %699, %18 : vector<8x256xf32>
    %701 = arith.addf %697, %700 : vector<8x256xf32>
    %c12_343 = arith.constant 12 : index
    %702 = memref.load %arg3[%c12_343] : memref<16xf32, #tpu.memory_space<smem>>
    %703 = vector.broadcast %702 : f32 to vector<8x256xf32>
    %704 = arith.addf %701, %703 : vector<8x256xf32>
    %cst_344 = arith.constant 0.000000e+00 : f32
    %705 = vector.broadcast %cst_344 : f32 to vector<8x256xf32>
    %706 = arith.maximumf %704, %705 : vector<8x256xf32>
    %c0_345 = arith.constant 0 : index
    %c12_346 = arith.constant 12 : index
    %707 = memref.load %arg4[%c0_345, %c12_346] : memref<8x16xf32, #tpu.memory_space<smem>>
    %708 = vector.broadcast %707 : f32 to vector<8x256xf32>
    %709 = arith.mulf %708, %706 : vector<8x256xf32>
    %710 = arith.addf %654, %709 : vector<8x256xf32>
    %c1_347 = arith.constant 1 : index
    %c12_348 = arith.constant 12 : index
    %711 = memref.load %arg4[%c1_347, %c12_348] : memref<8x16xf32, #tpu.memory_space<smem>>
    %712 = vector.broadcast %711 : f32 to vector<8x256xf32>
    %713 = arith.mulf %712, %706 : vector<8x256xf32>
    %714 = arith.addf %658, %713 : vector<8x256xf32>
    %c2_349 = arith.constant 2 : index
    %c12_350 = arith.constant 12 : index
    %715 = memref.load %arg4[%c2_349, %c12_350] : memref<8x16xf32, #tpu.memory_space<smem>>
    %716 = vector.broadcast %715 : f32 to vector<8x256xf32>
    %717 = arith.mulf %716, %706 : vector<8x256xf32>
    %718 = arith.addf %662, %717 : vector<8x256xf32>
    %c3_351 = arith.constant 3 : index
    %c12_352 = arith.constant 12 : index
    %719 = memref.load %arg4[%c3_351, %c12_352] : memref<8x16xf32, #tpu.memory_space<smem>>
    %720 = vector.broadcast %719 : f32 to vector<8x256xf32>
    %721 = arith.mulf %720, %706 : vector<8x256xf32>
    %722 = arith.addf %666, %721 : vector<8x256xf32>
    %c4_353 = arith.constant 4 : index
    %c12_354 = arith.constant 12 : index
    %723 = memref.load %arg4[%c4_353, %c12_354] : memref<8x16xf32, #tpu.memory_space<smem>>
    %724 = vector.broadcast %723 : f32 to vector<8x256xf32>
    %725 = arith.mulf %724, %706 : vector<8x256xf32>
    %726 = arith.addf %670, %725 : vector<8x256xf32>
    %c5_355 = arith.constant 5 : index
    %c12_356 = arith.constant 12 : index
    %727 = memref.load %arg4[%c5_355, %c12_356] : memref<8x16xf32, #tpu.memory_space<smem>>
    %728 = vector.broadcast %727 : f32 to vector<8x256xf32>
    %729 = arith.mulf %728, %706 : vector<8x256xf32>
    %730 = arith.addf %674, %729 : vector<8x256xf32>
    %c6_357 = arith.constant 6 : index
    %c12_358 = arith.constant 12 : index
    %731 = memref.load %arg4[%c6_357, %c12_358] : memref<8x16xf32, #tpu.memory_space<smem>>
    %732 = vector.broadcast %731 : f32 to vector<8x256xf32>
    %733 = arith.mulf %732, %706 : vector<8x256xf32>
    %734 = arith.addf %678, %733 : vector<8x256xf32>
    %c7_359 = arith.constant 7 : index
    %c12_360 = arith.constant 12 : index
    %735 = memref.load %arg4[%c7_359, %c12_360] : memref<8x16xf32, #tpu.memory_space<smem>>
    %736 = vector.broadcast %735 : f32 to vector<8x256xf32>
    %737 = arith.mulf %736, %706 : vector<8x256xf32>
    %738 = arith.addf %682, %737 : vector<8x256xf32>
    %c13 = arith.constant 13 : index
    %c0_361 = arith.constant 0 : index
    %739 = memref.load %arg2[%c13, %c0_361] : memref<16x5xf32, #tpu.memory_space<smem>>
    %740 = vector.broadcast %739 : f32 to vector<8x256xf32>
    %741 = arith.mulf %740, %6 : vector<8x256xf32>
    %c13_362 = arith.constant 13 : index
    %c1_363 = arith.constant 1 : index
    %742 = memref.load %arg2[%c13_362, %c1_363] : memref<16x5xf32, #tpu.memory_space<smem>>
    %743 = vector.broadcast %742 : f32 to vector<8x256xf32>
    %744 = arith.mulf %743, %9 : vector<8x256xf32>
    %745 = arith.addf %741, %744 : vector<8x256xf32>
    %c13_364 = arith.constant 13 : index
    %c2_365 = arith.constant 2 : index
    %746 = memref.load %arg2[%c13_364, %c2_365] : memref<16x5xf32, #tpu.memory_space<smem>>
    %747 = vector.broadcast %746 : f32 to vector<8x256xf32>
    %748 = arith.mulf %747, %12 : vector<8x256xf32>
    %749 = arith.addf %745, %748 : vector<8x256xf32>
    %c13_366 = arith.constant 13 : index
    %c3_367 = arith.constant 3 : index
    %750 = memref.load %arg2[%c13_366, %c3_367] : memref<16x5xf32, #tpu.memory_space<smem>>
    %751 = vector.broadcast %750 : f32 to vector<8x256xf32>
    %752 = arith.mulf %751, %15 : vector<8x256xf32>
    %753 = arith.addf %749, %752 : vector<8x256xf32>
    %c13_368 = arith.constant 13 : index
    %c4_369 = arith.constant 4 : index
    %754 = memref.load %arg2[%c13_368, %c4_369] : memref<16x5xf32, #tpu.memory_space<smem>>
    %755 = vector.broadcast %754 : f32 to vector<8x256xf32>
    %756 = arith.mulf %755, %18 : vector<8x256xf32>
    %757 = arith.addf %753, %756 : vector<8x256xf32>
    %c13_370 = arith.constant 13 : index
    %758 = memref.load %arg3[%c13_370] : memref<16xf32, #tpu.memory_space<smem>>
    %759 = vector.broadcast %758 : f32 to vector<8x256xf32>
    %760 = arith.addf %757, %759 : vector<8x256xf32>
    %cst_371 = arith.constant 0.000000e+00 : f32
    %761 = vector.broadcast %cst_371 : f32 to vector<8x256xf32>
    %762 = arith.maximumf %760, %761 : vector<8x256xf32>
    %c0_372 = arith.constant 0 : index
    %c13_373 = arith.constant 13 : index
    %763 = memref.load %arg4[%c0_372, %c13_373] : memref<8x16xf32, #tpu.memory_space<smem>>
    %764 = vector.broadcast %763 : f32 to vector<8x256xf32>
    %765 = arith.mulf %764, %762 : vector<8x256xf32>
    %766 = arith.addf %710, %765 : vector<8x256xf32>
    %c1_374 = arith.constant 1 : index
    %c13_375 = arith.constant 13 : index
    %767 = memref.load %arg4[%c1_374, %c13_375] : memref<8x16xf32, #tpu.memory_space<smem>>
    %768 = vector.broadcast %767 : f32 to vector<8x256xf32>
    %769 = arith.mulf %768, %762 : vector<8x256xf32>
    %770 = arith.addf %714, %769 : vector<8x256xf32>
    %c2_376 = arith.constant 2 : index
    %c13_377 = arith.constant 13 : index
    %771 = memref.load %arg4[%c2_376, %c13_377] : memref<8x16xf32, #tpu.memory_space<smem>>
    %772 = vector.broadcast %771 : f32 to vector<8x256xf32>
    %773 = arith.mulf %772, %762 : vector<8x256xf32>
    %774 = arith.addf %718, %773 : vector<8x256xf32>
    %c3_378 = arith.constant 3 : index
    %c13_379 = arith.constant 13 : index
    %775 = memref.load %arg4[%c3_378, %c13_379] : memref<8x16xf32, #tpu.memory_space<smem>>
    %776 = vector.broadcast %775 : f32 to vector<8x256xf32>
    %777 = arith.mulf %776, %762 : vector<8x256xf32>
    %778 = arith.addf %722, %777 : vector<8x256xf32>
    %c4_380 = arith.constant 4 : index
    %c13_381 = arith.constant 13 : index
    %779 = memref.load %arg4[%c4_380, %c13_381] : memref<8x16xf32, #tpu.memory_space<smem>>
    %780 = vector.broadcast %779 : f32 to vector<8x256xf32>
    %781 = arith.mulf %780, %762 : vector<8x256xf32>
    %782 = arith.addf %726, %781 : vector<8x256xf32>
    %c5_382 = arith.constant 5 : index
    %c13_383 = arith.constant 13 : index
    %783 = memref.load %arg4[%c5_382, %c13_383] : memref<8x16xf32, #tpu.memory_space<smem>>
    %784 = vector.broadcast %783 : f32 to vector<8x256xf32>
    %785 = arith.mulf %784, %762 : vector<8x256xf32>
    %786 = arith.addf %730, %785 : vector<8x256xf32>
    %c6_384 = arith.constant 6 : index
    %c13_385 = arith.constant 13 : index
    %787 = memref.load %arg4[%c6_384, %c13_385] : memref<8x16xf32, #tpu.memory_space<smem>>
    %788 = vector.broadcast %787 : f32 to vector<8x256xf32>
    %789 = arith.mulf %788, %762 : vector<8x256xf32>
    %790 = arith.addf %734, %789 : vector<8x256xf32>
    %c7_386 = arith.constant 7 : index
    %c13_387 = arith.constant 13 : index
    %791 = memref.load %arg4[%c7_386, %c13_387] : memref<8x16xf32, #tpu.memory_space<smem>>
    %792 = vector.broadcast %791 : f32 to vector<8x256xf32>
    %793 = arith.mulf %792, %762 : vector<8x256xf32>
    %794 = arith.addf %738, %793 : vector<8x256xf32>
    %c14 = arith.constant 14 : index
    %c0_388 = arith.constant 0 : index
    %795 = memref.load %arg2[%c14, %c0_388] : memref<16x5xf32, #tpu.memory_space<smem>>
    %796 = vector.broadcast %795 : f32 to vector<8x256xf32>
    %797 = arith.mulf %796, %6 : vector<8x256xf32>
    %c14_389 = arith.constant 14 : index
    %c1_390 = arith.constant 1 : index
    %798 = memref.load %arg2[%c14_389, %c1_390] : memref<16x5xf32, #tpu.memory_space<smem>>
    %799 = vector.broadcast %798 : f32 to vector<8x256xf32>
    %800 = arith.mulf %799, %9 : vector<8x256xf32>
    %801 = arith.addf %797, %800 : vector<8x256xf32>
    %c14_391 = arith.constant 14 : index
    %c2_392 = arith.constant 2 : index
    %802 = memref.load %arg2[%c14_391, %c2_392] : memref<16x5xf32, #tpu.memory_space<smem>>
    %803 = vector.broadcast %802 : f32 to vector<8x256xf32>
    %804 = arith.mulf %803, %12 : vector<8x256xf32>
    %805 = arith.addf %801, %804 : vector<8x256xf32>
    %c14_393 = arith.constant 14 : index
    %c3_394 = arith.constant 3 : index
    %806 = memref.load %arg2[%c14_393, %c3_394] : memref<16x5xf32, #tpu.memory_space<smem>>
    %807 = vector.broadcast %806 : f32 to vector<8x256xf32>
    %808 = arith.mulf %807, %15 : vector<8x256xf32>
    %809 = arith.addf %805, %808 : vector<8x256xf32>
    %c14_395 = arith.constant 14 : index
    %c4_396 = arith.constant 4 : index
    %810 = memref.load %arg2[%c14_395, %c4_396] : memref<16x5xf32, #tpu.memory_space<smem>>
    %811 = vector.broadcast %810 : f32 to vector<8x256xf32>
    %812 = arith.mulf %811, %18 : vector<8x256xf32>
    %813 = arith.addf %809, %812 : vector<8x256xf32>
    %c14_397 = arith.constant 14 : index
    %814 = memref.load %arg3[%c14_397] : memref<16xf32, #tpu.memory_space<smem>>
    %815 = vector.broadcast %814 : f32 to vector<8x256xf32>
    %816 = arith.addf %813, %815 : vector<8x256xf32>
    %cst_398 = arith.constant 0.000000e+00 : f32
    %817 = vector.broadcast %cst_398 : f32 to vector<8x256xf32>
    %818 = arith.maximumf %816, %817 : vector<8x256xf32>
    %c0_399 = arith.constant 0 : index
    %c14_400 = arith.constant 14 : index
    %819 = memref.load %arg4[%c0_399, %c14_400] : memref<8x16xf32, #tpu.memory_space<smem>>
    %820 = vector.broadcast %819 : f32 to vector<8x256xf32>
    %821 = arith.mulf %820, %818 : vector<8x256xf32>
    %822 = arith.addf %766, %821 : vector<8x256xf32>
    %c1_401 = arith.constant 1 : index
    %c14_402 = arith.constant 14 : index
    %823 = memref.load %arg4[%c1_401, %c14_402] : memref<8x16xf32, #tpu.memory_space<smem>>
    %824 = vector.broadcast %823 : f32 to vector<8x256xf32>
    %825 = arith.mulf %824, %818 : vector<8x256xf32>
    %826 = arith.addf %770, %825 : vector<8x256xf32>
    %c2_403 = arith.constant 2 : index
    %c14_404 = arith.constant 14 : index
    %827 = memref.load %arg4[%c2_403, %c14_404] : memref<8x16xf32, #tpu.memory_space<smem>>
    %828 = vector.broadcast %827 : f32 to vector<8x256xf32>
    %829 = arith.mulf %828, %818 : vector<8x256xf32>
    %830 = arith.addf %774, %829 : vector<8x256xf32>
    %c3_405 = arith.constant 3 : index
    %c14_406 = arith.constant 14 : index
    %831 = memref.load %arg4[%c3_405, %c14_406] : memref<8x16xf32, #tpu.memory_space<smem>>
    %832 = vector.broadcast %831 : f32 to vector<8x256xf32>
    %833 = arith.mulf %832, %818 : vector<8x256xf32>
    %834 = arith.addf %778, %833 : vector<8x256xf32>
    %c4_407 = arith.constant 4 : index
    %c14_408 = arith.constant 14 : index
    %835 = memref.load %arg4[%c4_407, %c14_408] : memref<8x16xf32, #tpu.memory_space<smem>>
    %836 = vector.broadcast %835 : f32 to vector<8x256xf32>
    %837 = arith.mulf %836, %818 : vector<8x256xf32>
    %838 = arith.addf %782, %837 : vector<8x256xf32>
    %c5_409 = arith.constant 5 : index
    %c14_410 = arith.constant 14 : index
    %839 = memref.load %arg4[%c5_409, %c14_410] : memref<8x16xf32, #tpu.memory_space<smem>>
    %840 = vector.broadcast %839 : f32 to vector<8x256xf32>
    %841 = arith.mulf %840, %818 : vector<8x256xf32>
    %842 = arith.addf %786, %841 : vector<8x256xf32>
    %c6_411 = arith.constant 6 : index
    %c14_412 = arith.constant 14 : index
    %843 = memref.load %arg4[%c6_411, %c14_412] : memref<8x16xf32, #tpu.memory_space<smem>>
    %844 = vector.broadcast %843 : f32 to vector<8x256xf32>
    %845 = arith.mulf %844, %818 : vector<8x256xf32>
    %846 = arith.addf %790, %845 : vector<8x256xf32>
    %c7_413 = arith.constant 7 : index
    %c14_414 = arith.constant 14 : index
    %847 = memref.load %arg4[%c7_413, %c14_414] : memref<8x16xf32, #tpu.memory_space<smem>>
    %848 = vector.broadcast %847 : f32 to vector<8x256xf32>
    %849 = arith.mulf %848, %818 : vector<8x256xf32>
    %850 = arith.addf %794, %849 : vector<8x256xf32>
    %c15 = arith.constant 15 : index
    %c0_415 = arith.constant 0 : index
    %851 = memref.load %arg2[%c15, %c0_415] : memref<16x5xf32, #tpu.memory_space<smem>>
    %852 = vector.broadcast %851 : f32 to vector<8x256xf32>
    %853 = arith.mulf %852, %6 : vector<8x256xf32>
    %c15_416 = arith.constant 15 : index
    %c1_417 = arith.constant 1 : index
    %854 = memref.load %arg2[%c15_416, %c1_417] : memref<16x5xf32, #tpu.memory_space<smem>>
    %855 = vector.broadcast %854 : f32 to vector<8x256xf32>
    %856 = arith.mulf %855, %9 : vector<8x256xf32>
    %857 = arith.addf %853, %856 : vector<8x256xf32>
    %c15_418 = arith.constant 15 : index
    %c2_419 = arith.constant 2 : index
    %858 = memref.load %arg2[%c15_418, %c2_419] : memref<16x5xf32, #tpu.memory_space<smem>>
    %859 = vector.broadcast %858 : f32 to vector<8x256xf32>
    %860 = arith.mulf %859, %12 : vector<8x256xf32>
    %861 = arith.addf %857, %860 : vector<8x256xf32>
    %c15_420 = arith.constant 15 : index
    %c3_421 = arith.constant 3 : index
    %862 = memref.load %arg2[%c15_420, %c3_421] : memref<16x5xf32, #tpu.memory_space<smem>>
    %863 = vector.broadcast %862 : f32 to vector<8x256xf32>
    %864 = arith.mulf %863, %15 : vector<8x256xf32>
    %865 = arith.addf %861, %864 : vector<8x256xf32>
    %c15_422 = arith.constant 15 : index
    %c4_423 = arith.constant 4 : index
    %866 = memref.load %arg2[%c15_422, %c4_423] : memref<16x5xf32, #tpu.memory_space<smem>>
    %867 = vector.broadcast %866 : f32 to vector<8x256xf32>
    %868 = arith.mulf %867, %18 : vector<8x256xf32>
    %869 = arith.addf %865, %868 : vector<8x256xf32>
    %c15_424 = arith.constant 15 : index
    %870 = memref.load %arg3[%c15_424] : memref<16xf32, #tpu.memory_space<smem>>
    %871 = vector.broadcast %870 : f32 to vector<8x256xf32>
    %872 = arith.addf %869, %871 : vector<8x256xf32>
    %cst_425 = arith.constant 0.000000e+00 : f32
    %873 = vector.broadcast %cst_425 : f32 to vector<8x256xf32>
    %874 = arith.maximumf %872, %873 : vector<8x256xf32>
    %c0_426 = arith.constant 0 : index
    %c15_427 = arith.constant 15 : index
    %875 = memref.load %arg4[%c0_426, %c15_427] : memref<8x16xf32, #tpu.memory_space<smem>>
    %876 = vector.broadcast %875 : f32 to vector<8x256xf32>
    %877 = arith.mulf %876, %874 : vector<8x256xf32>
    %878 = arith.addf %822, %877 : vector<8x256xf32>
    %c1_428 = arith.constant 1 : index
    %c15_429 = arith.constant 15 : index
    %879 = memref.load %arg4[%c1_428, %c15_429] : memref<8x16xf32, #tpu.memory_space<smem>>
    %880 = vector.broadcast %879 : f32 to vector<8x256xf32>
    %881 = arith.mulf %880, %874 : vector<8x256xf32>
    %882 = arith.addf %826, %881 : vector<8x256xf32>
    %c2_430 = arith.constant 2 : index
    %c15_431 = arith.constant 15 : index
    %883 = memref.load %arg4[%c2_430, %c15_431] : memref<8x16xf32, #tpu.memory_space<smem>>
    %884 = vector.broadcast %883 : f32 to vector<8x256xf32>
    %885 = arith.mulf %884, %874 : vector<8x256xf32>
    %886 = arith.addf %830, %885 : vector<8x256xf32>
    %c3_432 = arith.constant 3 : index
    %c15_433 = arith.constant 15 : index
    %887 = memref.load %arg4[%c3_432, %c15_433] : memref<8x16xf32, #tpu.memory_space<smem>>
    %888 = vector.broadcast %887 : f32 to vector<8x256xf32>
    %889 = arith.mulf %888, %874 : vector<8x256xf32>
    %890 = arith.addf %834, %889 : vector<8x256xf32>
    %c4_434 = arith.constant 4 : index
    %c15_435 = arith.constant 15 : index
    %891 = memref.load %arg4[%c4_434, %c15_435] : memref<8x16xf32, #tpu.memory_space<smem>>
    %892 = vector.broadcast %891 : f32 to vector<8x256xf32>
    %893 = arith.mulf %892, %874 : vector<8x256xf32>
    %894 = arith.addf %838, %893 : vector<8x256xf32>
    %c5_436 = arith.constant 5 : index
    %c15_437 = arith.constant 15 : index
    %895 = memref.load %arg4[%c5_436, %c15_437] : memref<8x16xf32, #tpu.memory_space<smem>>
    %896 = vector.broadcast %895 : f32 to vector<8x256xf32>
    %897 = arith.mulf %896, %874 : vector<8x256xf32>
    %898 = arith.addf %842, %897 : vector<8x256xf32>
    %c6_438 = arith.constant 6 : index
    %c15_439 = arith.constant 15 : index
    %899 = memref.load %arg4[%c6_438, %c15_439] : memref<8x16xf32, #tpu.memory_space<smem>>
    %900 = vector.broadcast %899 : f32 to vector<8x256xf32>
    %901 = arith.mulf %900, %874 : vector<8x256xf32>
    %902 = arith.addf %846, %901 : vector<8x256xf32>
    %c7_440 = arith.constant 7 : index
    %c15_441 = arith.constant 15 : index
    %903 = memref.load %arg4[%c7_440, %c15_441] : memref<8x16xf32, #tpu.memory_space<smem>>
    %904 = vector.broadcast %903 : f32 to vector<8x256xf32>
    %905 = arith.mulf %904, %874 : vector<8x256xf32>
    %906 = arith.addf %850, %905 : vector<8x256xf32>
    %c0_442 = arith.constant 0 : index
    %907 = memref.load %arg5[%c0_442] : memref<8xf32, #tpu.memory_space<smem>>
    %908 = vector.broadcast %907 : f32 to vector<8x256xf32>
    %909 = arith.addf %878, %908 : vector<8x256xf32>
    %cst_443 = arith.constant 0.000000e+00 : f32
    %910 = vector.broadcast %cst_443 : f32 to vector<8x256xf32>
    %911 = arith.maximumf %909, %910 : vector<8x256xf32>
    %c0_444 = arith.constant 0 : index
    %c0_445 = arith.constant 0 : index
    %912 = memref.load %arg6[%c0_444, %c0_445] : memref<1x8xf32, #tpu.memory_space<smem>>
    %913 = vector.broadcast %912 : f32 to vector<8x256xf32>
    %914 = arith.mulf %913, %911 : vector<8x256xf32>
    %c1_446 = arith.constant 1 : index
    %915 = memref.load %arg5[%c1_446] : memref<8xf32, #tpu.memory_space<smem>>
    %916 = vector.broadcast %915 : f32 to vector<8x256xf32>
    %917 = arith.addf %882, %916 : vector<8x256xf32>
    %cst_447 = arith.constant 0.000000e+00 : f32
    %918 = vector.broadcast %cst_447 : f32 to vector<8x256xf32>
    %919 = arith.maximumf %917, %918 : vector<8x256xf32>
    %c0_448 = arith.constant 0 : index
    %c1_449 = arith.constant 1 : index
    %920 = memref.load %arg6[%c0_448, %c1_449] : memref<1x8xf32, #tpu.memory_space<smem>>
    %921 = vector.broadcast %920 : f32 to vector<8x256xf32>
    %922 = arith.mulf %921, %919 : vector<8x256xf32>
    %923 = arith.addf %914, %922 : vector<8x256xf32>
    %c2_450 = arith.constant 2 : index
    %924 = memref.load %arg5[%c2_450] : memref<8xf32, #tpu.memory_space<smem>>
    %925 = vector.broadcast %924 : f32 to vector<8x256xf32>
    %926 = arith.addf %886, %925 : vector<8x256xf32>
    %cst_451 = arith.constant 0.000000e+00 : f32
    %927 = vector.broadcast %cst_451 : f32 to vector<8x256xf32>
    %928 = arith.maximumf %926, %927 : vector<8x256xf32>
    %c0_452 = arith.constant 0 : index
    %c2_453 = arith.constant 2 : index
    %929 = memref.load %arg6[%c0_452, %c2_453] : memref<1x8xf32, #tpu.memory_space<smem>>
    %930 = vector.broadcast %929 : f32 to vector<8x256xf32>
    %931 = arith.mulf %930, %928 : vector<8x256xf32>
    %932 = arith.addf %923, %931 : vector<8x256xf32>
    %c3_454 = arith.constant 3 : index
    %933 = memref.load %arg5[%c3_454] : memref<8xf32, #tpu.memory_space<smem>>
    %934 = vector.broadcast %933 : f32 to vector<8x256xf32>
    %935 = arith.addf %890, %934 : vector<8x256xf32>
    %cst_455 = arith.constant 0.000000e+00 : f32
    %936 = vector.broadcast %cst_455 : f32 to vector<8x256xf32>
    %937 = arith.maximumf %935, %936 : vector<8x256xf32>
    %c0_456 = arith.constant 0 : index
    %c3_457 = arith.constant 3 : index
    %938 = memref.load %arg6[%c0_456, %c3_457] : memref<1x8xf32, #tpu.memory_space<smem>>
    %939 = vector.broadcast %938 : f32 to vector<8x256xf32>
    %940 = arith.mulf %939, %937 : vector<8x256xf32>
    %941 = arith.addf %932, %940 : vector<8x256xf32>
    %c4_458 = arith.constant 4 : index
    %942 = memref.load %arg5[%c4_458] : memref<8xf32, #tpu.memory_space<smem>>
    %943 = vector.broadcast %942 : f32 to vector<8x256xf32>
    %944 = arith.addf %894, %943 : vector<8x256xf32>
    %cst_459 = arith.constant 0.000000e+00 : f32
    %945 = vector.broadcast %cst_459 : f32 to vector<8x256xf32>
    %946 = arith.maximumf %944, %945 : vector<8x256xf32>
    %c0_460 = arith.constant 0 : index
    %c4_461 = arith.constant 4 : index
    %947 = memref.load %arg6[%c0_460, %c4_461] : memref<1x8xf32, #tpu.memory_space<smem>>
    %948 = vector.broadcast %947 : f32 to vector<8x256xf32>
    %949 = arith.mulf %948, %946 : vector<8x256xf32>
    %950 = arith.addf %941, %949 : vector<8x256xf32>
    %c5_462 = arith.constant 5 : index
    %951 = memref.load %arg5[%c5_462] : memref<8xf32, #tpu.memory_space<smem>>
    %952 = vector.broadcast %951 : f32 to vector<8x256xf32>
    %953 = arith.addf %898, %952 : vector<8x256xf32>
    %cst_463 = arith.constant 0.000000e+00 : f32
    %954 = vector.broadcast %cst_463 : f32 to vector<8x256xf32>
    %955 = arith.maximumf %953, %954 : vector<8x256xf32>
    %c0_464 = arith.constant 0 : index
    %c5_465 = arith.constant 5 : index
    %956 = memref.load %arg6[%c0_464, %c5_465] : memref<1x8xf32, #tpu.memory_space<smem>>
    %957 = vector.broadcast %956 : f32 to vector<8x256xf32>
    %958 = arith.mulf %957, %955 : vector<8x256xf32>
    %959 = arith.addf %950, %958 : vector<8x256xf32>
    %c6_466 = arith.constant 6 : index
    %960 = memref.load %arg5[%c6_466] : memref<8xf32, #tpu.memory_space<smem>>
    %961 = vector.broadcast %960 : f32 to vector<8x256xf32>
    %962 = arith.addf %902, %961 : vector<8x256xf32>
    %cst_467 = arith.constant 0.000000e+00 : f32
    %963 = vector.broadcast %cst_467 : f32 to vector<8x256xf32>
    %964 = arith.maximumf %962, %963 : vector<8x256xf32>
    %c0_468 = arith.constant 0 : index
    %c6_469 = arith.constant 6 : index
    %965 = memref.load %arg6[%c0_468, %c6_469] : memref<1x8xf32, #tpu.memory_space<smem>>
    %966 = vector.broadcast %965 : f32 to vector<8x256xf32>
    %967 = arith.mulf %966, %964 : vector<8x256xf32>
    %968 = arith.addf %959, %967 : vector<8x256xf32>
    %c7_470 = arith.constant 7 : index
    %969 = memref.load %arg5[%c7_470] : memref<8xf32, #tpu.memory_space<smem>>
    %970 = vector.broadcast %969 : f32 to vector<8x256xf32>
    %971 = arith.addf %906, %970 : vector<8x256xf32>
    %cst_471 = arith.constant 0.000000e+00 : f32
    %972 = vector.broadcast %cst_471 : f32 to vector<8x256xf32>
    %973 = arith.maximumf %971, %972 : vector<8x256xf32>
    %c0_472 = arith.constant 0 : index
    %c7_473 = arith.constant 7 : index
    %974 = memref.load %arg6[%c0_472, %c7_473] : memref<1x8xf32, #tpu.memory_space<smem>>
    %975 = vector.broadcast %974 : f32 to vector<8x256xf32>
    %976 = arith.mulf %975, %973 : vector<8x256xf32>
    %977 = arith.addf %968, %976 : vector<8x256xf32>
    %c0_474 = arith.constant 0 : index
    %978 = memref.load %arg7[%c0_474] : memref<1xf32, #tpu.memory_space<smem>>
    %979 = vector.broadcast %978 : f32 to vector<8x256xf32>
    %980 = arith.addf %977, %979 : vector<8x256xf32>
    %cst_475 = arith.constant 0.000000e+00 : f32
    %981 = vector.broadcast %cst_475 : f32 to vector<8x256xf32>
    %982 = arith.subf %981, %980 : vector<8x256xf32>
    %983 = math.exp %982 : vector<8x256xf32>
    %cst_476 = arith.constant 1.000000e+00 : f32
    %984 = vector.broadcast %cst_476 : f32 to vector<8x256xf32>
    %985 = arith.addf %984, %983 : vector<8x256xf32>
    %986 = tpu.reciprocal %985 {approx = true} : vector<8x256xf32> -> vector<8x256xf32>
    %987 = arith.index_cast %3 : i32 to index
    %c0_477 = arith.constant 0 : index
    %988 = vector.load %arg8[%987, %c0_477] : memref<8x256xf32, #tpu.memory_space<vmem>>, vector<8x256xf32>
    tpu.vector_store %arg8[%987, %c0_477], %986 {strides = array<i32>} : memref<8x256xf32, #tpu.memory_space<vmem>>, vector<8x256xf32>,
    %c1_i32_478 = arith.constant 1 : i32
    return
  }
  func.func @transform_0(%arg0: i32) -> (i32, i32, i32) {
    %c0_i32 = arith.constant 0 : i32
    %c0_i32_0 = arith.constant 0 : i32
    %c0_i32_1 = arith.constant 0 : i32
    return %c0_i32, %arg0, %c0_i32_0 : i32, i32, i32
  }
  func.func @transform_1(%arg0: i32) -> (i32, i32) {
    %c0_i32 = arith.constant 0 : i32
    %c0_i32_0 = arith.constant 0 : i32
    %c0_i32_1 = arith.constant 0 : i32
    return %c0_i32, %c0_i32_0 : i32, i32
  }
  func.func @transform_2(%arg0: i32) -> i32 {
    %c0_i32 = arith.constant 0 : i32
    %c0_i32_0 = arith.constant 0 : i32
    return %c0_i32 : i32
  }
  func.func @transform_3(%arg0: i32) -> (i32, i32) {
    %c0_i32 = arith.constant 0 : i32
    %c0_i32_0 = arith.constant 0 : i32
    %c0_i32_1 = arith.constant 0 : i32
    return %c0_i32, %c0_i32_0 : i32, i32
  }
  func.func @transform_4(%arg0: i32) -> i32 {
    %c0_i32 = arith.constant 0 : i32
    %c0_i32_0 = arith.constant 0 : i32
    return %c0_i32 : i32
  }
  func.func @transform_5(%arg0: i32) -> (i32, i32) {
    %c0_i32 = arith.constant 0 : i32
    %c0_i32_0 = arith.constant 0 : i32
    %c0_i32_1 = arith.constant 0 : i32
    return %c0_i32, %c0_i32_0 : i32, i32
  }
  func.func @transform_6(%arg0: i32) -> i32 {
    %c0_i32 = arith.constant 0 : i32
    %c0_i32_0 = arith.constant 0 : i32
    return %c0_i32 : i32
  }
  func.func @transform_7(%arg0: i32) -> (i32, i32) {
    %c0_i32 = arith.constant 0 : i32
    %c0_i32_0 = arith.constant 0 : i32
    return %arg0, %c0_i32 : i32, i32
  }
}

</mosaic_0001>

<bundles_post_ra>
// kernel: dnn_forward.1
= control target key start
LH: loop header
LB: loop body
LE: loop exit
PB: predicated region body
PF: predicated region fallthrough
CT: control target
= control target key end

     0   :  { %13 = vsyncpa [#allocation4], 0  ;;  %s3836_s0 = inlined_call_operand.vmem [shape: f32[5,8,256], index: 0, kind: input, shape index: {}]   ;;  %s3837_s1 = inlined_call_operand.vmem [shape: f32[16,5], index: 1, kind: input, shape index: {}]   ;;  %s3838_s2 = inlined_call_operand.vmem [shape: f32[16], index: 2, kind: input, shape index: {}]   ;;  %s3839_s3 = inlined_call_operand.vmem [shape: f32[8,16], index: 3, kind: input, shape index: {}]   ;;  %s3840_s4 = inlined_call_operand.vmem [shape: f32[8], index: 4, kind: input, shape index: {}]   ;;  %s3841_s5 = inlined_call_operand.vmem [shape: f32[1,8], index: 5, kind: input, shape index: {}]   ;;  %s3842_s6 = inlined_call_operand.<no memory space> [shape: f32[1], index: 6, kind: input, shape index: {}]   ;;  %s3843_s7 = inlined_call_operand.vmem [shape: f32[8,256], index: 7, kind: output, shape index: {}]  }
   0x1   :  { %14 = vsyncpa [#allocation6], 0  ;;  %s36_s26 = sshll.u32 %s3838_s2, 4  ;;  %s37_s26 = int_to_ptr.vmem [resolvable:$true] %s36_s26 }
   0x2   :  { %15 = vsyncpa [#allocation9], 0  ;;  %s56_s29 = sshll.u32 %s3840_s4, 4  ;;  %s1810_s30 = scalar_lea.vmem %s37_s26, 16  ;;  %s57_s29 = int_to_ptr.vmem [resolvable:$true] %s56_s29 }
   0x3   :  { %p1811_p0 = scmp.ne.s32.totalorder %s37_s26, %s1810_s30  ;;  %p1815_p1 = scmp.lt.s32.totalorder %s37_s26, %s37_s26 }
   0x4   :  { %p1816_p2 = scmp.lt.s32.totalorder %s1810_s30, %s1810_s30 }
   0x6   :  { %p1817_p3 = por %p1816_p2, %p1815_p1 }
   0x8   :  { %p1818_p4 = pnand %p1817_p3, %p1811_p0 }
   0xa   :  { %1821 = shalt.err (!%p1818_p4)
}
   0xb   :  { %s1876_s8 = smov [#allocation5]   ;;  %s1822_s9 = scalar_lea.vmem %s57_s29, 16 }
   0xc   :  { %39 = dma.vmem_to_smem %s37_s26, 16, %s1876_s8, [#allocation6]  }
   0xd   :  { %p1823_p5 = scmp.ne.s32.totalorder %s57_s29, %s1822_s9  ;;  %p1827_p6 = scmp.lt.s32.totalorder %s57_s29, %s57_s29 }
   0xe   :  { %p1828_p7 = scmp.lt.s32.totalorder %s1822_s9, %s1822_s9 }
  0x10   :  { %p1829_p8 = por %p1828_p7, %p1827_p6 }
  0x12   :  { %p1830_p9 = pnand %p1829_p8, %p1823_p5 }
  0x14   :  { %1833 = shalt.err (!%p1830_p9)
}
  0x15   :  { %s1877_s2 = smov [#allocation8]   ;;  %s23_s11 = sshll.u32 %s3837_s1, 4  ;;  %s24_s11 = int_to_ptr.vmem [resolvable:$true] %s23_s11 }
  0x16   :  { %59 = dma.vmem_to_smem %s57_s29, 16, %s1877_s2, [#allocation9]  }
  0x17   :  { %s46_s14 = sshll.u32 %s3839_s3, 4  ;;  %s1834_s15 = scalar_lea.vmem %s24_s11, 256  ;;  %s47_s14 = int_to_ptr.vmem [resolvable:$true] %s46_s14 }
  0x18   :  { %p1835_p10 = scmp.ne.s32.totalorder %s24_s11, %s1834_s15  ;;  %p1839_p11 = scmp.lt.s32.totalorder %s24_s11, %s24_s11 }
  0x19   :  { %p1840_p12 = scmp.lt.s32.totalorder %s1834_s15, %s1834_s15 }
  0x1b   :  { %p1841_p13 = por %p1840_p12, %p1839_p11 }
  0x1d   :  { %p1842_p0 = pnand %p1841_p13, %p1835_p10 }
  0x1f   :  { %1845 = shalt.err (!%p1842_p0)
}
  0x20   :  { %s1878_s16 = smov [#allocation3]   ;;  %s1879_s17 = smov 128  }
  0x21   :  { %s1880_s18 = smov 8   ;;  %s1846_s19 = scalar_lea.vmem %s47_s14, 128 }
  0x22   :  { %29 = dma.vmem_to_smem %s24_s11, 256, %s1878_s16, [#allocation4], %s1879_s17, %s1879_s17, %s1880_s18  }
  0x23   :  { %p1847_p1 = scmp.ne.s32.totalorder %s47_s14, %s1846_s19  ;;  %p1851_p2 = scmp.lt.s32.totalorder %s47_s14, %s47_s14 }
  0x24   :  { %p1852_p3 = scmp.lt.s32.totalorder %s1846_s19, %s1846_s19 }
  0x26   :  { %p1853_p4 = por %p1852_p3, %p1851_p2 }
  0x28   :  { %p1854_p5 = pnand %p1853_p4, %p1847_p1 }
  0x2a   :  { %1857 = shalt.err (!%p1854_p5)
}
  0x2b   :  { %s1881_s1 = smov [#allocation7]   ;;  %s66_s21 = sshll.u32 %s3841_s5, 4  ;;  %s67_s21 = int_to_ptr.vmem [resolvable:$true] %s66_s21 }
  0x2c   :  { %49 = dma.vmem_to_smem %s47_s14, 128, %s1881_s1, [#allocation6]  }
  0x2d   :  { %s1858_s22 = scalar_lea.vmem %s67_s21, 16  ;;  %p1863_p7 = scmp.lt.s32.totalorder %s67_s21, %s67_s21 }
  0x2e   :  { %p1859_p6 = scmp.ne.s32.totalorder %s67_s21, %s1858_s22  ;;  %p1864_p8 = scmp.lt.s32.totalorder %s1858_s22, %s1858_s22 }
  0x30   :  { %p1865_p9 = por %p1864_p8, %p1863_p7 }
  0x32   :  { %p1866_p10 = pnand %p1865_p9, %p1859_p6 }
  0x34   :  { %1869 = shalt.err (!%p1866_p10)
}
  0x35   :  { %s1882_s23 = smov [#allocation10]  }
  0x36   :  { %69 = dma.vmem_to_smem %s67_s21, 16, %s1882_s23, [#allocation9]  }
  0x37   :  { %1870 = dma.done.wait [#allocation4], 256  }
  0x38   :  { %1871 = vsyncadd [#allocation4], 4294967040 }
  0x39   :  { %1872 = dma.done.wait [#allocation6], 144  }
  0x3a   :  { %1873 = vsyncadd [#allocation6], 4294967152 }
  0x3b   :  { %1874 = dma.done.wait [#allocation9], 32  }
  0x3c   :  { %1875 = vsyncadd [#allocation9], 4294967264 }
  0x3d   :  { %87 = sfence }
  0x3e   :  { %s113_s24 = sld [smem:[#allocation3]]  ;;  %s1540_s25 = sld [smem:[#allocation3 + $0x1]]  ;;  %v1945_v0 = vld [vmem:[%s3836_s0] sm:$0xff]  ;;  %v1950_v1 = vld [vmem:[%s3836_s0 + $0x8] sm:$0xff]  ;;  %v1959_v2 = vld [vmem:[%s3836_s0 + $0x10] sm:$0xff] }
  0x3f   :  { %s1541_s5 = sld [smem:[#allocation3 + $0x2]]  ;;  %s1938_s26 = sld [smem:[#allocation3 + $0x3]]  ;;  %v1964_v3 = vld [vmem:[%s3836_s0 + $0x18] sm:$0xff]  ;;  %v1973_v4 = vld [vmem:[%s3836_s0 + $0x20] sm:$0xff]  ;;  %v1978_v5 = vld [vmem:[%s3836_s0 + $0x28] sm:$0xff] }
  0x40   :  { %s1940_s27 = sld [smem:[#allocation3 + $0x4]]  ;;  %s1952_s9 = sld [smem:[#allocation5]]  ;;  %v1985_v7 = vld [vmem:[%s3836_s0 + $0x30] sm:$0xff]  ;;  %v1990_v8 = vld [vmem:[%s3836_s0 + $0x38] sm:$0xff]  ;;  %v2005_v15 = vld [vmem:[%s3836_s0 + $0x40] sm:$0xff] }
  0x41   :  { %s1954_s2 = sld [smem:[#allocation7]]  ;;  %v2010_v16 = vld [vmem:[%s3836_s0 + $0x48] sm:$0xff]  ;;  %s2022_s4 = sld [smem:[#allocation3 + $0x83]] }
  0x42   :  { %s1966_s13 = sld [smem:[#allocation7 + $0x80]]  ;;  %s2024_s10 = sld [smem:[#allocation3 + $0x84]] }
  0x43   :  { %s1968_s14 = sld [smem:[#allocation7 + $0x100]]  ;;  %s2036_s11 = sld [smem:[#allocation5 + $0x1]] }
  0x44   :  { %v114_v6 = vstv %s113_s24  ;;  %s1980_s19 = sld [smem:[#allocation7 + $0x180]]  ;;  %v118_v11 = vstv %s1540_s25  ;;  %s2016_s25 = sld [smem:[#allocation3 + $0x81]] }
  0x45   :  { %v115_v9 = vmul.f32 %v114_v6, %v1945_v0  ;;  %v116_v10 = vmul.f32 %v114_v6, %v1950_v1  ;;  %s1994_s22 = sld [smem:[#allocation7 + $0x200]]  ;;  %v119_v12 = vmul.f32 %v1959_v2, %v118_v11  ;;  %v120_v13 = vmul.f32 %v1964_v3, %v118_v11  ;;  %s2038_s12 = sld [smem:[#allocation7 + $0x1]] }
  0x46   :  { %v124_v14 = vstv %s1541_s5  ;;  %s1998_s23 = sld [smem:[#allocation7 + $0x280]]  ;;  %v130_v19 = vstv %s1938_s26  ;;  %v136_v20 = vstv %s1940_s27  ;;  %s2018_s5 = sld [smem:[#allocation3 + $0x82]]  ;;  %v142_v29 = vstv %s1952_s9 }
  0x47   :  { %s2000_s24 = sld [smem:[#allocation3 + $0x80]]  ;;  %v125_v17 = vmul.f32 %v1973_v4, %v124_v14  ;;  %v126_v18 = vmul.f32 %v1978_v5, %v124_v14  ;;  %v121_v21 = vadd.f32 %v119_v12, %v115_v9  ;;  %v122_v22 = vadd.f32 %v120_v13, %v116_v10  ;;  %s2042_s15 = sld [smem:[#allocation7 + $0x81]] }
  0x48   :  { %v131_v23 = vmul.f32 %v1985_v7, %v130_v19  ;;  %v132_v24 = vmul.f32 %v1990_v8, %v130_v19  ;;  %s2026_s26 = sld [smem:[#allocation7 + $0x300]]  ;;  %v137_v27 = vmul.f32 %v2005_v15, %v136_v20  ;;  %v138_v28 = vmul.f32 %v2010_v16, %v136_v20  ;;  %s2044_s16 = sld [smem:[#allocation7 + $0x101]] }
  0x49   :  { %s2028_s27 = sld [smem:[#allocation7 + $0x380]]  ;;  %v127_v25 = vadd.f32 %v125_v17, %v121_v21  ;;  %v128_v26 = vadd.f32 %v126_v18, %v122_v22  ;;  %v148_v30 = vstv %s1954_s2  ;;  %v152_v31 = vstv %s1966_s13  ;;  %s2060_s9 = sld [smem:[#allocation7 + $0x181]] }
  0x4a   :  { %v156_v32 = vstv %s1968_s14  ;;  %v160_v35 = vstv %s1980_s19  ;;  %v184_v39 = vstv %s2016_s25  ;;  %v196_v47 = vstv %s2022_s4  ;;  %s2062_s2 = sld [smem:[#allocation3 + $0x100]]  ;;  %s2066_s13 = sld [smem:[#allocation7 + $0x201]] }
  0x4b   :  { %v133_v33 = vadd.f32 %v131_v23, %v127_v25  ;;  %v134_v34 = vadd.f32 %v132_v24, %v128_v26  ;;  %v185_v43 = vmul.f32 %v1959_v2, %v184_v39  ;;  %v186_v44 = vmul.f32 %v1964_v3, %v184_v39  ;;  %s2068_s14 = sld [smem:[#allocation3 + $0x101]]  ;;  %s2072_s17 = sld [smem:[#allocation3 + $0x102]] }
  0x4c   :  { %v190_v40 = vstv %s2018_s5  ;;  %v202_v48 = vstv %s2024_s10  ;;  %v164_v53 = vstv %s1994_s22  ;;  %v168_v54 = vstv %s1998_s23  ;;  %s2074_s18 = sld [smem:[#allocation3 + $0x103]]  ;;  %s2080_s19 = sld [smem:[#allocation7 + $0x281]] }
  0x4d   :  { %v180_v36 = vstv %s2000_s24  ;;  %v139_v41 = vadd.f32 %v137_v27, %v133_v33  ;;  %v140_v42 = vadd.f32 %v138_v28, %v134_v34  ;;  %v191_v45 = vmul.f32 %v1973_v4, %v190_v40  ;;  %s2082_s1 = sld [smem:[#allocation7 + $0x301]]  ;;  %s2094_s20 = sld [smem:[#allocation3 + $0x104]] }
  0x4e   :  { %v181_v37 = vmul.f32 %v180_v36, %v1945_v0  ;;  %v182_v38 = vmul.f32 %v180_v36, %v1950_v1  ;;  %v192_v46 = vmul.f32 %v1978_v5, %v190_v40  ;;  %v172_v55 = vstv %s2026_s26  ;;  %s2092_s3 = sld [smem:[#allocation7 + $0x381]]  ;;  %s2122_s21 = sld [smem:[#allocation5 + $0x2]] }
  0x4f   :  { %v143_v49 = vadd.f32 %v142_v29, %v139_v41  ;;  %v144_v50 = vadd.f32 %v142_v29, %v140_v42  ;;  %v176_v56 = vstv %s2028_s27  ;;  %v197_v59 = vmul.f32 %v1985_v7, %v196_v47  ;;  %s2124_s22 = sld [smem:[#allocation7 + $0x2]]  ;;  %s2152_s29 = sld [smem:[#allocation3 + $0x180]] }
  0x50   :  { %v187_v51 = vadd.f32 %v185_v43, %v181_v37  ;;  %v188_v52 = vadd.f32 %v186_v44, %v182_v38  ;;  %v198_v60 = vmul.f32 %v1990_v8, %v196_v47  ;;  %v203_v63 = vmul.f32 %v2005_v15, %v202_v48  ;;  %s2146_s23 = sld [smem:[#allocation7 + $0x82]]  ;;  %s2166_s30 = sld [smem:[#allocation3 + $0x181]] }
  0x51   :  { %v145_v57 = vmax.f32 %v143_v49, 0.0  ;;  %v146_v58 = vmax.f32 %v144_v50, 0.0  ;;  %v204_v6 = vmul.f32 %v2010_v16, %v202_v48  ;;  %v208_v9 = vstv %s2036_s11  ;;  %s2148_s24 = sld [smem:[#allocation7 + $0x102]]  ;;  %s2170_s25 = sld [smem:[#allocation3 + $0x183]] }
  0x52   :  { %v193_v61 = vadd.f32 %v191_v45, %v187_v51  ;;  %v194_v62 = vadd.f32 %v192_v46, %v188_v52  ;;  %v214_v10 = vstv %s2038_s12  ;;  %v220_v11 = vstv %s2042_s15  ;;  %s2150_s28 = sld [smem:[#allocation7 + $0x182]]  ;;  %s2172_s5 = sld [smem:[#allocation3 + $0x184]] }
  0x53   :  { %v226_v12 = vstv %s2044_s16  ;;  %v2084_v13 = vmul.f32 %v148_v30, %v145_v57  ;;  %v2086_v14 = vmul.f32 %v148_v30, %v146_v58  ;;  %v2088_v17 = vmul.f32 %v152_v31, %v145_v57  ;;  %s2168_s8 = sld [smem:[#allocation3 + $0x182]]  ;;  %s2222_s11 = sld [smem:[#allocation5 + $0x3]] }
  0x54   :  { %v2090_v18 = vmul.f32 %v152_v31, %v146_v58  ;;  %v2096_v19 = vmul.f32 %v156_v32, %v145_v57  ;;  %v2098_v20 = vmul.f32 %v156_v32, %v146_v58  ;;  %v2100_v21 = vmul.f32 %v160_v35, %v145_v57  ;;  %s2186_s4 = sld [smem:[#allocation7 + $0x202]]  ;;  %s2224_s12 = sld [smem:[#allocation7 + $0x3]] }
  0x55   :  { %v2102_v22 = vmul.f32 %v160_v35, %v146_v58  ;;  %v2104_v23 = vmul.f32 %v164_v53, %v145_v57  ;;  %v2106_v24 = vmul.f32 %v164_v53, %v146_v58  ;;  %v2108_v25 = vmul.f32 %v168_v54, %v145_v57  ;;  %s2188_s10 = sld [smem:[#allocation7 + $0x282]]  ;;  %s2230_s15 = sld [smem:[#allocation7 + $0x83]] }
  0x56   :  { %v2110_v26 = vmul.f32 %v168_v54, %v146_v58  ;;  %v2112_v27 = vmul.f32 %v172_v55, %v145_v57  ;;  %v2114_v28 = vmul.f32 %v172_v55, %v146_v58  ;;  %v199_v29 = vadd.f32 %v197_v59, %v193_v61  ;;  %s2202_s26 = sld [smem:[#allocation7 + $0x302]]  ;;  %s2232_s16 = sld [smem:[#allocation7 + $0x103]] }
  0x57   :  { %v200_v30 = vadd.f32 %v198_v60, %v194_v62  ;;  %v2116_v31 = vmul.f32 %v176_v56, %v145_v57  ;;  %v2118_v32 = vmul.f32 %v176_v56, %v146_v58  ;;  %v232_v33 = vstv %s2060_s9  ;;  %s2204_s27 = sld [smem:[#allocation7 + $0x382]]  ;;  %s2260_s9 = sld [smem:[#allocation7 + $0x183]] }
  0x58   :  { %v262_v34 = vstv %s2062_s2  ;;  %v205_v35 = vadd.f32 %v203_v63, %v199_v29  ;;  %v238_v37 = vstv %s2066_s13  ;;  %v266_v40 = vstv %s2068_s14  ;;  %s2262_s2 = sld [smem:[#allocation3 + $0x200]]  ;;  %s2264_s13 = sld [smem:[#allocation7 + $0x203]] }
  0x59   :  { %v206_v36 = vadd.f32 %v204_v6, %v200_v30  ;;  %v263_v38 = vmul.f32 %v262_v34, %v1945_v0  ;;  %v264_v39 = vmul.f32 %v262_v34, %v1950_v1  ;;  %v272_v41 = vstv %s2072_s17  ;;  %s2266_s14 = sld [smem:[#allocation3 + $0x201]]  ;;  %s2280_s17 = sld [smem:[#allocation3 + $0x202]] }
  0x5a   :  { %v278_v42 = vstv %s2074_s18  ;;  %v209_v43 = vadd.f32 %v208_v9, %v205_v35  ;;  %v267_v45 = vmul.f32 %v1959_v2, %v266_v40  ;;  %v268_v46 = vmul.f32 %v1964_v3, %v266_v40  ;;  %s2282_s18 = sld [smem:[#allocation3 + $0x203]] }
  0x5b   :  { %v210_v44 = vadd.f32 %v208_v9, %v206_v36  ;;  %v244_v47 = vstv %s2080_s19  ;;  %v250_v48 = vstv %s2082_s1  ;;  %v256_v49 = vstv %s2092_s3  ;;  %s2284_s19 = sld [smem:[#allocation7 + $0x283]] }
  0x5c   :  { %v284_v50 = vstv %s2094_s20  ;;  %v211_v51 = vmax.f32 %v209_v43, 0.0  ;;  %v273_v53 = vmul.f32 %v1973_v4, %v272_v41  ;;  %v274_v54 = vmul.f32 %v1978_v5, %v272_v41  ;;  %s2286_s1 = sld [smem:[#allocation7 + $0x303]]  ;;  %s2290_s20 = sld [smem:[#allocation3 + $0x204]] }
  0x5d   :  { %v212_v52 = vmax.f32 %v210_v44, 0.0  ;;  %v269_v55 = vadd.f32 %v267_v45, %v263_v38  ;;  %v270_v56 = vadd.f32 %v268_v46, %v264_v39  ;;  %v279_v57 = vmul.f32 %v1985_v7, %v278_v42  ;;  %s2288_s3 = sld [smem:[#allocation7 + $0x383]] }
  0x5e   :  { %v280_v58 = vmul.f32 %v1990_v8, %v278_v42  ;;  %v215_v59 = vmul.f32 %v214_v10, %v211_v51  ;;  %v221_v61 = vmul.f32 %v220_v11, %v211_v51  ;;  %v285_v63 = vmul.f32 %v2005_v15, %v284_v50 }
  0x5f   :  { %v216_v60 = vmul.f32 %v214_v10, %v212_v52  ;;  %v222_v62 = vmul.f32 %v220_v11, %v212_v52  ;;  %v286_v6 = vmul.f32 %v2010_v16, %v284_v50  ;;  %v290_v9 = vstv %s2122_s21  ;;  %s2330_s21 = sld [smem:[#allocation5 + $0x4]] }
  0x60   :  { %v296_v29 = vstv %s2124_s22  ;;  %v227_v30 = vmul.f32 %v226_v12, %v211_v51  ;;  %v228_v34 = vmul.f32 %v226_v12, %v212_v52  ;;  %v233_v35 = vmul.f32 %v232_v33, %v211_v51  ;;  %s2332_s22 = sld [smem:[#allocation7 + $0x4]] }
  0x61   :  { %v234_v36 = vmul.f32 %v232_v33, %v212_v52  ;;  %v2155_v10 = vadd.f32 %v215_v59, %v2084_v13  ;;  %v2158_v11 = vadd.f32 %v216_v60, %v2086_v14  ;;  %v2161_v38 = vadd.f32 %v221_v61, %v2088_v17 }
  0x62   :  { %v2164_v39 = vadd.f32 %v222_v62, %v2090_v18  ;;  %v239_v12 = vmul.f32 %v238_v37, %v211_v51  ;;  %v240_v33 = vmul.f32 %v238_v37, %v212_v52  ;;  %v245_v40 = vmul.f32 %v244_v47, %v211_v51 }
  0x63   :  { %v246_v41 = vmul.f32 %v244_v47, %v212_v52  ;;  %v251_v42 = vmul.f32 %v250_v48, %v211_v51  ;;  %v252_v13 = vmul.f32 %v250_v48, %v212_v52  ;;  %v257_v43 = vmul.f32 %v256_v49, %v211_v51 }
  0x64   :  { %v258_v44 = vmul.f32 %v256_v49, %v212_v52  ;;  %v2175_v14 = vadd.f32 %v227_v30, %v2096_v19  ;;  %v2178_v17 = vadd.f32 %v228_v34, %v2098_v20  ;;  %v2181_v18 = vadd.f32 %v233_v35, %v2100_v21 }
  0x65   :  { %v2184_v37 = vadd.f32 %v234_v36, %v2102_v22  ;;  %v2191_v45 = vadd.f32 %v239_v12, %v2104_v23  ;;  %v2194_v19 = vadd.f32 %v240_v33, %v2106_v24  ;;  %v2197_v20 = vadd.f32 %v245_v40, %v2108_v25 }
  0x66   :  { %v2200_v21 = vadd.f32 %v246_v41, %v2110_v26  ;;  %v2207_v22 = vadd.f32 %v251_v42, %v2112_v27  ;;  %v2210_v23 = vadd.f32 %v252_v13, %v2114_v28  ;;  %v275_v24 = vadd.f32 %v273_v53, %v269_v55 }
  0x67   :  { %v276_v46 = vadd.f32 %v274_v54, %v270_v56  ;;  %v2213_v25 = vadd.f32 %v257_v43, %v2116_v31  ;;  %v2216_v26 = vadd.f32 %v258_v44, %v2118_v32  ;;  %v302_v47 = vstv %s2146_s23  ;;  %s2362_s23 = sld [smem:[#allocation7 + $0x84]] }
  0x68   :  { %v308_v48 = vstv %s2148_s24  ;;  %v281_v49 = vadd.f32 %v279_v57, %v275_v24  ;;  %v314_v51 = vstv %s2150_s28  ;;  %v344_v27 = vstv %s2152_s29  ;;  %s2364_s24 = sld [smem:[#allocation7 + $0x104]]  ;;  %s2372_s29 = sld [smem:[#allocation3 + $0x280]] }
  0x69   :  { %v282_v50 = vadd.f32 %v280_v58, %v276_v46  ;;  %v345_v28 = vmul.f32 %v344_v27, %v1945_v0  ;;  %v346_v31 = vmul.f32 %v344_v27, %v1950_v1  ;;  %v348_v32 = vstv %s2166_s30  ;;  %s2370_s28 = sld [smem:[#allocation7 + $0x184]]  ;;  %s2386_s30 = sld [smem:[#allocation3 + $0x281]] }
  0x6a   :  { %v354_v52 = vstv %s2168_s8  ;;  %v287_v53 = vadd.f32 %v285_v63, %v281_v49  ;;  %v349_v55 = vmul.f32 %v1959_v2, %v348_v32  ;;  %v350_v56 = vmul.f32 %v1964_v3, %v348_v32  ;;  %s2388_s8 = sld [smem:[#allocation3 + $0x282]] }
  0x6b   :  { %v288_v54 = vadd.f32 %v286_v6, %v282_v50  ;;  %v355_v57 = vmul.f32 %v1973_v4, %v354_v52  ;;  %v356_v58 = vmul.f32 %v1978_v5, %v354_v52  ;;  %v360_v59 = vstv %s2170_s25  ;;  %s2390_s25 = sld [smem:[#allocation3 + $0x283]] }
  0x6c   :  { %v366_v60 = vstv %s2172_s5  ;;  %v291_v61 = vadd.f32 %v290_v9, %v287_v53  ;;  %v351_v30 = vadd.f32 %v349_v55, %v345_v28  ;;  %v352_v34 = vadd.f32 %v350_v56, %v346_v31  ;;  %s2392_s5 = sld [smem:[#allocation3 + $0x284]] }
  0x6d   :  { %v292_v62 = vadd.f32 %v290_v9, %v288_v54  ;;  %v320_v63 = vstv %s2186_s4  ;;  %v326_v6 = vstv %s2188_s10  ;;  %v332_v35 = vstv %s2202_s26  ;;  %s2406_s4 = sld [smem:[#allocation7 + $0x204]] }
  0x6e   :  { %v338_v36 = vstv %s2204_s27  ;;  %v293_v12 = vmax.f32 %v291_v61, 0.0  ;;  %v361_v40 = vmul.f32 %v1985_v7, %v360_v59  ;;  %v362_v41 = vmul.f32 %v1990_v8, %v360_v59  ;;  %s2408_s10 = sld [smem:[#allocation7 + $0x284]] }
  0x6f   :  { %v294_v33 = vmax.f32 %v292_v62, 0.0  ;;  %v357_v42 = vadd.f32 %v355_v57, %v351_v30  ;;  %v358_v13 = vadd.f32 %v356_v58, %v352_v34  ;;  %v367_v9 = vmul.f32 %v2005_v15, %v366_v60  ;;  %s2422_s26 = sld [smem:[#allocation7 + $0x304]] }
  0x70   :  { %v368_v43 = vmul.f32 %v2010_v16, %v366_v60  ;;  %v297_v44 = vmul.f32 %v296_v29, %v293_v12  ;;  %v303_v46 = vmul.f32 %v302_v47, %v293_v12  ;;  %v372_v50 = vstv %s2222_s11  ;;  %s2424_s27 = sld [smem:[#allocation7 + $0x384]]  ;;  %s2442_s11 = sld [smem:[#allocation5 + $0x5]] }
  0x71   :  { %v298_v24 = vmul.f32 %v296_v29, %v294_v33  ;;  %v304_v49 = vmul.f32 %v302_v47, %v294_v33  ;;  %v378_v27 = vstv %s2224_s12  ;;  %v384_v28 = vstv %s2230_s15  ;;  %s2444_s12 = sld [smem:[#allocation7 + $0x5]] }
  0x72   :  { %v390_v31 = vstv %s2232_s16  ;;  %v309_v32 = vmul.f32 %v308_v48, %v293_v12  ;;  %v310_v52 = vmul.f32 %v308_v48, %v294_v33  ;;  %v315_v53 = vmul.f32 %v314_v51, %v293_v12  ;;  %s2450_s15 = sld [smem:[#allocation7 + $0x85]] }
  0x73   :  { %v316_v54 = vmul.f32 %v314_v51, %v294_v33  ;;  %v2269_v29 = vadd.f32 %v297_v44, %v2155_v10  ;;  %v2272_v47 = vadd.f32 %v298_v24, %v2158_v11  ;;  %v2275_v55 = vadd.f32 %v303_v46, %v2161_v38  ;;  %s2452_s16 = sld [smem:[#allocation7 + $0x105]] }
  0x74   :  { %v2278_v56 = vadd.f32 %v304_v49, %v2164_v39  ;;  %v321_v48 = vmul.f32 %v320_v63, %v293_v12  ;;  %v322_v51 = vmul.f32 %v320_v63, %v294_v33  ;;  %v327_v57 = vmul.f32 %v326_v6, %v293_v12 }
  0x75   :  { %v328_v58 = vmul.f32 %v326_v6, %v294_v33  ;;  %v333_v10 = vmul.f32 %v332_v35, %v293_v12  ;;  %v334_v11 = vmul.f32 %v332_v35, %v294_v33  ;;  %v339_v59 = vmul.f32 %v338_v36, %v293_v12 }
  0x76   :  { %v340_v38 = vmul.f32 %v338_v36, %v294_v33  ;;  %v2293_v39 = vadd.f32 %v309_v32, %v2175_v14  ;;  %v2296_v60 = vadd.f32 %v310_v52, %v2178_v17  ;;  %v2299_v61 = vadd.f32 %v315_v53, %v2181_v18 }
  0x77   :  { %v2302_v62 = vadd.f32 %v316_v54, %v2184_v37  ;;  %v2305_v30 = vadd.f32 %v321_v48, %v2191_v45  ;;  %v2308_v34 = vadd.f32 %v322_v51, %v2194_v19  ;;  %v2311_v63 = vadd.f32 %v327_v57, %v2197_v20 }
  0x78   :  { %v2314_v14 = vadd.f32 %v328_v58, %v2200_v21  ;;  %v2317_v17 = vadd.f32 %v333_v10, %v2207_v22  ;;  %v2320_v18 = vadd.f32 %v334_v11, %v2210_v23  ;;  %v363_v37 = vadd.f32 %v361_v40, %v357_v42 }
  0x79   :  { %v364_v45 = vadd.f32 %v362_v41, %v358_v13  ;;  %v2323_v19 = vadd.f32 %v339_v59, %v2213_v25  ;;  %v2326_v20 = vadd.f32 %v340_v38, %v2216_v26  ;;  %v396_v6 = vstv %s2260_s9  ;;  %s2480_s9 = sld [smem:[#allocation7 + $0x185]] }
  0x7a   :  { %v426_v21 = vstv %s2262_s2  ;;  %v369_v22 = vadd.f32 %v367_v9, %v363_v37  ;;  %v402_v35 = vstv %s2264_s13  ;;  %v430_v12 = vstv %s2266_s14  ;;  %s2482_s2 = sld [smem:[#allocation3 + $0x300]]  ;;  %s2484_s13 = sld [smem:[#allocation7 + $0x205]] }
  0x7b   :  { %v370_v23 = vadd.f32 %v368_v43, %v364_v45  ;;  %v427_v36 = vmul.f32 %v426_v21, %v1945_v0  ;;  %v428_v25 = vmul.f32 %v426_v21, %v1950_v1  ;;  %v436_v26 = vstv %s2280_s17  ;;  %s2486_s14 = sld [smem:[#allocation3 + $0x301]]  ;;  %s2500_s17 = sld [smem:[#allocation3 + $0x302]] }
  0x7c   :  { %v442_v33 = vstv %s2282_s18  ;;  %v373_v40 = vadd.f32 %v372_v50, %v369_v22  ;;  %v431_v42 = vmul.f32 %v1959_v2, %v430_v12  ;;  %v432_v13 = vmul.f32 %v1964_v3, %v430_v12  ;;  %s2502_s18 = sld [smem:[#allocation3 + $0x303]] }
  0x7d   :  { %v374_v41 = vadd.f32 %v372_v50, %v370_v23  ;;  %v408_v9 = vstv %s2284_s19  ;;  %v414_v43 = vstv %s2286_s1  ;;  %v420_v44 = vstv %s2288_s3  ;;  %s2504_s19 = sld [smem:[#allocation7 + $0x285]] }
  0x7e   :  { %v448_v24 = vstv %s2290_s20  ;;  %v375_v46 = vmax.f32 %v373_v40, 0.0  ;;  %v437_v32 = vmul.f32 %v1973_v4, %v436_v26  ;;  %v438_v50 = vmul.f32 %v1978_v5, %v436_v26  ;;  %s2506_s1 = sld [smem:[#allocation7 + $0x305]]  ;;  %s2510_s20 = sld [smem:[#allocation3 + $0x304]] }
  0x7f   :  { %v376_v49 = vmax.f32 %v374_v41, 0.0  ;;  %v433_v52 = vadd.f32 %v431_v42, %v427_v36  ;;  %v434_v53 = vadd.f32 %v432_v13, %v428_v25  ;;  %v443_v54 = vmul.f32 %v1985_v7, %v442_v33  ;;  %s2508_s3 = sld [smem:[#allocation7 + $0x385]] }
  0x80   :  { %v444_v48 = vmul.f32 %v1990_v8, %v442_v33  ;;  %v379_v51 = vmul.f32 %v378_v27, %v375_v46  ;;  %v385_v58 = vmul.f32 %v384_v28, %v375_v46  ;;  %v449_v11 = vmul.f32 %v2005_v15, %v448_v24 }
  0x81   :  { %v380_v57 = vmul.f32 %v378_v27, %v376_v49  ;;  %v386_v10 = vmul.f32 %v384_v28, %v376_v49  ;;  %v450_v59 = vmul.f32 %v2010_v16, %v448_v24  ;;  %v454_v38 = vstv %s2330_s21  ;;  %s2550_s21 = sld [smem:[#allocation5 + $0x6]] }
  0x82   :  { %v460_v37 = vstv %s2332_s22  ;;  %v391_v45 = vmul.f32 %v390_v31, %v375_v46  ;;  %v392_v21 = vmul.f32 %v390_v31, %v376_v49  ;;  %v397_v22 = vmul.f32 %v396_v6, %v375_v46  ;;  %s2552_s22 = sld [smem:[#allocation7 + $0x6]] }
  0x83   :  { %v398_v27 = vmul.f32 %v396_v6, %v376_v49  ;;  %v2375_v28 = vadd.f32 %v379_v51, %v2269_v29  ;;  %v2378_v23 = vadd.f32 %v380_v57, %v2272_v47  ;;  %v2381_v36 = vadd.f32 %v385_v58, %v2275_v55 }
  0x84   :  { %v2384_v25 = vadd.f32 %v386_v10, %v2278_v56  ;;  %v403_v31 = vmul.f32 %v402_v35, %v375_v46  ;;  %v404_v6 = vmul.f32 %v402_v35, %v376_v49  ;;  %v409_v12 = vmul.f32 %v408_v9, %v375_v46 }
  0x85   :  { %v410_v26 = vmul.f32 %v408_v9, %v376_v49  ;;  %v415_v33 = vmul.f32 %v414_v43, %v375_v46  ;;  %v416_v29 = vmul.f32 %v414_v43, %v376_v49  ;;  %v421_v40 = vmul.f32 %v420_v44, %v375_v46 }
  0x86   :  { %v422_v41 = vmul.f32 %v420_v44, %v376_v49  ;;  %v2395_v47 = vadd.f32 %v391_v45, %v2293_v39  ;;  %v2398_v55 = vadd.f32 %v392_v21, %v2296_v60  ;;  %v2401_v56 = vadd.f32 %v397_v22, %v2299_v61 }
  0x87   :  { %v2404_v35 = vadd.f32 %v398_v27, %v2302_v62  ;;  %v2411_v42 = vadd.f32 %v403_v31, %v2305_v30  ;;  %v2414_v39 = vadd.f32 %v404_v6, %v2308_v34  ;;  %v2417_v60 = vadd.f32 %v409_v12, %v2311_v63 }
  0x88   :  { %v2420_v61 = vadd.f32 %v410_v26, %v2314_v14  ;;  %v2427_v62 = vadd.f32 %v415_v33, %v2317_v17  ;;  %v2430_v30 = vadd.f32 %v416_v29, %v2320_v18  ;;  %v439_v34 = vadd.f32 %v437_v32, %v433_v52 }
  0x89   :  { %v440_v13 = vadd.f32 %v438_v50, %v434_v53  ;;  %v2433_v63 = vadd.f32 %v421_v40, %v2323_v19  ;;  %v2436_v14 = vadd.f32 %v422_v41, %v2326_v20  ;;  %v466_v9 = vstv %s2362_s23  ;;  %s2582_s23 = sld [smem:[#allocation7 + $0x86]] }
  0x8a   :  { %v472_v43 = vstv %s2364_s24  ;;  %v445_v44 = vadd.f32 %v443_v54, %v439_v34  ;;  %v478_v46 = vstv %s2370_s28  ;;  %v508_v17 = vstv %s2372_s29  ;;  %s2584_s24 = sld [smem:[#allocation7 + $0x106]]  ;;  %s2592_s29 = sld [smem:[#allocation3 + $0x380]] }
  0x8b   :  { %v446_v24 = vadd.f32 %v444_v48, %v440_v13  ;;  %v509_v18 = vmul.f32 %v508_v17, %v1945_v0  ;;  %v510_v19 = vmul.f32 %v508_v17, %v1950_v1  ;;  %v512_v20 = vstv %s2386_s30  ;;  %s2590_s28 = sld [smem:[#allocation7 + $0x186]]  ;;  %s2606_s30 = sld [smem:[#allocation3 + $0x381]] }
  0x8c   :  { %v518_v49 = vstv %s2388_s8  ;;  %v451_v32 = vadd.f32 %v449_v11, %v445_v44  ;;  %v513_v52 = vmul.f32 %v1959_v2, %v512_v20  ;;  %v514_v53 = vmul.f32 %v1964_v3, %v512_v20  ;;  %s2608_s8 = sld [smem:[#allocation3 + $0x382]] }
  0x8d   :  { %v452_v50 = vadd.f32 %v450_v59, %v446_v24  ;;  %v519_v54 = vmul.f32 %v1973_v4, %v518_v49  ;;  %v520_v48 = vmul.f32 %v1978_v5, %v518_v49  ;;  %v524_v51 = vstv %s2390_s25  ;;  %s2610_s25 = sld [smem:[#allocation3 + $0x383]] }
  0x8e   :  { %v530_v57 = vstv %s2392_s5  ;;  %v455_v58 = vadd.f32 %v454_v38, %v451_v32  ;;  %v515_v45 = vadd.f32 %v513_v52, %v509_v18  ;;  %v516_v21 = vadd.f32 %v514_v53, %v510_v19  ;;  %s2612_s5 = sld [smem:[#allocation3 + $0x384]] }
  0x8f   :  { %v456_v10 = vadd.f32 %v454_v38, %v452_v50  ;;  %v484_v11 = vstv %s2406_s4  ;;  %v490_v59 = vstv %s2408_s10  ;;  %v496_v22 = vstv %s2422_s26  ;;  %s2626_s4 = sld [smem:[#allocation7 + $0x206]] }
  0x90   :  { %v502_v27 = vstv %s2424_s27  ;;  %v457_v31 = vmax.f32 %v455_v58, 0.0  ;;  %v525_v12 = vmul.f32 %v1985_v7, %v524_v51  ;;  %v526_v26 = vmul.f32 %v1990_v8, %v524_v51  ;;  %s2628_s10 = sld [smem:[#allocation7 + $0x286]] }
  0x91   :  { %v458_v6 = vmax.f32 %v456_v10, 0.0  ;;  %v521_v33 = vadd.f32 %v519_v54, %v515_v45  ;;  %v522_v29 = vadd.f32 %v520_v48, %v516_v21  ;;  %v531_v38 = vmul.f32 %v2005_v15, %v530_v57  ;;  %s2642_s26 = sld [smem:[#allocation7 + $0x306]] }
  0x92   :  { %v532_v40 = vmul.f32 %v2010_v16, %v530_v57  ;;  %v461_v41 = vmul.f32 %v460_v37, %v457_v31  ;;  %v467_v13 = vmul.f32 %v466_v9, %v457_v31  ;;  %v536_v24 = vstv %s2442_s11  ;;  %s2644_s27 = sld [smem:[#allocation7 + $0x386]]  ;;  %s2662_s11 = sld [smem:[#allocation5 + $0x7]] }
  0x93   :  { %v462_v34 = vmul.f32 %v460_v37, %v458_v6  ;;  %v468_v44 = vmul.f32 %v466_v9, %v458_v6  ;;  %v542_v17 = vstv %s2444_s12  ;;  %v548_v18 = vstv %s2450_s15  ;;  %s2664_s12 = sld [smem:[#allocation7 + $0x7]]  ;;  %s2756_s15 = sld [smem:[#allocation3 + $0x401]] }
  0x94   :  { %v554_v19 = vstv %s2452_s16  ;;  %v473_v20 = vmul.f32 %v472_v43, %v457_v31  ;;  %v474_v49 = vmul.f32 %v472_v43, %v458_v6  ;;  %v479_v32 = vmul.f32 %v478_v46, %v457_v31  ;;  %s2774_s16 = sld [smem:[#allocation7 + $0x287]] }
  0x95   :  { %v480_v50 = vmul.f32 %v478_v46, %v458_v6  ;;  %v2489_v37 = vadd.f32 %v461_v41, %v2375_v28  ;;  %v2492_v9 = vadd.f32 %v462_v34, %v2378_v23  ;;  %v2495_v52 = vadd.f32 %v467_v13, %v2381_v36 }
  0x96   :  { %v2498_v53 = vadd.f32 %v468_v44, %v2384_v25  ;;  %v485_v43 = vmul.f32 %v484_v11, %v457_v31  ;;  %v486_v46 = vmul.f32 %v484_v11, %v458_v6  ;;  %v491_v54 = vmul.f32 %v490_v59, %v457_v31 }
  0x97   :  { %v492_v48 = vmul.f32 %v490_v59, %v458_v6  ;;  %v497_v28 = vmul.f32 %v496_v22, %v457_v31  ;;  %v498_v23 = vmul.f32 %v496_v22, %v458_v6  ;;  %v503_v51 = vmul.f32 %v502_v27, %v457_v31 }
  0x98   :  { %v504_v36 = vmul.f32 %v502_v27, %v458_v6  ;;  %v2513_v25 = vadd.f32 %v473_v20, %v2395_v47  ;;  %v2516_v57 = vadd.f32 %v474_v49, %v2398_v55  ;;  %v2519_v58 = vadd.f32 %v479_v32, %v2401_v56 }
  0x99   :  { %v2522_v10 = vadd.f32 %v480_v50, %v2404_v35  ;;  %v2525_v45 = vadd.f32 %v485_v43, %v2411_v42  ;;  %v2528_v21 = vadd.f32 %v486_v46, %v2414_v39  ;;  %v2531_v11 = vadd.f32 %v491_v54, %v2417_v60 }
  0x9a   :  { %v2534_v47 = vadd.f32 %v492_v48, %v2420_v61  ;;  %v2537_v55 = vadd.f32 %v497_v28, %v2427_v62  ;;  %v2540_v56 = vadd.f32 %v498_v23, %v2430_v30  ;;  %v527_v35 = vadd.f32 %v525_v12, %v521_v33 }
  0x9b   :  { %v528_v42 = vadd.f32 %v526_v26, %v522_v29  ;;  %v2543_v39 = vadd.f32 %v503_v51, %v2433_v63  ;;  %v2546_v60 = vadd.f32 %v504_v36, %v2436_v14  ;;  %v560_v59 = vstv %s2480_s9  ;;  %s2776_s9 = sld [smem:[#allocation7 + $0x307]] }
  0x9c   :  { %v590_v61 = vstv %s2482_s2  ;;  %v533_v62 = vadd.f32 %v531_v38, %v527_v35  ;;  %v566_v22 = vstv %s2484_s13  ;;  %v594_v31 = vstv %s2486_s14  ;;  %s2680_s13 = sld [smem:[#allocation7 + $0x87]] }
  0x9d   :  { %v534_v30 = vadd.f32 %v532_v40, %v528_v42  ;;  %v591_v27 = vmul.f32 %v590_v61, %v1945_v0  ;;  %v592_v63 = vmul.f32 %v590_v61, %v1950_v1  ;;  %v600_v14 = vstv %s2500_s17  ;;  %s2682_s14 = sld [smem:[#allocation7 + $0x107]]  ;;  %s2780_s17 = sld [smem:[#allocation3 + $0x404]] }
  0x9e   :  { %v606_v6 = vstv %s2502_s18  ;;  %v537_v12 = vadd.f32 %v536_v24, %v533_v62  ;;  %v595_v33 = vmul.f32 %v1959_v2, %v594_v31  ;;  %v596_v29 = vmul.f32 %v1964_v3, %v594_v31  ;;  %s2778_s2 = sld [smem:[#allocation7 + $0x387]]  ;;  %s2820_s18 = sld [smem:[#allocation5 + $0x8]] }
  0x9f   :  { %v538_v26 = vadd.f32 %v536_v24, %v534_v30  ;;  %v572_v38 = vstv %s2504_s19  ;;  %v578_v40 = vstv %s2506_s1  ;;  %v584_v41 = vstv %s2508_s3  ;;  %s2822_s19 = sld [smem:[#allocation7 + $0x8]] }
  0xa0   :  { %v612_v0 = vstv %s2510_s20  ;;  %v539_v1 = vmax.f32 %v537_v12, 0.0  ;;  %v601_v13 = vmul.f32 %v1973_v4, %v600_v14  ;;  %v602_v44 = vmul.f32 %v1978_v5, %v600_v14  ;;  %s2852_s1 = sld [smem:[#allocation7 + $0x88]]  ;;  %s2878_s20 = sld [smem:[#allocation3 + $0x482]] }
  0xa1   :  { %v540_v34 = vmax.f32 %v538_v26, 0.0  ;;  %v597_v24 = vadd.f32 %v595_v33, %v591_v27  ;;  %v598_v2 = vadd.f32 %v596_v29, %v592_v63  ;;  %v607_v20 = vmul.f32 %v1985_v7, %v606_v6  ;;  %s2854_s3 = sld [smem:[#allocation7 + $0x108]] }
  0xa2   :  { %v608_v3 = vmul.f32 %v1990_v8, %v606_v6  ;;  %v543_v49 = vmul.f32 %v542_v17, %v539_v1  ;;  %v549_v50 = vmul.f32 %v548_v18, %v539_v1  ;;  %v613_v4 = vmul.f32 %v2005_v15, %v612_v0 }
  0xa3   :  { %v544_v32 = vmul.f32 %v542_v17, %v540_v34  ;;  %v550_v43 = vmul.f32 %v548_v18, %v540_v34  ;;  %v614_v46 = vmul.f32 %v2010_v16, %v612_v0  ;;  %v618_v5 = vstv %s2550_s21  ;;  %s2912_s21 = sld [smem:[#allocation7 + $0x308]] }
  0xa4   :  { %v624_v54 = vstv %s2552_s22  ;;  %v555_v7 = vmul.f32 %v554_v19, %v539_v1  ;;  %v556_v8 = vmul.f32 %v554_v19, %v540_v34  ;;  %v561_v48 = vmul.f32 %v560_v59, %v539_v1  ;;  %s2770_s22 = sld [smem:[#allocation3 + $0x402]] }
  0xa5   :  { %v562_v17 = vmul.f32 %v560_v59, %v540_v34  ;;  %v2595_v15 = vadd.f32 %v543_v49, %v2489_v37  ;;  %v2598_v16 = vadd.f32 %v544_v32, %v2492_v9  ;;  %v2601_v18 = vadd.f32 %v549_v50, %v2495_v52 }
  0xa6   :  { %v2604_v28 = vadd.f32 %v550_v43, %v2498_v53  ;;  %v567_v19 = vmul.f32 %v566_v22, %v539_v1  ;;  %v568_v23 = vmul.f32 %v566_v22, %v540_v34  ;;  %v573_v51 = vmul.f32 %v572_v38, %v539_v1 }
  0xa7   :  { %v574_v36 = vmul.f32 %v572_v38, %v540_v34  ;;  %v579_v35 = vmul.f32 %v578_v40, %v539_v1  ;;  %v580_v37 = vmul.f32 %v578_v40, %v540_v34  ;;  %v585_v42 = vmul.f32 %v584_v41, %v539_v1  ;;  %v2687_v38 = vld [vmem:[%s3836_s0 + $0x10] sm:$0xff]  ;;  %v2699_v1 = vld [vmem:[%s3836_s0 + $0x20] sm:$0xff] }
  0xa8   :  { %v586_v59 = vmul.f32 %v584_v41, %v540_v34  ;;  %v2615_v9 = vadd.f32 %v555_v7, %v2513_v25  ;;  %v2618_v52 = vadd.f32 %v556_v8, %v2516_v57  ;;  %v2621_v53 = vadd.f32 %v561_v48, %v2519_v58  ;;  %v2693_v41 = vld [vmem:[%s3836_s0 + $0x18] sm:$0xff]  ;;  %v2721_v48 = vld [vmem:[%s3836_s0 + $0x30] sm:$0xff] }
  0xa9   :  { %v2624_v61 = vadd.f32 %v562_v17, %v2522_v10  ;;  %v2631_v62 = vadd.f32 %v567_v19, %v2525_v45  ;;  %v2634_v25 = vadd.f32 %v568_v23, %v2528_v21  ;;  %v2637_v57 = vadd.f32 %v573_v51, %v2531_v11  ;;  %v2727_v17 = vld [vmem:[%s3836_s0 + $0x38] sm:$0xff] }
  0xaa   :  { %v2640_v58 = vadd.f32 %v574_v36, %v2534_v47  ;;  %v2647_v10 = vadd.f32 %v579_v35, %v2537_v55  ;;  %v2650_v45 = vadd.f32 %v580_v37, %v2540_v56  ;;  %v603_v30 = vadd.f32 %v601_v13, %v597_v24  ;;  %v2669_v56 = vld [vmem:[%s3836_s0] sm:$0xff]  ;;  %v2705_v13 = vld [vmem:[%s3836_s0 + $0x28] sm:$0xff] }
  0xab   :  { %v604_v21 = vadd.f32 %v602_v44, %v598_v2  ;;  %v2653_v11 = vadd.f32 %v585_v42, %v2543_v39  ;;  %v2656_v47 = vadd.f32 %v586_v59, %v2546_v60  ;;  %v630_v22 = vstv %s2582_s23  ;;  %v2675_v60 = vld [vmem:[%s3836_s0 + $0x8] sm:$0xff]  ;;  %v2733_v36 = vld [vmem:[%s3836_s0 + $0x40] sm:$0xff]  ;;  %s2880_s23 = sld [smem:[#allocation3 + $0x483]] }
  0xac   :  { %v636_v27 = vstv %s2584_s24  ;;  %v609_v63 = vadd.f32 %v607_v20, %v603_v30  ;;  %v642_v14 = vstv %s2590_s28  ;;  %v672_v55 = vstv %s2592_s29  ;;  %v2739_v37 = vld [vmem:[%s3836_s0 + $0x48] sm:$0xff]  ;;  %s2882_s24 = sld [smem:[#allocation3 + $0x484]]  ;;  %s2896_s28 = sld [smem:[#allocation7 + $0x208]] }
  0xad   :  { %v610_v31 = vadd.f32 %v608_v3, %v604_v21  ;;  %v673_v39 = vmul.f32 %v2669_v56, %v672_v55  ;;  %v674_v6 = vmul.f32 %v2675_v60, %v672_v55  ;;  %v676_v12 = vstv %s2606_s30  ;;  %s2898_s29 = sld [smem:[#allocation7 + $0x288]] }
  0xae   :  { %v682_v26 = vstv %s2608_s8  ;;  %v615_v33 = vadd.f32 %v613_v4, %v609_v63  ;;  %v677_v40 = vmul.f32 %v2687_v38, %v676_v12  ;;  %v678_v0 = vmul.f32 %v2693_v41, %v676_v12  ;;  %s2914_s30 = sld [smem:[#allocation7 + $0x388]]  ;;  %s2932_s8 = sld [smem:[#allocation5 + $0x9]] }
  0xaf   :  { %v616_v29 = vadd.f32 %v614_v46, %v610_v31  ;;  %v683_v34 = vmul.f32 %v2699_v1, %v682_v26  ;;  %v684_v44 = vmul.f32 %v2705_v13, %v682_v26  ;;  %v688_v24 = vstv %s2610_s25  ;;  %s2934_s25 = sld [smem:[#allocation7 + $0x9]] }
  0xb0   :  { %v694_v2 = vstv %s2612_s5  ;;  %v619_v20 = vadd.f32 %v618_v5, %v615_v33  ;;  %v679_v49 = vadd.f32 %v677_v40, %v673_v39  ;;  %v680_v32 = vadd.f32 %v678_v0, %v674_v6  ;;  %s2940_s5 = sld [smem:[#allocation7 + $0x89]] }
  0xb1   :  { %v620_v3 = vadd.f32 %v618_v5, %v616_v29  ;;  %v648_v50 = vstv %s2626_s4  ;;  %v654_v43 = vstv %s2628_s10  ;;  %v660_v4 = vstv %s2642_s26  ;;  %s2750_s10 = sld [smem:[#allocation7 + $0x187]]  ;;  %s2752_s26 = sld [smem:[#allocation3 + $0x400]] }
  0xb2   :  { %v666_v46 = vstv %s2644_s27  ;;  %v621_v7 = vmax.f32 %v619_v20, 0.0  ;;  %v689_v5 = vmul.f32 %v2721_v48, %v688_v24  ;;  %v690_v19 = vmul.f32 %v2727_v17, %v688_v24  ;;  %s2754_s27 = sld [smem:[#allocation7 + $0x207]]  ;;  %s2942_s4 = sld [smem:[#allocation7 + $0x109]] }
  0xb3   :  { %v622_v8 = vmax.f32 %v620_v3, 0.0  ;;  %v685_v23 = vadd.f32 %v683_v34, %v679_v49  ;;  %v686_v51 = vadd.f32 %v684_v44, %v680_v32  ;;  %v695_v35 = vmul.f32 %v2733_v36, %v694_v2 }
  0xb4   :  { %v696_v42 = vmul.f32 %v2739_v37, %v694_v2  ;;  %v625_v59 = vmul.f32 %v624_v54, %v621_v7  ;;  %v631_v21 = vmul.f32 %v630_v22, %v621_v7  ;;  %v700_v31 = vstv %s2662_s11  ;;  %s2772_s11 = sld [smem:[#allocation3 + $0x403]] }
  0xb5   :  { %v626_v30 = vmul.f32 %v624_v54, %v622_v8  ;;  %v632_v63 = vmul.f32 %v630_v22, %v622_v8  ;;  %v706_v55 = vstv %s2664_s12  ;;  %v712_v39 = vstv %s2680_s13  ;;  %s2860_s12 = sld [smem:[#allocation7 + $0x188]] }
  0xb6   :  { %v718_v6 = vstv %s2682_s14  ;;  %v637_v12 = vmul.f32 %v636_v27, %v621_v7  ;;  %v638_v26 = vmul.f32 %v636_v27, %v622_v8  ;;  %v643_v33 = vmul.f32 %v642_v14, %v621_v7  ;;  %s2862_s13 = sld [smem:[#allocation3 + $0x480]]  ;;  %s2876_s14 = sld [smem:[#allocation3 + $0x481]] }
  0xb7   :  { %v644_v29 = vmul.f32 %v642_v14, %v622_v8  ;;  %v2759_v54 = vadd.f32 %v625_v59, %v2595_v15  ;;  %v2762_v22 = vadd.f32 %v626_v30, %v2598_v16  ;;  %v2765_v40 = vadd.f32 %v631_v21, %v2601_v18 }
  0xb8   :  { %v2768_v0 = vadd.f32 %v632_v63, %v2604_v28  ;;  %v649_v27 = vmul.f32 %v648_v50, %v621_v7  ;;  %v650_v14 = vmul.f32 %v648_v50, %v622_v8  ;;  %v655_v34 = vmul.f32 %v654_v43, %v621_v7 }
  0xb9   :  { %v656_v44 = vmul.f32 %v654_v43, %v622_v8  ;;  %v661_v15 = vmul.f32 %v660_v4, %v621_v7  ;;  %v662_v16 = vmul.f32 %v660_v4, %v622_v8  ;;  %v667_v24 = vmul.f32 %v666_v46, %v621_v7 }
  0xba   :  { %v668_v18 = vmul.f32 %v666_v46, %v622_v8  ;;  %v2783_v28 = vadd.f32 %v637_v12, %v2615_v9  ;;  %v2786_v2 = vadd.f32 %v638_v26, %v2618_v52  ;;  %v2789_v20 = vadd.f32 %v643_v33, %v2621_v53 }
  0xbb   :  { %v2792_v3 = vadd.f32 %v644_v29, %v2624_v61  ;;  %v2795_v49 = vadd.f32 %v649_v27, %v2631_v62  ;;  %v2798_v32 = vadd.f32 %v650_v14, %v2634_v25  ;;  %v2801_v50 = vadd.f32 %v655_v34, %v2637_v57 }
  0xbc   :  { %v2804_v9 = vadd.f32 %v656_v44, %v2640_v58  ;;  %v2807_v52 = vadd.f32 %v661_v15, %v2647_v10  ;;  %v2810_v53 = vadd.f32 %v662_v16, %v2650_v45  ;;  %v691_v61 = vadd.f32 %v689_v5, %v685_v23 }
  0xbd   :  { %v692_v62 = vadd.f32 %v690_v19, %v686_v51  ;;  %v2813_v25 = vadd.f32 %v667_v24, %v2653_v11  ;;  %v2816_v57 = vadd.f32 %v668_v18, %v2656_v47  ;;  %v724_v43 = vstv %s2750_s10  ;;  %s2970_s10 = sld [smem:[#allocation7 + $0x189]] }
  0xbe   :  { %v754_v58 = vstv %s2752_s26  ;;  %v697_v10 = vadd.f32 %v695_v35, %v691_v61  ;;  %v730_v4 = vstv %s2754_s27  ;;  %v758_v7 = vstv %s2756_s15  ;;  %s2972_s26 = sld [smem:[#allocation3 + $0x500]]  ;;  %s2974_s27 = sld [smem:[#allocation7 + $0x209]] }
  0xbf   :  { %v698_v45 = vadd.f32 %v696_v42, %v692_v62  ;;  %v755_v46 = vmul.f32 %v2669_v56, %v754_v58  ;;  %v756_v11 = vmul.f32 %v2675_v60, %v754_v58  ;;  %v764_v47 = vstv %s2770_s22  ;;  %s2976_s15 = sld [smem:[#allocation3 + $0x501]]  ;;  %s2990_s22 = sld [smem:[#allocation3 + $0x502]] }
  0xc0   :  { %v770_v8 = vstv %s2772_s11  ;;  %v701_v5 = vadd.f32 %v700_v31, %v697_v10  ;;  %v759_v23 = vmul.f32 %v2687_v38, %v758_v7  ;;  %v760_v51 = vmul.f32 %v2693_v41, %v758_v7  ;;  %s2992_s11 = sld [smem:[#allocation3 + $0x503]] }
  0xc1   :  { %v702_v19 = vadd.f32 %v700_v31, %v698_v45  ;;  %v736_v35 = vstv %s2774_s16  ;;  %v742_v42 = vstv %s2776_s9  ;;  %v748_v59 = vstv %s2778_s2  ;;  %s2994_s16 = sld [smem:[#allocation7 + $0x289]] }
  0xc2   :  { %v776_v30 = vstv %s2780_s17  ;;  %v703_v21 = vmax.f32 %v701_v5, 0.0  ;;  %v765_v12 = vmul.f32 %v2699_v1, %v764_v47  ;;  %v766_v31 = vmul.f32 %v2705_v13, %v764_v47  ;;  %s2996_s9 = sld [smem:[#allocation7 + $0x309]]  ;;  %s3000_s17 = sld [smem:[#allocation3 + $0x504]] }
  0xc3   :  { %v704_v63 = vmax.f32 %v702_v19, 0.0  ;;  %v761_v26 = vadd.f32 %v759_v23, %v755_v46  ;;  %v762_v33 = vadd.f32 %v760_v51, %v756_v11  ;;  %v771_v29 = vmul.f32 %v2721_v48, %v770_v8  ;;  %s2998_s2 = sld [smem:[#allocation7 + $0x389]] }
  0xc4   :  { %v772_v27 = vmul.f32 %v2727_v17, %v770_v8  ;;  %v707_v14 = vmul.f32 %v706_v55, %v703_v21  ;;  %v713_v44 = vmul.f32 %v712_v39, %v703_v21  ;;  %v777_v16 = vmul.f32 %v2733_v36, %v776_v30 }
  0xc5   :  { %v708_v34 = vmul.f32 %v706_v55, %v704_v63  ;;  %v714_v15 = vmul.f32 %v712_v39, %v704_v63  ;;  %v778_v24 = vmul.f32 %v2739_v37, %v776_v30  ;;  %v782_v18 = vstv %s2820_s18  ;;  %s3040_s18 = sld [smem:[#allocation5 + $0xa]] }
  0xc6   :  { %v788_v61 = vstv %s2822_s19  ;;  %v719_v62 = vmul.f32 %v718_v6, %v703_v21  ;;  %v720_v58 = vmul.f32 %v718_v6, %v704_v63  ;;  %v725_v10 = vmul.f32 %v724_v43, %v703_v21  ;;  %s3042_s19 = sld [smem:[#allocation7 + $0xa]] }
  0xc7   :  { %v726_v55 = vmul.f32 %v724_v43, %v704_v63  ;;  %v2865_v39 = vadd.f32 %v707_v14, %v2759_v54  ;;  %v2868_v45 = vadd.f32 %v708_v34, %v2762_v22  ;;  %v2871_v46 = vadd.f32 %v713_v44, %v2765_v40 }
  0xc8   :  { %v2874_v11 = vadd.f32 %v714_v15, %v2768_v0  ;;  %v731_v6 = vmul.f32 %v730_v4, %v703_v21  ;;  %v732_v43 = vmul.f32 %v730_v4, %v704_v63  ;;  %v737_v7 = vmul.f32 %v736_v35, %v703_v21 }
  0xc9   :  { %v738_v47 = vmul.f32 %v736_v35, %v704_v63  ;;  %v743_v8 = vmul.f32 %v742_v42, %v703_v21  ;;  %v744_v54 = vmul.f32 %v742_v42, %v704_v63  ;;  %v749_v5 = vmul.f32 %v748_v59, %v703_v21 }
  0xca   :  { %v750_v19 = vmul.f32 %v748_v59, %v704_v63  ;;  %v2885_v22 = vadd.f32 %v719_v62, %v2783_v28  ;;  %v2888_v40 = vadd.f32 %v720_v58, %v2786_v2  ;;  %v2891_v0 = vadd.f32 %v725_v10, %v2789_v20 }
  0xcb   :  { %v2894_v4 = vadd.f32 %v726_v55, %v2792_v3  ;;  %v2901_v23 = vadd.f32 %v731_v6, %v2795_v49  ;;  %v2904_v28 = vadd.f32 %v732_v43, %v2798_v32  ;;  %v2907_v2 = vadd.f32 %v737_v7, %v2801_v50 }
  0xcc   :  { %v2910_v20 = vadd.f32 %v738_v47, %v2804_v9  ;;  %v2917_v3 = vadd.f32 %v743_v8, %v2807_v52  ;;  %v2920_v49 = vadd.f32 %v744_v54, %v2810_v53  ;;  %v767_v32 = vadd.f32 %v765_v12, %v761_v26 }
  0xcd   :  { %v768_v51 = vadd.f32 %v766_v31, %v762_v33  ;;  %v2923_v50 = vadd.f32 %v749_v5, %v2813_v25  ;;  %v2926_v9 = vadd.f32 %v750_v19, %v2816_v57  ;;  %v794_v35 = vstv %s2852_s1  ;;  %s3072_s1 = sld [smem:[#allocation7 + $0x8a]] }
  0xce   :  { %v800_v42 = vstv %s2854_s3  ;;  %v773_v59 = vadd.f32 %v771_v29, %v767_v32  ;;  %v806_v21 = vstv %s2860_s12  ;;  %v836_v52 = vstv %s2862_s13  ;;  %s3074_s3 = sld [smem:[#allocation7 + $0x10a]]  ;;  %s3082_s13 = sld [smem:[#allocation3 + $0x580]] }
  0xcf   :  { %v774_v30 = vadd.f32 %v772_v27, %v768_v51  ;;  %v837_v53 = vmul.f32 %v2669_v56, %v836_v52  ;;  %v838_v25 = vmul.f32 %v2675_v60, %v836_v52  ;;  %v840_v57 = vstv %s2876_s14  ;;  %s3080_s12 = sld [smem:[#allocation7 + $0x18a]]  ;;  %s3096_s14 = sld [smem:[#allocation3 + $0x581]] }
  0xd0   :  { %v846_v63 = vstv %s2878_s20  ;;  %v779_v12 = vadd.f32 %v777_v16, %v773_v59  ;;  %v841_v26 = vmul.f32 %v2687_v38, %v840_v57  ;;  %v842_v33 = vmul.f32 %v2693_v41, %v840_v57  ;;  %s3098_s20 = sld [smem:[#allocation3 + $0x582]] }
  0xd1   :  { %v780_v31 = vadd.f32 %v778_v24, %v774_v30  ;;  %v847_v29 = vmul.f32 %v2699_v1, %v846_v63  ;;  %v848_v27 = vmul.f32 %v2705_v13, %v846_v63  ;;  %v852_v14 = vstv %s2880_s23  ;;  %s3100_s23 = sld [smem:[#allocation3 + $0x583]] }
  0xd2   :  { %v858_v34 = vstv %s2882_s24  ;;  %v783_v44 = vadd.f32 %v782_v18, %v779_v12  ;;  %v843_v62 = vadd.f32 %v841_v26, %v837_v53  ;;  %v844_v58 = vadd.f32 %v842_v33, %v838_v25  ;;  %s3102_s24 = sld [smem:[#allocation3 + $0x584]] }
  0xd3   :  { %v784_v15 = vadd.f32 %v782_v18, %v780_v31  ;;  %v812_v16 = vstv %s2896_s28  ;;  %v818_v24 = vstv %s2898_s29  ;;  %v824_v10 = vstv %s2912_s21  ;;  %s3116_s28 = sld [smem:[#allocation7 + $0x20a]] }
  0xd4   :  { %v830_v55 = vstv %s2914_s30  ;;  %v785_v6 = vmax.f32 %v783_v44, 0.0  ;;  %v853_v7 = vmul.f32 %v2721_v48, %v852_v14  ;;  %v854_v47 = vmul.f32 %v2727_v17, %v852_v14  ;;  %s3118_s29 = sld [smem:[#allocation7 + $0x28a]] }
  0xd5   :  { %v786_v43 = vmax.f32 %v784_v15, 0.0  ;;  %v849_v8 = vadd.f32 %v847_v29, %v843_v62  ;;  %v850_v54 = vadd.f32 %v848_v27, %v844_v58  ;;  %v859_v18 = vmul.f32 %v2733_v36, %v858_v34  ;;  %s3132_s21 = sld [smem:[#allocation7 + $0x30a]] }
  0xd6   :  { %v860_v5 = vmul.f32 %v2739_v37, %v858_v34  ;;  %v789_v19 = vmul.f32 %v788_v61, %v785_v6  ;;  %v795_v51 = vmul.f32 %v794_v35, %v785_v6  ;;  %v864_v30 = vstv %s2932_s8  ;;  %s3134_s30 = sld [smem:[#allocation7 + $0x38a]]  ;;  %s3152_s8 = sld [smem:[#allocation5 + $0xb]] }
  0xd7   :  { %v790_v32 = vmul.f32 %v788_v61, %v786_v43  ;;  %v796_v59 = vmul.f32 %v794_v35, %v786_v43  ;;  %v870_v52 = vstv %s2934_s25  ;;  %v876_v53 = vstv %s2940_s5  ;;  %s3154_s25 = sld [smem:[#allocation7 + $0xb]] }
  0xd8   :  { %v882_v25 = vstv %s2942_s4  ;;  %v801_v57 = vmul.f32 %v800_v42, %v785_v6  ;;  %v802_v63 = vmul.f32 %v800_v42, %v786_v43  ;;  %v807_v12 = vmul.f32 %v806_v21, %v785_v6  ;;  %s3160_s5 = sld [smem:[#allocation7 + $0x8b]] }
  0xd9   :  { %v808_v31 = vmul.f32 %v806_v21, %v786_v43  ;;  %v2979_v61 = vadd.f32 %v789_v19, %v2865_v39  ;;  %v2982_v35 = vadd.f32 %v790_v32, %v2868_v45  ;;  %v2985_v26 = vadd.f32 %v795_v51, %v2871_v46  ;;  %s3162_s4 = sld [smem:[#allocation7 + $0x10b]] }
  0xda   :  { %v2988_v33 = vadd.f32 %v796_v59, %v2874_v11  ;;  %v813_v42 = vmul.f32 %v812_v16, %v785_v6  ;;  %v814_v21 = vmul.f32 %v812_v16, %v786_v43  ;;  %v819_v29 = vmul.f32 %v818_v24, %v785_v6 }
  0xdb   :  { %v820_v27 = vmul.f32 %v818_v24, %v786_v43  ;;  %v825_v39 = vmul.f32 %v824_v10, %v785_v6  ;;  %v826_v45 = vmul.f32 %v824_v10, %v786_v43  ;;  %v831_v14 = vmul.f32 %v830_v55, %v785_v6 }
  0xdc   :  { %v832_v46 = vmul.f32 %v830_v55, %v786_v43  ;;  %v3003_v11 = vadd.f32 %v801_v57, %v2885_v22  ;;  %v3006_v34 = vadd.f32 %v802_v63, %v2888_v40  ;;  %v3009_v44 = vadd.f32 %v807_v12, %v2891_v0 }
  0xdd   :  { %v3012_v15 = vadd.f32 %v808_v31, %v2894_v4  ;;  %v3015_v62 = vadd.f32 %v813_v42, %v2901_v23  ;;  %v3018_v58 = vadd.f32 %v814_v21, %v2904_v28  ;;  %v3021_v16 = vadd.f32 %v819_v29, %v2907_v2 }
  0xde   :  { %v3024_v22 = vadd.f32 %v820_v27, %v2910_v20  ;;  %v3027_v40 = vadd.f32 %v825_v39, %v2917_v3  ;;  %v3030_v0 = vadd.f32 %v826_v45, %v2920_v49  ;;  %v855_v4 = vadd.f32 %v853_v7, %v849_v8 }
  0xdf   :  { %v856_v23 = vadd.f32 %v854_v47, %v850_v54  ;;  %v3033_v28 = vadd.f32 %v831_v14, %v2923_v50  ;;  %v3036_v2 = vadd.f32 %v832_v46, %v2926_v9  ;;  %v888_v24 = vstv %s2970_s10  ;;  %s3190_s10 = sld [smem:[#allocation7 + $0x18b]] }
  0xe0   :  { %v918_v20 = vstv %s2972_s26  ;;  %v861_v3 = vadd.f32 %v859_v18, %v855_v4  ;;  %v894_v10 = vstv %s2974_s27  ;;  %v922_v6 = vstv %s2976_s15  ;;  %s3192_s26 = sld [smem:[#allocation3 + $0x600]]  ;;  %s3194_s27 = sld [smem:[#allocation7 + $0x20b]] }
  0xe1   :  { %v862_v49 = vadd.f32 %v860_v5, %v856_v23  ;;  %v919_v55 = vmul.f32 %v2669_v56, %v918_v20  ;;  %v920_v50 = vmul.f32 %v2675_v60, %v918_v20  ;;  %v928_v9 = vstv %s2990_s22  ;;  %s3196_s15 = sld [smem:[#allocation3 + $0x601]]  ;;  %s3210_s22 = sld [smem:[#allocation3 + $0x602]] }
  0xe2   :  { %v934_v43 = vstv %s2992_s11  ;;  %v865_v7 = vadd.f32 %v864_v30, %v861_v3  ;;  %v923_v8 = vmul.f32 %v2687_v38, %v922_v6  ;;  %v924_v54 = vmul.f32 %v2693_v41, %v922_v6  ;;  %s3212_s11 = sld [smem:[#allocation3 + $0x603]] }
  0xe3   :  { %v866_v47 = vadd.f32 %v864_v30, %v862_v49  ;;  %v900_v18 = vstv %s2994_s16  ;;  %v906_v5 = vstv %s2996_s9  ;;  %v912_v19 = vstv %s2998_s2  ;;  %s3214_s16 = sld [smem:[#allocation7 + $0x28b]] }
  0xe4   :  { %v940_v32 = vstv %s3000_s17  ;;  %v867_v51 = vmax.f32 %v865_v7, 0.0  ;;  %v929_v57 = vmul.f32 %v2699_v1, %v928_v9  ;;  %v930_v30 = vmul.f32 %v2705_v13, %v928_v9  ;;  %s3216_s9 = sld [smem:[#allocation7 + $0x30b]]  ;;  %s3220_s17 = sld [smem:[#allocation3 + $0x604]] }
  0xe5   :  { %v868_v59 = vmax.f32 %v866_v47, 0.0  ;;  %v925_v63 = vadd.f32 %v923_v8, %v919_v55  ;;  %v926_v12 = vadd.f32 %v924_v54, %v920_v50  ;;  %v935_v31 = vmul.f32 %v2721_v48, %v934_v43  ;;  %s3218_s2 = sld [smem:[#allocation7 + $0x38b]] }
  0xe6   :  { %v936_v42 = vmul.f32 %v2727_v17, %v934_v43  ;;  %v871_v21 = vmul.f32 %v870_v52, %v867_v51  ;;  %v877_v27 = vmul.f32 %v876_v53, %v867_v51  ;;  %v941_v45 = vmul.f32 %v2733_v36, %v940_v32 }
  0xe7   :  { %v872_v29 = vmul.f32 %v870_v52, %v868_v59  ;;  %v878_v39 = vmul.f32 %v876_v53, %v868_v59  ;;  %v942_v14 = vmul.f32 %v2739_v37, %v940_v32  ;;  %v946_v46 = vstv %s3040_s18  ;;  %s3260_s18 = sld [smem:[#allocation5 + $0xc]] }
  0xe8   :  { %v952_v4 = vstv %s3042_s19  ;;  %v883_v23 = vmul.f32 %v882_v25, %v867_v51  ;;  %v884_v20 = vmul.f32 %v882_v25, %v868_v59  ;;  %v889_v3 = vmul.f32 %v888_v24, %v867_v51  ;;  %s3262_s19 = sld [smem:[#allocation7 + $0xc]] }
  0xe9   :  { %v890_v52 = vmul.f32 %v888_v24, %v868_v59  ;;  %v3085_v53 = vadd.f32 %v871_v21, %v2979_v61  ;;  %v3088_v49 = vadd.f32 %v872_v29, %v2982_v35  ;;  %v3091_v55 = vadd.f32 %v877_v27, %v2985_v26 }
  0xea   :  { %v3094_v50 = vadd.f32 %v878_v39, %v2988_v33  ;;  %v895_v25 = vmul.f32 %v894_v10, %v867_v51  ;;  %v896_v24 = vmul.f32 %v894_v10, %v868_v59  ;;  %v901_v6 = vmul.f32 %v900_v18, %v867_v51 }
  0xeb   :  { %v902_v9 = vmul.f32 %v900_v18, %v868_v59  ;;  %v907_v43 = vmul.f32 %v906_v5, %v867_v51  ;;  %v908_v61 = vmul.f32 %v906_v5, %v868_v59  ;;  %v913_v7 = vmul.f32 %v912_v19, %v867_v51 }
  0xec   :  { %v914_v47 = vmul.f32 %v912_v19, %v868_v59  ;;  %v3105_v35 = vadd.f32 %v883_v23, %v3003_v11  ;;  %v3108_v26 = vadd.f32 %v884_v20, %v3006_v34  ;;  %v3111_v33 = vadd.f32 %v889_v3, %v3009_v44 }
  0xed   :  { %v3114_v10 = vadd.f32 %v890_v52, %v3012_v15  ;;  %v3121_v8 = vadd.f32 %v895_v25, %v3015_v62  ;;  %v3124_v11 = vadd.f32 %v896_v24, %v3018_v58  ;;  %v3127_v34 = vadd.f32 %v901_v6, %v3021_v16 }
  0xee   :  { %v3130_v44 = vadd.f32 %v902_v9, %v3024_v22  ;;  %v3137_v15 = vadd.f32 %v907_v43, %v3027_v40  ;;  %v3140_v62 = vadd.f32 %v908_v61, %v3030_v0  ;;  %v931_v58 = vadd.f32 %v929_v57, %v925_v63 }
  0xef   :  { %v932_v54 = vadd.f32 %v930_v30, %v926_v12  ;;  %v3143_v16 = vadd.f32 %v913_v7, %v3033_v28  ;;  %v3146_v22 = vadd.f32 %v914_v47, %v3036_v2  ;;  %v958_v18 = vstv %s3072_s1  ;;  %s3292_s1 = sld [smem:[#allocation7 + $0x8c]] }
  0xf0   :  { %v964_v5 = vstv %s3074_s3  ;;  %v937_v19 = vadd.f32 %v935_v31, %v931_v58  ;;  %v970_v51 = vstv %s3080_s12  ;;  %v1000_v40 = vstv %s3082_s13  ;;  %s3294_s3 = sld [smem:[#allocation7 + $0x10c]]  ;;  %s3302_s13 = sld [smem:[#allocation3 + $0x680]] }
  0xf1   :  { %v938_v32 = vadd.f32 %v936_v42, %v932_v54  ;;  %v1001_v0 = vmul.f32 %v2669_v56, %v1000_v40  ;;  %v1002_v28 = vmul.f32 %v2675_v60, %v1000_v40  ;;  %v1004_v2 = vstv %s3096_s14  ;;  %s3300_s12 = sld [smem:[#allocation7 + $0x18c]]  ;;  %s3316_s14 = sld [smem:[#allocation3 + $0x681]] }
  0xf2   :  { %v1010_v59 = vstv %s3098_s20  ;;  %v943_v57 = vadd.f32 %v941_v45, %v937_v19  ;;  %v1005_v63 = vmul.f32 %v2687_v38, %v1004_v2  ;;  %v1006_v12 = vmul.f32 %v2693_v41, %v1004_v2  ;;  %s3318_s20 = sld [smem:[#allocation3 + $0x682]] }
  0xf3   :  { %v944_v30 = vadd.f32 %v942_v14, %v938_v32  ;;  %v1011_v31 = vmul.f32 %v2699_v1, %v1010_v59  ;;  %v1012_v42 = vmul.f32 %v2705_v13, %v1010_v59  ;;  %v1016_v21 = vstv %s3100_s23  ;;  %s3320_s23 = sld [smem:[#allocation3 + $0x683]] }
  0xf4   :  { %v1022_v29 = vstv %s3102_s24  ;;  %v947_v27 = vadd.f32 %v946_v46, %v943_v57  ;;  %v1007_v23 = vadd.f32 %v1005_v63, %v1001_v0  ;;  %v1008_v20 = vadd.f32 %v1006_v12, %v1002_v28  ;;  %s3322_s24 = sld [smem:[#allocation3 + $0x684]] }
  0xf5   :  { %v948_v39 = vadd.f32 %v946_v46, %v944_v30  ;;  %v976_v45 = vstv %s3116_s28  ;;  %v982_v14 = vstv %s3118_s29  ;;  %v988_v3 = vstv %s3132_s21  ;;  %s3336_s28 = sld [smem:[#allocation7 + $0x20c]] }
  0xf6   :  { %v994_v52 = vstv %s3134_s30  ;;  %v949_v25 = vmax.f32 %v947_v27, 0.0  ;;  %v1017_v6 = vmul.f32 %v2721_v48, %v1016_v21  ;;  %v1018_v9 = vmul.f32 %v2727_v17, %v1016_v21  ;;  %s3338_s29 = sld [smem:[#allocation7 + $0x28c]] }
  0xf7   :  { %v950_v24 = vmax.f32 %v948_v39, 0.0  ;;  %v1013_v43 = vadd.f32 %v1011_v31, %v1007_v23  ;;  %v1014_v61 = vadd.f32 %v1012_v42, %v1008_v20  ;;  %v1023_v46 = vmul.f32 %v2733_v36, %v1022_v29  ;;  %s3352_s21 = sld [smem:[#allocation7 + $0x30c]] }
  0xf8   :  { %v1024_v7 = vmul.f32 %v2739_v37, %v1022_v29  ;;  %v953_v47 = vmul.f32 %v952_v4, %v949_v25  ;;  %v959_v54 = vmul.f32 %v958_v18, %v949_v25  ;;  %v1028_v32 = vstv %s3152_s8  ;;  %s3354_s30 = sld [smem:[#allocation7 + $0x38c]]  ;;  %s3372_s8 = sld [smem:[#allocation5 + $0xd]] }
  0xf9   :  { %v954_v58 = vmul.f32 %v952_v4, %v950_v24  ;;  %v960_v19 = vmul.f32 %v958_v18, %v950_v24  ;;  %v1034_v40 = vstv %s3154_s25  ;;  %v1040_v0 = vstv %s3160_s5  ;;  %s3374_s25 = sld [smem:[#allocation7 + $0xd]] }
  0xfa   :  { %v1046_v28 = vstv %s3162_s4  ;;  %v965_v2 = vmul.f32 %v964_v5, %v949_v25  ;;  %v966_v59 = vmul.f32 %v964_v5, %v950_v24  ;;  %v971_v57 = vmul.f32 %v970_v51, %v949_v25  ;;  %s3380_s5 = sld [smem:[#allocation7 + $0x8d]] }
  0xfb   :  { %v972_v30 = vmul.f32 %v970_v51, %v950_v24  ;;  %v3199_v4 = vadd.f32 %v953_v47, %v3085_v53  ;;  %v3202_v18 = vadd.f32 %v954_v58, %v3088_v49  ;;  %v3205_v63 = vadd.f32 %v959_v54, %v3091_v55  ;;  %s3382_s4 = sld [smem:[#allocation7 + $0x10d]] }
  0xfc   :  { %v3208_v12 = vadd.f32 %v960_v19, %v3094_v50  ;;  %v977_v5 = vmul.f32 %v976_v45, %v949_v25  ;;  %v978_v51 = vmul.f32 %v976_v45, %v950_v24  ;;  %v983_v31 = vmul.f32 %v982_v14, %v949_v25 }
  0xfd   :  { %v984_v42 = vmul.f32 %v982_v14, %v950_v24  ;;  %v989_v53 = vmul.f32 %v988_v3, %v949_v25  ;;  %v990_v49 = vmul.f32 %v988_v3, %v950_v24  ;;  %v995_v21 = vmul.f32 %v994_v52, %v949_v25 }
  0xfe   :  { %v996_v55 = vmul.f32 %v994_v52, %v950_v24  ;;  %v3223_v50 = vadd.f32 %v965_v2, %v3105_v35  ;;  %v3226_v29 = vadd.f32 %v966_v59, %v3108_v26  ;;  %v3229_v27 = vadd.f32 %v971_v57, %v3111_v33 }
  0xff   :  { %v3232_v39 = vadd.f32 %v972_v30, %v3114_v10  ;;  %v3235_v23 = vadd.f32 %v977_v5, %v3121_v8  ;;  %v3238_v20 = vadd.f32 %v978_v51, %v3124_v11  ;;  %v3241_v45 = vadd.f32 %v983_v31, %v3127_v34 }
 0x100   :  { %v3244_v35 = vadd.f32 %v984_v42, %v3130_v44  ;;  %v3247_v26 = vadd.f32 %v989_v53, %v3137_v15  ;;  %v3250_v33 = vadd.f32 %v990_v49, %v3140_v62  ;;  %v1019_v10 = vadd.f32 %v1017_v6, %v1013_v43 }
 0x101   :  { %v1020_v8 = vadd.f32 %v1018_v9, %v1014_v61  ;;  %v3253_v11 = vadd.f32 %v995_v21, %v3143_v16  ;;  %v3256_v34 = vadd.f32 %v996_v55, %v3146_v22  ;;  %v1052_v14 = vstv %s3190_s10  ;;  %s3410_s10 = sld [smem:[#allocation7 + $0x18d]] }
 0x102   :  { %v1082_v44 = vstv %s3192_s26  ;;  %v1025_v15 = vadd.f32 %v1023_v46, %v1019_v10  ;;  %v1058_v3 = vstv %s3194_s27  ;;  %v1086_v25 = vstv %s3196_s15  ;;  %s3412_s26 = sld [smem:[#allocation3 + $0x700]]  ;;  %s3414_s27 = sld [smem:[#allocation7 + $0x20d]] }
 0x103   :  { %v1026_v62 = vadd.f32 %v1024_v7, %v1020_v8  ;;  %v1083_v52 = vmul.f32 %v2669_v56, %v1082_v44  ;;  %v1084_v16 = vmul.f32 %v2675_v60, %v1082_v44  ;;  %v1092_v22 = vstv %s3210_s22  ;;  %s3416_s15 = sld [smem:[#allocation3 + $0x701]]  ;;  %s3430_s22 = sld [smem:[#allocation3 + $0x702]] }
 0x104   :  { %v1098_v24 = vstv %s3212_s11  ;;  %v1029_v6 = vadd.f32 %v1028_v32, %v1025_v15  ;;  %v1087_v43 = vmul.f32 %v2687_v38, %v1086_v25  ;;  %v1088_v61 = vmul.f32 %v2693_v41, %v1086_v25  ;;  %s3432_s11 = sld [smem:[#allocation3 + $0x703]] }
 0x105   :  { %v1030_v9 = vadd.f32 %v1028_v32, %v1026_v62  ;;  %v1064_v46 = vstv %s3214_s16  ;;  %v1070_v7 = vstv %s3216_s9  ;;  %v1076_v47 = vstv %s3218_s2  ;;  %s3434_s16 = sld [smem:[#allocation7 + $0x28d]] }
 0x106   :  { %v1104_v58 = vstv %s3220_s17  ;;  %v1031_v54 = vmax.f32 %v1029_v6, 0.0  ;;  %v1093_v2 = vmul.f32 %v2699_v1, %v1092_v22  ;;  %v1094_v32 = vmul.f32 %v2705_v13, %v1092_v22  ;;  %s3436_s9 = sld [smem:[#allocation7 + $0x30d]]  ;;  %s3440_s17 = sld [smem:[#allocation3 + $0x704]] }
 0x107   :  { %v1032_v19 = vmax.f32 %v1030_v9, 0.0  ;;  %v1089_v59 = vadd.f32 %v1087_v43, %v1083_v52  ;;  %v1090_v57 = vadd.f32 %v1088_v61, %v1084_v16  ;;  %v1099_v30 = vmul.f32 %v2721_v48, %v1098_v24  ;;  %s3438_s2 = sld [smem:[#allocation7 + $0x38d]] }
 0x108   :  { %v1100_v5 = vmul.f32 %v2727_v17, %v1098_v24  ;;  %v1035_v51 = vmul.f32 %v1034_v40, %v1031_v54  ;;  %v1041_v42 = vmul.f32 %v1040_v0, %v1031_v54  ;;  %v1105_v49 = vmul.f32 %v2733_v36, %v1104_v58 }
 0x109   :  { %v1036_v31 = vmul.f32 %v1034_v40, %v1032_v19  ;;  %v1042_v53 = vmul.f32 %v1040_v0, %v1032_v19  ;;  %v1106_v21 = vmul.f32 %v2739_v37, %v1104_v58  ;;  %v1110_v55 = vstv %s3260_s18  ;;  %s3480_s18 = sld [smem:[#allocation5 + $0xe]] }
 0x10a   :  { %v1116_v10 = vstv %s3262_s19  ;;  %v1047_v8 = vmul.f32 %v1046_v28, %v1031_v54  ;;  %v1048_v44 = vmul.f32 %v1046_v28, %v1032_v19  ;;  %v1053_v15 = vmul.f32 %v1052_v14, %v1031_v54  ;;  %s3482_s19 = sld [smem:[#allocation7 + $0xe]] }
 0x10b   :  { %v1054_v40 = vmul.f32 %v1052_v14, %v1032_v19  ;;  %v3305_v0 = vadd.f32 %v1035_v51, %v3199_v4  ;;  %v3308_v62 = vadd.f32 %v1036_v31, %v3202_v18  ;;  %v3311_v52 = vadd.f32 %v1041_v42, %v3205_v63 }
 0x10c   :  { %v3314_v16 = vadd.f32 %v1042_v53, %v3208_v12  ;;  %v1059_v28 = vmul.f32 %v1058_v3, %v1031_v54  ;;  %v1060_v14 = vmul.f32 %v1058_v3, %v1032_v19  ;;  %v1065_v25 = vmul.f32 %v1064_v46, %v1031_v54 }
 0x10d   :  { %v1066_v22 = vmul.f32 %v1064_v46, %v1032_v19  ;;  %v1071_v24 = vmul.f32 %v1070_v7, %v1031_v54  ;;  %v1072_v4 = vmul.f32 %v1070_v7, %v1032_v19  ;;  %v1077_v6 = vmul.f32 %v1076_v47, %v1031_v54 }
 0x10e   :  { %v1078_v9 = vmul.f32 %v1076_v47, %v1032_v19  ;;  %v3325_v18 = vadd.f32 %v1047_v8, %v3223_v50  ;;  %v3328_v63 = vadd.f32 %v1048_v44, %v3226_v29  ;;  %v3331_v12 = vadd.f32 %v1053_v15, %v3229_v27 }
 0x10f   :  { %v3334_v3 = vadd.f32 %v1054_v40, %v3232_v39  ;;  %v3341_v43 = vadd.f32 %v1059_v28, %v3235_v23  ;;  %v3344_v50 = vadd.f32 %v1060_v14, %v3238_v20  ;;  %v3347_v29 = vadd.f32 %v1065_v25, %v3241_v45 }
 0x110   :  { %v3350_v27 = vadd.f32 %v1066_v22, %v3244_v35  ;;  %v3357_v39 = vadd.f32 %v1071_v24, %v3247_v26  ;;  %v3360_v23 = vadd.f32 %v1072_v4, %v3250_v33  ;;  %v1095_v20 = vadd.f32 %v1093_v2, %v1089_v59 }
 0x111   :  { %v1096_v61 = vadd.f32 %v1094_v32, %v1090_v57  ;;  %v3363_v45 = vadd.f32 %v1077_v6, %v3253_v11  ;;  %v3366_v35 = vadd.f32 %v1078_v9, %v3256_v34  ;;  %v1122_v46 = vstv %s3292_s1  ;;  %s3592_s1 = sld [smem:[#allocation3 + $0x784]] }
 0x112   :  { %v1128_v7 = vstv %s3294_s3  ;;  %v1101_v47 = vadd.f32 %v1099_v30, %v1095_v20  ;;  %v1134_v54 = vstv %s3300_s12  ;;  %v1164_v26 = vstv %s3302_s13  ;;  %s3606_s3 = sld [smem:[#allocation7 + $0x20e]] }
 0x113   :  { %v1102_v58 = vadd.f32 %v1100_v5, %v1096_v61  ;;  %v1165_v33 = vmul.f32 %v2669_v56, %v1164_v26  ;;  %v1166_v11 = vmul.f32 %v2675_v60, %v1164_v26  ;;  %v1168_v34 = vstv %s3316_s14  ;;  %s3608_s12 = sld [smem:[#allocation7 + $0x28e]] }
 0x114   :  { %v1174_v19 = vstv %s3318_s20  ;;  %v1107_v2 = vadd.f32 %v1105_v49, %v1101_v47  ;;  %v1169_v59 = vmul.f32 %v2687_v38, %v1168_v34  ;;  %v1170_v57 = vmul.f32 %v2693_v41, %v1168_v34  ;;  %s3622_s13 = sld [smem:[#allocation7 + $0x30e]]  ;;  %s3642_s20 = sld [smem:[#allocation5 + $0xf]] }
 0x115   :  { %v1108_v32 = vadd.f32 %v1106_v21, %v1102_v58  ;;  %v1175_v56 = vmul.f32 %v2699_v1, %v1174_v19  ;;  %v1176_v60 = vmul.f32 %v2705_v13, %v1174_v19  ;;  %v1180_v30 = vstv %s3320_s23  ;;  %s3624_s14 = sld [smem:[#allocation7 + $0x38e]]  ;;  %s3644_s23 = sld [smem:[#allocation7 + $0xf]] }
 0x116   :  { %v1186_v5 = vstv %s3322_s24  ;;  %v1111_v51 = vadd.f32 %v1110_v55, %v1107_v2  ;;  %v1171_v42 = vadd.f32 %v1169_v59, %v1165_v33  ;;  %v1172_v53 = vadd.f32 %v1170_v57, %v1166_v11  ;;  %s3650_s24 = sld [smem:[#allocation7 + $0x8f]] }
 0x117   :  { %v1112_v31 = vadd.f32 %v1110_v55, %v1108_v32  ;;  %v1140_v49 = vstv %s3336_s28  ;;  %v1146_v21 = vstv %s3338_s29  ;;  %v1152_v38 = vstv %s3352_s21  ;;  %s3652_s28 = sld [smem:[#allocation7 + $0x10f]] }
 0x118   :  { %v1158_v41 = vstv %s3354_s30  ;;  %v1113_v1 = vmax.f32 %v1111_v51, 0.0  ;;  %v1181_v8 = vmul.f32 %v2721_v48, %v1180_v30  ;;  %v1182_v44 = vmul.f32 %v2727_v17, %v1180_v30  ;;  %s3670_s29 = sld [smem:[#allocation7 + $0x18f]] }
 0x119   :  { %v1114_v13 = vmax.f32 %v1112_v31, 0.0  ;;  %v1177_v15 = vadd.f32 %v1175_v56, %v1171_v42  ;;  %v1178_v40 = vadd.f32 %v1176_v60, %v1172_v53  ;;  %v1187_v55 = vmul.f32 %v2733_v36, %v1186_v5  ;;  %v3494_v60 = vld [vmem:[%s3836_s0 + $0x8] sm:$0xff]  ;;  %s3676_s21 = sld [smem:[#allocation7 + $0x20f]] }
 0x11a   :  { %v1188_v28 = vmul.f32 %v2739_v37, %v1186_v5  ;;  %v1117_v14 = vmul.f32 %v1116_v10, %v1113_v1  ;;  %v1123_v22 = vmul.f32 %v1122_v46, %v1113_v1  ;;  %v1192_v4 = vstv %s3372_s8  ;;  %s3678_s30 = sld [smem:[#allocation7 + $0x28f]] }
 0x11b   :  { %v1118_v25 = vmul.f32 %v1116_v10, %v1114_v13  ;;  %v1124_v24 = vmul.f32 %v1122_v46, %v1114_v13  ;;  %v1198_v6 = vstv %s3374_s25  ;;  %v1204_v9 = vstv %s3380_s5  ;;  %s3562_s25 = sld [smem:[#allocation7 + $0x8e]]  ;;  %s3684_s8 = sld [smem:[#allocation7 + $0x30f]] }
 0x11c   :  { %v1210_v20 = vstv %s3382_s4  ;;  %v1129_v48 = vmul.f32 %v1128_v7, %v1113_v1  ;;  %v1130_v17 = vmul.f32 %v1128_v7, %v1114_v13  ;;  %v1135_v61 = vmul.f32 %v1134_v54, %v1113_v1  ;;  %s3564_s5 = sld [smem:[#allocation7 + $0x10e]]  ;;  %s3588_s4 = sld [smem:[#allocation3 + $0x782]] }
 0x11d   :  { %v1136_v36 = vmul.f32 %v1134_v54, %v1114_v13  ;;  %v3419_v37 = vadd.f32 %v1117_v14, %v3305_v0  ;;  %v3422_v10 = vadd.f32 %v1118_v25, %v3308_v62  ;;  %v3425_v46 = vadd.f32 %v1123_v22, %v3311_v52  ;;  %v3525_v14 = vld [vmem:[%s3836_s0 + $0x28] sm:$0xff] }
 0x11e   :  { %v3428_v47 = vadd.f32 %v1124_v24, %v3314_v16  ;;  %v1141_v7 = vmul.f32 %v1140_v49, %v1113_v1  ;;  %v1142_v58 = vmul.f32 %v1140_v49, %v1114_v13  ;;  %v1147_v54 = vmul.f32 %v1146_v21, %v1113_v1  ;;  %v3503_v49 = vld [vmem:[%s3836_s0 + $0x10] sm:$0xff] }
 0x11f   :  { %v1148_v26 = vmul.f32 %v1146_v21, %v1114_v13  ;;  %v1153_v0 = vmul.f32 %v1152_v38, %v1113_v1  ;;  %v1154_v62 = vmul.f32 %v1152_v38, %v1114_v13  ;;  %v1159_v33 = vmul.f32 %v1158_v41, %v1113_v1  ;;  %v3509_v38 = vld [vmem:[%s3836_s0 + $0x18] sm:$0xff] }
 0x120   :  { %v1160_v52 = vmul.f32 %v1158_v41, %v1114_v13  ;;  %v3443_v16 = vadd.f32 %v1129_v48, %v3325_v18  ;;  %v3446_v11 = vadd.f32 %v1130_v17, %v3328_v63  ;;  %v3449_v34 = vadd.f32 %v1135_v61, %v3331_v12  ;;  %v3537_v17 = vld [vmem:[%s3836_s0 + $0x38] sm:$0xff] }
 0x121   :  { %v3452_v19 = vadd.f32 %v1136_v36, %v3334_v3  ;;  %v3455_v2 = vadd.f32 %v1141_v7, %v3341_v43  ;;  %v3458_v32 = vadd.f32 %v1142_v58, %v3344_v50  ;;  %v3461_v59 = vadd.f32 %v1147_v54, %v3347_v29 }
 0x122   :  { %v3464_v18 = vadd.f32 %v1148_v26, %v3350_v27  ;;  %v3467_v63 = vadd.f32 %v1153_v0, %v3357_v39  ;;  %v3470_v12 = vadd.f32 %v1154_v62, %v3360_v23  ;;  %v1183_v3 = vadd.f32 %v1181_v8, %v1177_v15  ;;  %v3551_v26 = vld [vmem:[%s3836_s0 + $0x40] sm:$0xff]  ;;  %v3557_v62 = vld [vmem:[%s3836_s0 + $0x48] sm:$0xff] }
 0x123   :  { %v1184_v43 = vadd.f32 %v1182_v44, %v1178_v40  ;;  %v3473_v50 = vadd.f32 %v1159_v33, %v3363_v45  ;;  %v3476_v29 = vadd.f32 %v1160_v52, %v3366_v35  ;;  %v1216_v57 = vstv %s3410_s10  ;;  %v3488_v45 = vld [vmem:[%s3836_s0] sm:$0xff]  ;;  %s3686_s10 = sld [smem:[#allocation8 + $0x1]] }
 0x124   :  { %v1246_v27 = vstv %s3412_s26  ;;  %v1189_v39 = vadd.f32 %v1187_v55, %v1183_v3  ;;  %v1222_v56 = vstv %s3414_s27  ;;  %v1250_v5 = vstv %s3416_s15  ;;  %v3519_v55 = vld [vmem:[%s3836_s0 + $0x20] sm:$0xff]  ;;  %s3692_s26 = sld [smem:[#allocation7 + $0x38f]]  ;;  %s3694_s27 = sld [smem:[#allocation8 + $0x2]] }
 0x125   :  { %v1190_v23 = vadd.f32 %v1188_v28, %v1184_v43  ;;  %v1247_v35 = vmul.f32 %v3488_v45, %v1246_v27  ;;  %v1248_v30 = vmul.f32 %v3494_v60, %v1246_v27  ;;  %v1256_v51 = vstv %s3430_s22  ;;  %s3698_s15 = sld [smem:[#allocation10 + $0x1]]  ;;  %s3712_s22 = sld [smem:[#allocation10 + $0x2]] }
 0x126   :  { %v1262_v31 = vstv %s3432_s11  ;;  %v1193_v42 = vadd.f32 %v1192_v4, %v1189_v39  ;;  %v1251_v21 = vmul.f32 %v3503_v49, %v1250_v5  ;;  %v1252_v41 = vmul.f32 %v3509_v38, %v1250_v5  ;;  %s3714_s11 = sld [smem:[#allocation8 + $0x3]] }
 0x127   :  { %v1194_v53 = vadd.f32 %v1192_v4, %v1190_v23  ;;  %v1228_v1 = vstv %s3434_s16  ;;  %v1234_v13 = vstv %s3436_s9  ;;  %v1240_v8 = vstv %s3438_s2  ;;  %v3531_v4 = vld [vmem:[%s3836_s0 + $0x30] sm:$0xff]  ;;  %s3570_s9 = sld [smem:[#allocation7 + $0x18e]]  ;;  %s3572_s2 = sld [smem:[#allocation3 + $0x780]] }
 0x128   :  { %v1268_v44 = vstv %s3440_s17  ;;  %v1195_v15 = vmax.f32 %v1193_v42, 0.0  ;;  %v1257_v28 = vmul.f32 %v3519_v55, %v1256_v51  ;;  %v1258_v25 = vmul.f32 %v3525_v14, %v1256_v51  ;;  %s3586_s0 = sld [smem:[#allocation3 + $0x781]]  ;;  %s3590_s17 = sld [smem:[#allocation3 + $0x783]] }
 0x129   :  { %v1196_v40 = vmax.f32 %v1194_v53, 0.0  ;;  %v1253_v22 = vadd.f32 %v1251_v21, %v1247_v35  ;;  %v1254_v24 = vadd.f32 %v1252_v41, %v1248_v30  ;;  %v1263_v48 = vmul.f32 %v3531_v4, %v1262_v31  ;;  %s3716_s16 = sld [smem:[#allocation10 + $0x3]] }
 0x12a   :  { %v1264_v61 = vmul.f32 %v3537_v17, %v1262_v31  ;;  %v1199_v36 = vmul.f32 %v1198_v6, %v1195_v15  ;;  %v1205_v58 = vmul.f32 %v1204_v9, %v1195_v15  ;;  %v1269_v0 = vmul.f32 %v3551_v26, %v1268_v44 }
 0x12b   :  { %v1200_v7 = vmul.f32 %v1198_v6, %v1196_v40  ;;  %v1206_v54 = vmul.f32 %v1204_v9, %v1196_v40  ;;  %v1270_v33 = vmul.f32 %v3557_v62, %v1268_v44  ;;  %v1274_v52 = vstv %s3480_s18  ;;  %s3672_s18 = sld [smem:[#allocation8]] }
 0x12c   :  { %v1280_v6 = vstv %s3482_s19  ;;  %v1211_v9 = vmul.f32 %v1210_v20, %v1195_v15  ;;  %v1212_v3 = vmul.f32 %v1210_v20, %v1196_v40  ;;  %v1217_v43 = vmul.f32 %v1216_v57, %v1195_v15  ;;  %s3696_s19 = sld [smem:[#allocation10]] }
 0x12d   :  { %v1218_v27 = vmul.f32 %v1216_v57, %v1196_v40  ;;  %v3575_v39 = vadd.f32 %v1199_v36, %v3419_v37  ;;  %v3578_v23 = vadd.f32 %v1200_v7, %v3422_v10  ;;  %v3581_v35 = vadd.f32 %v1205_v58, %v3425_v46 }
 0x12e   :  { %v3584_v30 = vadd.f32 %v1206_v54, %v3428_v47  ;;  %v1223_v20 = vmul.f32 %v1222_v56, %v1195_v15  ;;  %v1224_v57 = vmul.f32 %v1222_v56, %v1196_v40  ;;  %v1229_v5 = vmul.f32 %v1228_v1, %v1195_v15 }
 0x12f   :  { %v1230_v51 = vmul.f32 %v1228_v1, %v1196_v40  ;;  %v1235_v31 = vmul.f32 %v1234_v13, %v1195_v15  ;;  %v1236_v37 = vmul.f32 %v1234_v13, %v1196_v40  ;;  %v1241_v42 = vmul.f32 %v1240_v8, %v1195_v15 }
 0x130   :  { %v1242_v53 = vmul.f32 %v1240_v8, %v1196_v40  ;;  %v3595_v10 = vadd.f32 %v1211_v9, %v3443_v16  ;;  %v3598_v46 = vadd.f32 %v1212_v3, %v3446_v11  ;;  %v3601_v47 = vadd.f32 %v1217_v43, %v3449_v34 }
 0x131   :  { %v3604_v56 = vadd.f32 %v1218_v27, %v3452_v19  ;;  %v3611_v21 = vadd.f32 %v1223_v20, %v3455_v2  ;;  %v3614_v16 = vadd.f32 %v1224_v57, %v3458_v32  ;;  %v3617_v11 = vadd.f32 %v1229_v5, %v3461_v59 }
 0x132   :  { %v3620_v34 = vadd.f32 %v1230_v51, %v3464_v18  ;;  %v3627_v19 = vadd.f32 %v1235_v31, %v3467_v63  ;;  %v3630_v2 = vadd.f32 %v1236_v37, %v3470_v12  ;;  %v1259_v32 = vadd.f32 %v1257_v28, %v1253_v22 }
 0x133   :  { %v1260_v41 = vadd.f32 %v1258_v25, %v1254_v24  ;;  %v3633_v59 = vadd.f32 %v1241_v42, %v3473_v50  ;;  %v3636_v18 = vadd.f32 %v1242_v53, %v3476_v29  ;;  %v1286_v1 = vstv %s3562_s25  ;;  %s3718_s25 = sld [smem:[#allocation8 + $0x4]] }
 0x134   :  { %v1292_v13 = vstv %s3564_s5  ;;  %v1265_v8 = vadd.f32 %v1263_v48, %v1259_v32  ;;  %v1298_v15 = vstv %s3570_s9  ;;  %v1328_v63 = vstv %s3572_s2  ;;  %s3720_s5 = sld [smem:[#allocation10 + $0x4]]  ;;  %s3722_s9 = sld [smem:[#allocation8 + $0x5]] }
 0x135   :  { %v1266_v44 = vadd.f32 %v1264_v61, %v1260_v41  ;;  %v1329_v12 = vmul.f32 %v3488_v45, %v1328_v63  ;;  %v1330_v50 = vmul.f32 %v3494_v60, %v1328_v63  ;;  %v1332_v29 = vstv %s3586_s0  ;;  %s3728_s2 = sld [smem:[#allocation10 + $0x5]]  ;;  %s3730_s0 = sld [smem:[#allocation8 + $0x6]] }
 0x136   :  { %v1338_v40 = vstv %s3588_s4  ;;  %v1271_v28 = vadd.f32 %v1269_v0, %v1265_v8  ;;  %v1333_v22 = vmul.f32 %v3503_v49, %v1332_v29  ;;  %v1334_v24 = vmul.f32 %v3509_v38, %v1332_v29  ;;  %s3736_s4 = sld [smem:[#allocation10 + $0x6]] }
 0x137   :  { %v1272_v25 = vadd.f32 %v1270_v33, %v1266_v44  ;;  %v1339_v45 = vmul.f32 %v3519_v55, %v1338_v40  ;;  %v1340_v60 = vmul.f32 %v3525_v14, %v1338_v40  ;;  %v1344_v48 = vstv %s3590_s17  ;;  %s3738_s17 = sld [smem:[#allocation8 + $0x7]] }
 0x138   :  { %v1350_v61 = vstv %s3592_s1  ;;  %v1275_v36 = vadd.f32 %v1274_v52, %v1271_v28  ;;  %v1335_v58 = vadd.f32 %v1333_v22, %v1329_v12  ;;  %v1336_v54 = vadd.f32 %v1334_v24, %v1330_v50  ;;  %s3796_s1 = sld [smem:[#allocation10 + $0x7]] }
 0x139   :  { %v1276_v7 = vadd.f32 %v1274_v52, %v1272_v25  ;;  %v1304_v9 = vstv %s3606_s3  ;;  %v1310_v0 = vstv %s3608_s12  ;;  %v1316_v33 = vstv %s3622_s13 }
 0x13a   :  { %v1322_v49 = vstv %s3624_s14  ;;  %v1277_v3 = vmax.f32 %v1275_v36, 0.0  ;;  %v1345_v55 = vmul.f32 %v3531_v4, %v1344_v48  ;;  %v1346_v14 = vmul.f32 %v3537_v17, %v1344_v48 }
 0x13b   :  { %v1278_v38 = vmax.f32 %v1276_v7, 0.0  ;;  %v1341_v52 = vadd.f32 %v1339_v45, %v1335_v58  ;;  %v1342_v43 = vadd.f32 %v1340_v60, %v1336_v54  ;;  %v1351_v27 = vmul.f32 %v3551_v26, %v1350_v61 }
 0x13c   :  { %v1352_v20 = vmul.f32 %v3557_v62, %v1350_v61  ;;  %v1281_v4 = vmul.f32 %v1280_v6, %v1277_v3  ;;  %v1287_v57 = vmul.f32 %v1286_v1, %v1277_v3  ;;  %v1356_v51 = vstv %s3642_s20 }
 0x13d   :  { %v1282_v17 = vmul.f32 %v1280_v6, %v1278_v38  ;;  %v1288_v5 = vmul.f32 %v1286_v1, %v1278_v38  ;;  %v1362_v31 = vstv %s3644_s23  ;;  %v1368_v37 = vstv %s3650_s24 }
 0x13e   :  { %v1374_v26 = vstv %s3652_s28  ;;  %v1293_v62 = vmul.f32 %v1292_v13, %v1277_v3  ;;  %v1294_v42 = vmul.f32 %v1292_v13, %v1278_v38  ;;  %v1299_v53 = vmul.f32 %v1298_v15, %v1277_v3 }
 0x13f   :  { %v1300_v32 = vmul.f32 %v1298_v15, %v1278_v38  ;;  %v3701_v6 = vadd.f32 %v1281_v4, %v3575_v39  ;;  %v3704_v41 = vadd.f32 %v1282_v17, %v3578_v23  ;;  %v3707_v1 = vadd.f32 %v1287_v57, %v3581_v35 }
 0x140   :  { %v3710_v8 = vadd.f32 %v1288_v5, %v3584_v30  ;;  %v1305_v13 = vmul.f32 %v1304_v9, %v1277_v3  ;;  %v1306_v44 = vmul.f32 %v1304_v9, %v1278_v38  ;;  %v1311_v15 = vmul.f32 %v1310_v0, %v1277_v3 }
 0x141   :  { %v1312_v63 = vmul.f32 %v1310_v0, %v1278_v38  ;;  %v1317_v39 = vmul.f32 %v1316_v33, %v1277_v3  ;;  %v1318_v23 = vmul.f32 %v1316_v33, %v1278_v38  ;;  %v1323_v12 = vmul.f32 %v1322_v49, %v1277_v3 }
 0x142   :  { %v1324_v35 = vmul.f32 %v1322_v49, %v1278_v38  ;;  %v1295_v30 = vadd.f32 %v1293_v62, %v3595_v10  ;;  %v1296_v50 = vadd.f32 %v1294_v42, %v3598_v46  ;;  %v1301_v29 = vadd.f32 %v1299_v53, %v3601_v47 }
 0x143   :  { %v1302_v40 = vadd.f32 %v1300_v32, %v3604_v56  ;;  %v1307_v28 = vadd.f32 %v1305_v13, %v3611_v21  ;;  %v1308_v25 = vadd.f32 %v1306_v44, %v3614_v16  ;;  %v1313_v10 = vadd.f32 %v1311_v15, %v3617_v11 }
 0x144   :  { %v1314_v46 = vadd.f32 %v1312_v63, %v3620_v34  ;;  %v1319_v47 = vadd.f32 %v1317_v39, %v3627_v19  ;;  %v1320_v56 = vadd.f32 %v1318_v23, %v3630_v2  ;;  %v1347_v21 = vadd.f32 %v1345_v55, %v1341_v52 }
 0x145   :  { %v1348_v16 = vadd.f32 %v1346_v14, %v1342_v43  ;;  %v1325_v11 = vadd.f32 %v1323_v12, %v3633_v59  ;;  %v1326_v34 = vadd.f32 %v1324_v35, %v3636_v18  ;;  %v1380_v22 = vstv %s3670_s29 }
 0x146   :  { %v1386_v24 = vstv %s3676_s21  ;;  %v1353_v45 = vadd.f32 %v1351_v27, %v1347_v21  ;;  %v1392_v48 = vstv %s3678_s30  ;;  %v1398_v19 = vstv %s3684_s8 }
 0x147   :  { %v1354_v60 = vadd.f32 %v1352_v20, %v1348_v16  ;;  %v1404_v2 = vstv %s3692_s26  ;;  %v1410_v61 = vstv %s3672_s18  ;;  %v1416_v36 = vstv %s3696_s19 }
 0x148   :  { %v1420_v59 = vstv %s3686_s10  ;;  %v1357_v18 = vadd.f32 %v1356_v51, %v1353_v45  ;;  %v1426_v58 = vstv %s3698_s15  ;;  %v1432_v54 = vstv %s3694_s27 }
 0x149   :  { %v1358_v7 = vadd.f32 %v1356_v51, %v1354_v60  ;;  %v1438_v9 = vstv %s3712_s22  ;;  %v1444_v0 = vstv %s3714_s11  ;;  %v1450_v33 = vstv %s3716_s16 }
 0x14a   :  { %v1456_v49 = vstv %s3718_s25  ;;  %v1359_v3 = vmax.f32 %v1357_v18, 0.0  ;;  %v1462_v55 = vstv %s3720_s5  ;;  %v1468_v14 = vstv %s3722_s9 }
 0x14b   :  { %v1360_v38 = vmax.f32 %v1358_v7, 0.0  ;;  %v1474_v52 = vstv %s3728_s2  ;;  %v1480_v43 = vstv %s3730_s0  ;;  %v1486_v27 = vstv %s3736_s4 }
 0x14c   :  { %v1492_v20 = vstv %s3738_s17  ;;  %v1363_v4 = vmul.f32 %v1362_v31, %v1359_v3  ;;  %v1369_v57 = vmul.f32 %v1368_v37, %v1359_v3  ;;  %v1375_v51 = vmul.f32 %v1374_v26, %v1359_v3 }
 0x14d   :  { %v1364_v17 = vmul.f32 %v1362_v31, %v1360_v38  ;;  %v1370_v5 = vmul.f32 %v1368_v37, %v1360_v38  ;;  %v1376_v62 = vmul.f32 %v1374_v26, %v1360_v38  ;;  %v1381_v42 = vmul.f32 %v1380_v22, %v1359_v3 }
 0x14e   :  { %v1382_v53 = vmul.f32 %v1380_v22, %v1360_v38  ;;  %v1365_v32 = vadd.f32 %v1363_v4, %v3701_v6  ;;  %v1371_v44 = vadd.f32 %v1369_v57, %v3707_v1  ;;  %v1377_v63 = vadd.f32 %v1375_v51, %v1295_v30 }
 0x14f   :  { %v1366_v13 = vadd.f32 %v1364_v17, %v3704_v41  ;;  %v1372_v15 = vadd.f32 %v1370_v5, %v3710_v8  ;;  %v1378_v31 = vadd.f32 %v1376_v62, %v1296_v50  ;;  %v1383_v39 = vadd.f32 %v1381_v42, %v1301_v29 }
 0x150   :  { %v1384_v23 = vadd.f32 %v1382_v53, %v1302_v40  ;;  %v1387_v12 = vmul.f32 %v1386_v24, %v1359_v3  ;;  %v1388_v37 = vmul.f32 %v1386_v24, %v1360_v38  ;;  %v1393_v35 = vmul.f32 %v1392_v48, %v1359_v3 }
 0x151   :  { %v1394_v21 = vmul.f32 %v1392_v48, %v1360_v38  ;;  %v1399_v16 = vmul.f32 %v1398_v19, %v1359_v3  ;;  %v1400_v26 = vmul.f32 %v1398_v19, %v1360_v38  ;;  %v1405_v45 = vmul.f32 %v1404_v2, %v1359_v3 }
 0x152   :  { %v1406_v22 = vmul.f32 %v1404_v2, %v1360_v38  ;;  %v1389_v60 = vadd.f32 %v1387_v12, %v1307_v28  ;;  %v1390_v6 = vadd.f32 %v1388_v37, %v1308_v25  ;;  %v1395_v18 = vadd.f32 %v1393_v35, %v1313_v10 }
 0x153   :  { %v1396_v41 = vadd.f32 %v1394_v21, %v1314_v46  ;;  %v1401_v7 = vadd.f32 %v1399_v16, %v1319_v47  ;;  %v1402_v1 = vadd.f32 %v1400_v26, %v1320_v56  ;;  %v1407_v4 = vadd.f32 %v1405_v45, %v1325_v11 }
 0x154   :  { %v1408_v8 = vadd.f32 %v1406_v22, %v1326_v34  ;;  %v1411_v30 = vadd.f32 %v1410_v61, %v1365_v32  ;;  %v1412_v50 = vadd.f32 %v1410_v61, %v1366_v13  ;;  %v1421_v29 = vadd.f32 %v1420_v59, %v1371_v44 }
 0x155   :  { %v1422_v40 = vadd.f32 %v1420_v59, %v1372_v15  ;;  %v1433_v24 = vadd.f32 %v1432_v54, %v1377_v63  ;;  %v1434_v48 = vadd.f32 %v1432_v54, %v1378_v31  ;;  %v1445_v28 = vadd.f32 %v1444_v0, %v1383_v39 }
 0x156   :  { %v1446_v25 = vadd.f32 %v1444_v0, %v1384_v23  ;;  %v1413_v10 = vmax.f32 %v1411_v30, 0.0  ;;  %v1414_v46 = vmax.f32 %v1412_v50, 0.0  ;;  %v1423_v47 = vmax.f32 %v1421_v29, 0.0 }
 0x157   :  { %v1424_v56 = vmax.f32 %v1422_v40, 0.0  ;;  %v1435_v11 = vmax.f32 %v1433_v24, 0.0  ;;  %v1436_v34 = vmax.f32 %v1434_v48, 0.0  ;;  %v1447_v19 = vmax.f32 %v1445_v28, 0.0 }
 0x158   :  { %v1448_v2 = vmax.f32 %v1446_v25, 0.0  ;;  %v1417_v61 = vmul.f32 %v1416_v36, %v1413_v10  ;;  %v1418_v59 = vmul.f32 %v1416_v36, %v1414_v46  ;;  %v1427_v54 = vmul.f32 %v1426_v58, %v1423_v47 }
 0x159   :  { %v1428_v0 = vmul.f32 %v1426_v58, %v1424_v56  ;;  %v1439_v3 = vmul.f32 %v1438_v9, %v1435_v11  ;;  %v1440_v38 = vmul.f32 %v1438_v9, %v1436_v34  ;;  %v1451_v17 = vmul.f32 %v1450_v33, %v1447_v19 }
 0x15a   :  { %v1452_v57 = vmul.f32 %v1450_v33, %v1448_v2  ;;  %v1429_v5 = vadd.f32 %v1427_v54, %v1417_v61  ;;  %v1457_v62 = vadd.f32 %v1456_v49, %v1389_v60  ;;  %v1458_v36 = vadd.f32 %v1456_v49, %v1390_v6 }
 0x15b   :  { %v1430_v51 = vadd.f32 %v1428_v0, %v1418_v59  ;;  %v1469_v58 = vadd.f32 %v1468_v14, %v1395_v18  ;;  %v1470_v42 = vadd.f32 %v1468_v14, %v1396_v41  ;;  %v1481_v9 = vadd.f32 %v1480_v43, %v1401_v7 }
 0x15c   :  { %v1482_v33 = vadd.f32 %v1480_v43, %v1402_v1  ;;  %v1441_v53 = vadd.f32 %v1439_v3, %v1429_v5  ;;  %v1459_v13 = vmax.f32 %v1457_v62, 0.0  ;;  %v1460_v44 = vmax.f32 %v1458_v36, 0.0 }
 0x15d   :  { %v1442_v32 = vadd.f32 %v1440_v38, %v1430_v51  ;;  %v1471_v49 = vmax.f32 %v1469_v58, 0.0  ;;  %v1472_v15 = vmax.f32 %v1470_v42, 0.0  ;;  %v1483_v63 = vmax.f32 %v1481_v9, 0.0 }
 0x15e   :  { %v1484_v31 = vmax.f32 %v1482_v33, 0.0  ;;  %v1453_v39 = vadd.f32 %v1451_v17, %v1441_v53  ;;  %v1463_v23 = vmul.f32 %v1462_v55, %v1459_v13  ;;  %v1464_v12 = vmul.f32 %v1462_v55, %v1460_v44 }
 0x15f   :  { %v1454_v14 = vadd.f32 %v1452_v57, %v1442_v32  ;;  %v1475_v43 = vmul.f32 %v1474_v52, %v1471_v49  ;;  %v1476_v37 = vmul.f32 %v1474_v52, %v1472_v15  ;;  %v1487_v35 = vmul.f32 %v1486_v27, %v1483_v63 }
 0x160   :  { %v1488_v21 = vmul.f32 %v1486_v27, %v1484_v31  ;;  %v1465_v16 = vadd.f32 %v1463_v23, %v1453_v39  ;;  %v1493_v45 = vadd.f32 %v1492_v20, %v1407_v4  ;;  %v1494_v22 = vadd.f32 %v1492_v20, %v1408_v8 }
 0x161   :  { %v1466_v26 = vadd.f32 %v1464_v12, %v1454_v14  ;;  %v1498_v60 = vstv %s3796_s1  ;;  %v1504_v52 = vstv %s3842_s6 }
 0x162   :  { %v1477_v6 = vadd.f32 %v1475_v43, %v1465_v16  ;;  %v1495_v41 = vmax.f32 %v1493_v45, 0.0  ;;  %v1496_v7 = vmax.f32 %v1494_v22, 0.0 }
 0x163   :  { %v1478_v18 = vadd.f32 %v1476_v37, %v1466_v26 }
 0x164   :  { %v1489_v55 = vadd.f32 %v1487_v35, %v1477_v6  ;;  %v1499_v30 = vmul.f32 %v1498_v60, %v1495_v41  ;;  %v1500_v50 = vmul.f32 %v1498_v60, %v1496_v7 }
 0x165   :  { %v1490_v1 = vadd.f32 %v1488_v21, %v1478_v18 }
 0x166   :  { %v1501_v27 = vadd.f32 %v1499_v30, %v1489_v55 }
 0x167   :  { %v1502_v29 = vadd.f32 %v1500_v50, %v1490_v1 }
 0x168   :  { %v1505_v40 = vadd.f32 %v1504_v52, %v1501_v27 }
 0x169   :  { %v1506_v24 = vadd.f32 %v1504_v52, %v1502_v29 }
 0x16a   :  { %v1507_v4 = vsub.f32 0.0, %v1505_v40 }
 0x16b   :  { %v1508_v48 = vsub.f32 0.0, %v1506_v24 }
 0x16c   :  { %v1509_v20 = vmul.f32 1.442695, %v1507_v4 }
 0x16d   :  { %v1511_v8 = vmul.f32 1.442695, %v1508_v48 }
 0x16e   :  { %1782 = vpow2.f32 %v1509_v20 }
 0x16f   :  { %1784 = vpow2.f32 %v1511_v8 }
 0x178   :  { %v1783_v28 = vpop.eup %1782 }
 0x179   :  { %v1785_v25 = vpop.eup %1784  ;;  %v1513_v10 = vadd.f32 1.0, %v1783_v28 }
 0x17a   :  { %v1514_v46 = vadd.f32 1.0, %v1785_v25 }
 0x17b   :  { %1786 = vrcp.f32 %v1513_v10 }
 0x17c   :  { %1788 = vrcp.f32 %v1514_v46 }
 0x185   :  { %v1787_v47 = vpop.eup %1786 }
 0x186   :  { %v1789_v56 = vpop.eup %1788  ;;  %1519 = vst [vmem:[%s3843_s7] sm:$0xff] %v1787_v47 }
 0x187   :  { %1520 = vst [vmem:[%s3843_s7 + $0x8] sm:$0xff] %v1789_v56 }
 0x188   :  { %1525 = vsyncpa [#allocation4], 1 }
 0x189   :  { %1526 = vsyncpa [#allocation6], 1 }
 0x18a   :  { %1527 = vsyncpa [#allocation9], 1 }

</bundles_post_ra>
